<compile_context>
chip_gen: v6e
topology: v6e:2x2x1
jax: 0.10.0
libtpu: 0.0.40
codegen_flags: <defaults>
</compile_context>

<pallas_src>
import math

import jax
import jax.numpy as jnp
from jax.experimental import pallas as pl
from jax.experimental.pallas import tpu as pltpu

# ----------------------------- config -----------------------------
BATCH = 2
H = W = 8
N_TOKENS = H * W
C_IN = 64                 # backbone feature channels (2048 for real resnet50)
C = C_IN // 4             # head channels (16)
NUM_CLASSES = 8
NEIGHBOR_NUM = 4
BN_EPS = 1e-5

WC = W * C                # 128 -> exactly one lane row
NC = NUM_CLASSES * C      # 128 -> lane-dense class-linear slab
PAD_H = 16                # vertical halo for the depthwise convs (>= 10)


# ========================= pallas_call helper =========================

def _zero_index_map(nd):
    return lambda i: (0,) * nd


def _call(kernel, out_shape, args, scratch_shapes=()):
    """Single-step grid, whole arrays as VMEM blocks (everything here is tiny)."""
    if isinstance(out_shape, (tuple, list)):
        out_specs = tuple(pl.BlockSpec(o.shape, _zero_index_map(len(o.shape)))
                          for o in out_shape)
        out_shape = tuple(out_shape)
    else:
        out_specs = pl.BlockSpec(out_shape.shape,
                                 _zero_index_map(len(out_shape.shape)))
    return pl.pallas_call(
        kernel,
        out_shape=out_shape,
        grid=(1,),
        in_specs=[pl.BlockSpec(a.shape, _zero_index_map(a.ndim)) for a in args],
        out_specs=out_specs,
        scratch_shapes=list(scratch_shapes),
    )(*args)


# ========================= stage 1 kernel =========================
# global LinearBlock (block-diagonal, lane-dense) + MAFG depthwise conv stack.

def _stage1_kernel(featl_ref, glw_ref, gls_ref, glb_ref,
                   w0m_ref, b0_ref,
                   m01_ref, b01_ref, w02_ref, b02_ref,
                   m11_ref, b11_ref, w12_ref, b12_ref,
                   m21_ref, b21_ref, w22_ref, b22_ref,
                   xl_ref, attn_ref, pad_ref):
    # featl : (B*H, W*C_IN)     lane-dense backbone features
    # glw   : (W*C_IN, W*C)     block-diagonal global_linear weight
    # w0m   : (5, WC, WC)       per-kernel-row lane matrices of the 5x5 conv
    # m*1   : (WC, WC)          lane matrices of the 1xK convs
    # w*2   : (K, 1, WC)        per-tap lane-tiled weights of the Kx1 convs
    # b*    : (1, WC)           lane-tiled biases
    # pad   : (B, H+2*PAD_H, WC) VMEM scratch, zero halo for vertical taps

    # --- global LinearBlock directly in lane-dense layout ---
    x = jnp.maximum(
        jnp.dot(featl_ref[...], glw_ref[...], preferred_element_type=jnp.float32)
        * gls_ref[...] + glb_ref[...], 0.0)                       # (B*H, WC)
    xl_ref[...] = x                                               # u (lane-dense)
    xb = x.reshape(BATCH, H, WC)

    pad_ref[...] = jnp.zeros(pad_ref.shape, jnp.float32)

    def _hconv(val, m_ref, bias_ref):
        # horizontal 1xK depthwise conv == right-multiplication on the lane axis
        y = jnp.dot(val.reshape(BATCH * H, WC), m_ref[...],
                    preferred_element_type=jnp.float32)
        return y.reshape(BATCH, H, WC) + bias_ref[...]

    def _vconv(taps_ref, kh):
        # vertical Kx1 depthwise conv via the zero-padded scratch
        ph = kh // 2
        acc = jnp.zeros((BATCH, H, WC), jnp.float32)
        for i in range(kh):
            start = PAD_H - ph + i
            if start + H <= PAD_H or start >= PAD_H + H:
                continue                     # window entirely in the zero halo
            acc = acc + pad_ref[:, start:start + H, :] * taps_ref[i]
        return acc

    # conv0 (5x5): vertical shift from the padded scratch, horizontal via lane matmul
    pad_ref[:, PAD_H:PAD_H + H, :] = xb
    attn = jnp.zeros((BATCH, H, WC), jnp.float32)
    for i in range(5):
        start = PAD_H - 2 + i
        row = pad_ref[:, start:start + H, :]
        attn = attn + jnp.dot(row.reshape(BATCH * H, WC), w0m_ref[i],
                              preferred_element_type=jnp.float32).reshape(BATCH, H, WC)
    attn = attn + b0_ref[...]

    # branch 0: 1x7 then 7x1
    a0m = _hconv(attn, m01_ref, b01_ref)
    pad_ref[:, PAD_H:PAD_H + H, :] = a0m
    a0 = _vconv(w02_ref, 7) + b02_ref[...]

    # branch 1: 1x11 then 11x1
    a1m = _hconv(attn, m11_ref, b11_ref)
    pad_ref[:, PAD_H:PAD_H + H, :] = a1m
    a1 = _vconv(w12_ref, 11) + b12_ref[...]

    # branch 2: 1x21 then 21x1
    a2m = _hconv(attn, m21_ref, b21_ref)
    pad_ref[:, PAD_H:PAD_H + H, :] = a2m
    a2 = _vconv(w22_ref, 21) + b22_ref[...]

    attn_ref[...] = (attn + a0 + a1 + a2).reshape(BATCH * H, WC)   # lane-dense store


# ========================= stage 2 kernel =========================
# MAFG tail (conv3, *u, class-linear slab, token mean) + GNN + CCFG + Head.

def _stage2_kernel(x_ref, attn_ref,
                   w3_ref, b3_ref, wsl_ref, ssl_ref, bsl_ref,
                   uw_ref, ub_ref, vw_ref, vb_ref, gs_ref, gt_ref,
                   c1w_ref, c1b_ref, c2w_ref, c2b_ref, c3w_ref, c3b_ref,
                   c4w_ref, c4b_ref, ccw_ref, ccs_ref, ccb_ref,
                   hwg_ref, hwc_ref, sp_ref, bp_ref, scn_ref,
                   o_ref, vm_ref):
    x2d = x_ref[...]                                              # (B*H*W, C) == u
    n = NUM_CLASSES

    # ---- MAFG tail: conv3 (1x1) + *u + fused class-linear slab + token mean ----
    xf = (jnp.dot(attn_ref[...], w3_ref[...], preferred_element_type=jnp.float32)
          + b3_ref[...]) * x2d
    y = jnp.dot(xf, wsl_ref[...], preferred_element_type=jnp.float32)
    y = jnp.maximum(y * ssl_ref[...] + bsl_ref[...], 0.0)         # (B*H*W, NC)
    vmf = jnp.mean(y.reshape(BATCH, H * W, NC), axis=1)           # (B, NC) lane-dense
    # scatter the per-class means into a (B, n, C) VMEM scratch (no lane reshapes)
    for i in range(n):
        vm_ref[:, i:i + 1, :] = vmf[:, i * C:(i + 1) * C].reshape(BATCH, 1, C)

    # ---- fused GNN ----
    neg = jnp.float32(-1e30)
    ri = jax.lax.broadcasted_iota(jnp.int32, (n, n), 0)
    ci = jax.lax.broadcasted_iota(jnp.int32, (n, n), 1)
    eye = ri == ci
    gnn_out = []
    for b in range(BATCH):                                        # B = 2, unrolled
        xb = vm_ref[b]                                            # (n, C)
        si = jnp.dot(xb, xb.T, preferred_element_type=jnp.float32)
        # k-th largest per row (matches torch.topk kth value, ties included)
        thr = jnp.full((n, 1), neg, jnp.float32)
        for m in range(n):
            cand = si[:, m:m + 1]
            cnt = jnp.sum(jnp.where(si >= cand, 1.0, 0.0), axis=1, keepdims=True)
            thr = jnp.maximum(thr, jnp.where(cnt >= NEIGHBOR_NUM, cand, neg))
        adj = jnp.where(si >= thr, 1.0, 0.0)
        dis = jax.lax.rsqrt(jnp.sum(adj, axis=1, keepdims=True))  # deg >= k > 0
        dmat = jnp.where(eye, dis, 0.0)                           # diag(d^-1/2)
        a_norm = jnp.dot(jnp.dot(dmat, adj, preferred_element_type=jnp.float32),
                         dmat, preferred_element_type=jnp.float32)
        vx = jnp.dot(xb, vw_ref[...], preferred_element_type=jnp.float32) + vb_ref[...]
        ux = jnp.dot(xb, uw_ref[...], preferred_element_type=jnp.float32) + ub_ref[...]
        agg = jnp.dot(a_norm, vx, preferred_element_type=jnp.float32)
        z = (agg + ux) * gs_ref[...] + gt_ref[...]                # bnv folded (per class)
        gnn_out.append(jnp.maximum(xb + z, 0.0))

    # ---- fused CCFG ----
    r = c1w_ref.shape[1]
    x1 = jnp.dot(x2d, c1w_ref[...], preferred_element_type=jnp.float32) + c1b_ref[...]
    x2 = jnp.dot(x2d, c2w_ref[...], preferred_element_type=jnp.float32) + c2b_ref[...]
    x3 = jnp.dot(x2d, c3w_ref[...], preferred_element_type=jnp.float32) + c3b_ref[...]
    x1m = jnp.mean(x1.reshape(BATCH, H, W, r), axis=1)            # (B, W, R)
    x2m = jnp.mean(x2.reshape(BATCH, H, W, r), axis=1)            # (B, W, R)
    x3s = jnp.sum(x3.reshape(BATCH, H, W, C), axis=1)             # (B, W, C)
    # S[b, v, :] = sum_u tanh(x1m[b, u, :] - x2m[b, v, :])
    s_acc = jnp.zeros((BATCH, W, r), jnp.float32)
    for u in range(W):
        s_acc = s_acc + jnp.tanh(x1m[:, u:u + 1, :] - x2m)
    # sum over u of the conv4 attention map (bias contributes W * b4 per position)
    a_sum = (jnp.dot(s_acc.reshape(BATCH * W, r), c4w_ref[...],
                     preferred_element_type=jnp.float32).reshape(BATCH, W, C)
             + float(W) * c4b_ref[...])
    # pooled[b, c] = (1/(H*W)) * sum_v a_sum[b, v, c] * x3s[b, v, c]
    pooled = jnp.sum(a_sum * x3s, axis=1) / float(H * W)          # (B, C)
    v_ccfg = jnp.maximum(
        jnp.dot(pooled, ccw_ref[...], preferred_element_type=jnp.float32)
        * ccs_ref[...] + ccb_ref[...], 0.0)                       # (B, C)

    # ---- Head: post_concat LinearBlock + cosine scoring vs class centers ----
    for b in range(BATCH):
        f = (jnp.dot(gnn_out[b], hwg_ref[...], preferred_element_type=jnp.float32)
             + jnp.dot(v_ccfg[b:b + 1, :], hwc_ref[...],
                       preferred_element_type=jnp.float32))
        f = jnp.maximum(f * sp_ref[...] + bp_ref[...], 0.0)       # (n, C)
        inv = jax.lax.rsqrt(jnp.maximum(jnp.sum(f * f, axis=1, keepdims=True), 1e-24))
        o_ref[b] = jnp.sum(f * inv * scn_ref[...], axis=1, keepdims=True)   # (n, 1)


# ========================= parameter folding / weight prep =========================

def _bn_scale_shift(p):
    scale = p["gamma"] / jnp.sqrt(p["rv"] + BN_EPS)
    shift = p["beta"] - p["rm"] * scale
    return scale, shift


def _fold_linear_bn(p):
    """Fold fc bias into the BN shift:  y = (x@W)*s + (b*s + t)."""
    s, t = _bn_scale_shift(p)
    b_ = p["b"] * s + t
    n = s.shape[0]
    return p["w"], s.reshape(1, n), b_.reshape(1, n)


def _hconv_lane_matrix(wh):
    """(K, C) horizontal depthwise taps -> (W*C, W*C) lane matrix (zero 'same' padding)."""
    K = wh.shape[0]
    pw = K // 2
    lp = jnp.arange(WC)[:, None]          # input lane  w'*C + c'
    lo = jnp.arange(WC)[None, :]          # output lane w*C + c
    same_c = (lp % C) == (lo % C)
    j = (lp // C) - (lo // C) + pw        # tap index with w' = w + j - pw
    valid = same_c & (j >= 0) & (j < K)
    vals = wh[jnp.clip(j, 0, K - 1), lo % C]
    return jnp.where(valid, vals, 0.0).astype(jnp.float32)


def _lane_tile_taps(w):
    """(kh, 1, C) vertical depthwise taps -> (kh, 1, W*C) lane-tiled."""
    kh = w.shape[0]
    return jnp.tile(w.reshape(kh, 1, C), (1, 1, W))


def _lane_tile_vec(b):
    """(C,) per-channel bias -> (1, W*C) lane-tiled."""
    return jnp.tile(b, (W,)).reshape(1, WC)


def prepare_params(p):
    """One-time parameter folding/packing (kept outside the jitted forward)."""
    prep = {}

    # --- global LinearBlock: block-diagonal lane-dense weight ---
    wg, sg, bg = _fold_linear_bn(p["global_linear"])               # (C_IN,C),(1,C),(1,C)
    prep["glw"] = jnp.kron(jnp.eye(W, dtype=jnp.float32), wg)      # (W*C_IN, W*C)
    prep["gls"] = jnp.tile(sg, (1, W))                             # (1, WC)
    prep["glb"] = jnp.tile(bg, (1, W))

    # --- MAFG depthwise conv stack ---
    m = p["mafg"]
    w0 = m["conv0"]["w"]                                           # (5, 5, C)
    prep["w0m"] = jnp.stack([_hconv_lane_matrix(w0[i]) for i in range(5)], axis=0)
    prep["b0"] = _lane_tile_vec(m["conv0"]["b"])
    prep["m01"] = _hconv_lane_matrix(m["conv0_1"]["w"][0])
    prep["b01"] = _lane_tile_vec(m["conv0_1"]["b"])
    prep["m11"] = _hconv_lane_matrix(m["conv1_1"]["w"][0])
    prep["b11"] = _lane_tile_vec(m["conv1_1"]["b"])
    prep["m21"] = _hconv_lane_matrix(m["conv2_1"]["w"][0])
    prep["b21"] = _lane_tile_vec(m["conv2_1"]["b"])
    prep["w02"] = _lane_tile_taps(m["conv0_2"]["w"]); prep["b02"] = _lane_tile_vec(m["conv0_2"]["b"])
    prep["w12"] = _lane_tile_taps(m["conv1_2"]["w"]); prep["b12"] = _lane_tile_vec(m["conv1_2"]["b"])
    prep["w22"] = _lane_tile_taps(m["conv2_2"]["w"]); prep["b22"] = _lane_tile_vec(m["conv2_2"]["b"])

    # --- MAFG tail: conv3 + class-linear slab ---
    prep["w3"] = m["conv3"]["w"]
    prep["b3"] = m["conv3"]["b"].reshape(1, C)
    prep["wsl"] = jnp.concatenate([lb["w"] for lb in m["class_linears"]], axis=1)  # (C, 8*C)
    ss, bs = [], []
    for lb in m["class_linears"]:
        s, t = _bn_scale_shift(lb)
        ss.append(s)
        bs.append(lb["b"] * s + t)
    prep["ssl"] = jnp.concatenate(ss).reshape(1, NC)
    prep["bsl"] = jnp.concatenate(bs).reshape(1, NC)

    # --- GNN ---
    g = p["gnn"]
    s = g["bnv_gamma"] / jnp.sqrt(g["bnv_rv"] + BN_EPS)
    t = g["bnv_beta"] - g["bnv_rm"] * s
    prep["uw"] = g["U_w"]; prep["ub"] = g["U_b"].reshape(1, C)
    prep["vw"] = g["V_w"]; prep["vb"] = g["V_b"].reshape(1, C)
    prep["gs"] = s.reshape(NUM_CLASSES, 1); prep["gt"] = t.reshape(NUM_CLASSES, 1)

    # --- CCFG ---
    cc = p["ccfg"]
    R = cc["conv1"]["w"].shape[1]
    prep["c1w"] = cc["conv1"]["w"]; prep["c1b"] = cc["conv1"]["b"].reshape(1, R)
    prep["c2w"] = cc["conv2"]["w"]; prep["c2b"] = cc["conv2"]["b"].reshape(1, R)
    prep["c3w"] = cc["conv3"]["w"]; prep["c3b"] = cc["conv3"]["b"].reshape(1, C)
    prep["c4w"] = cc["conv4"]["w"]; prep["c4b"] = cc["conv4"]["b"].reshape(1, C)
    wcl, scl, bcl = _fold_linear_bn(cc["class_linear"])
    prep["ccw"] = wcl; prep["ccs"] = scl; prep["ccb"] = bcl

    # --- Head: post_concat + normalised class centers ---
    wp, sp_, bp = _fold_linear_bn(p["post_concat"])                # (2C,C),(1,C),(1,C)
    prep["hwg"] = wp[:C, :]
    prep["hwc"] = wp[C:, :]
    prep["sp"] = sp_; prep["bp"] = bp
    sc = jnp.maximum(p["sc"], 0.0)
    prep["scn"] = sc * jax.lax.rsqrt(
        jnp.maximum(jnp.sum(sc * sc, axis=-1, keepdims=True), 1e-24))
    return prep


# ========================= model glue =========================

def stage1(prep, featl):
    args = (featl, prep["glw"], prep["gls"], prep["glb"],
            prep["w0m"], prep["b0"],
            prep["m01"], prep["b01"], prep["w02"], prep["b02"],
            prep["m11"], prep["b11"], prep["w12"], prep["b12"],
            prep["m21"], prep["b21"], prep["w22"], prep["b22"])
    out = (jax.ShapeDtypeStruct((BATCH * H, WC), jnp.float32),
           jax.ShapeDtypeStruct((BATCH * H, WC), jnp.float32))
    return _call(_stage1_kernel, out, args,
                 scratch_shapes=[pltpu.VMEM((BATCH, H + 2 * PAD_H, WC), jnp.float32)])


def stage2(prep, x_tok, attn_tok):
    args = (x_tok, attn_tok,
            prep["w3"], prep["b3"], prep["wsl"], prep["ssl"], prep["bsl"],
            prep["uw"], prep["ub"], prep["vw"], prep["vb"], prep["gs"], prep["gt"],
            prep["c1w"], prep["c1b"], prep["c2w"], prep["c2b"],
            prep["c3w"], prep["c3b"], prep["c4w"], prep["c4b"],
            prep["ccw"], prep["ccs"], prep["ccb"],
            prep["hwg"], prep["hwc"], prep["sp"], prep["bp"], prep["scn"])
    out = jax.ShapeDtypeStruct((BATCH, NUM_CLASSES, 1), jnp.float32)
    return _call(_stage2_kernel, out, args,
                 scratch_shapes=[pltpu.VMEM((BATCH, NUM_CLASSES, C), jnp.float32)])


def macg_forward(prep, feat):
    # TODO(synk): resnet50 backbone not implemented; `feat` = backbone(x) features (B, N, C_IN).
    featl = feat.reshape(BATCH * H, W * C_IN)                      # lane-dense tokens
    x_lane, attn_lane = stage1(prep, featl)                        # (B*H, WC) each
    x_tok = x_lane.reshape(BATCH * H * W, C)                       # contiguous relayout in XLA
    attn_tok = attn_lane.reshape(BATCH * H * W, C)
    cl = stage2(prep, x_tok, attn_tok)                             # (B, n, 1)
    return cl[..., 0]                                              # (B, n)


# ========================= parameter init =========================

def _linear_block_params(key, cin, cout):
    kw, kb = jax.random.split(key)
    return {
        "w": jax.random.normal(kw, (cin, cout), jnp.float32) * math.sqrt(2.0 / cout),
        "b": jax.random.uniform(kb, (cout,), jnp.float32, -1.0, 1.0) / math.sqrt(cin),
        "gamma": jnp.ones((cout,), jnp.float32),
        "beta": jnp.zeros((cout,), jnp.float32),
        "rm": jnp.zeros((cout,), jnp.float32),
        "rv": jnp.ones((cout,), jnp.float32),
    }


def _conv1x1_params(key, cin, cout):
    std = math.sqrt(2.0 / cout)            # kaiming normal (fan_out), bias 0
    return {"w": jax.random.normal(key, (cin, cout), jnp.float32) * std,
            "b": jnp.zeros((cout,), jnp.float32)}


def _dwconv_params(key, kh, kw, c):
    std = math.sqrt(2.0 / (kh * kw))
    return {"w": jax.random.normal(key, (kh, kw, c), jnp.float32) * std,
            "b": jnp.zeros((c,), jnp.float32)}


def init_params(key):
    keys = jax.random.split(key, 20)
    it = iter(keys)
    params = {"global_linear": _linear_block_params(next(it), C_IN, C)}

    params["mafg"] = {
        "conv0": _dwconv_params(next(it), 5, 5, C),
        "conv0_1": _dwconv_params(next(it), 1, 7, C),
        "conv0_2": _dwconv_params(next(it), 7, 1, C),
        "conv1_1": _dwconv_params(next(it), 1, 11, C),
        "conv1_2": _dwconv_params(next(it), 11, 1, C),
        "conv2_1": _dwconv_params(next(it), 1, 21, C),
        "conv2_2": _dwconv_params(next(it), 21, 1, C),
        "conv3": _conv1x1_params(next(it), C, C),
        "class_linears": [_linear_block_params(k, C, C)
                          for k in jax.random.split(next(it), NUM_CLASSES)],
    }

    kU, kUb, kV, kVb = jax.random.split(next(it), 4)
    params["gnn"] = {
        "U_w": jax.random.normal(kU, (C, C), jnp.float32) * math.sqrt(2.0 / C),
        "U_b": jax.random.uniform(kUb, (C,), jnp.float32, -1.0, 1.0) / math.sqrt(C),
        "V_w": jax.random.normal(kV, (C, C), jnp.float32) * math.sqrt(2.0 / C),
        "V_b": jax.random.uniform(kVb, (C,), jnp.float32, -1.0, 1.0) / math.sqrt(C),
        "bnv_gamma": jnp.ones((NUM_CLASSES,), jnp.float32),
        "bnv_beta": jnp.zeros((NUM_CLASSES,), jnp.float32),
        "bnv_rm": jnp.zeros((NUM_CLASSES,), jnp.float32),
        "bnv_rv": jnp.ones((NUM_CLASSES,), jnp.float32),
    }

    R = max(C // 8, 1)
    params["ccfg"] = {
        "conv1": _conv1x1_params(next(it), C, R),
        "conv2": _conv1x1_params(next(it), C, R),
        "conv3": _conv1x1_params(next(it), C, C),
        "conv4": _conv1x1_params(next(it), R, C),
        "class_linear": _linear_block_params(next(it), C, C),
    }

    a = math.sqrt(6.0 / (NUM_CLASSES + C))   # xavier uniform
    params["sc"] = jax.random.uniform(next(it), (NUM_CLASSES, C), jnp.float32, -a, a)
    params["post_concat"] = _linear_block_params(next(it), 2 * C, C)
    return params


# ========================= main =========================

if __name__ == "__main__":
    key = jax.random.PRNGKey(0)
    kp, kx = jax.random.split(key)
    params = init_params(kp)
    prep = prepare_params(params)          # one-time parameter folding / packing
    # synthetic backbone features (B, N, C_IN) standing in for resnet50 output
    feat = jax.random.normal(kx, (BATCH, N_TOKENS, C_IN), jnp.float32)

    cl = jax.jit(macg_forward)(prep, feat)
    jax.block_until_ready(cl)
    assert cl.shape == (BATCH, NUM_CLASSES)
    assert cl.dtype == jnp.float32
    print("KERNEL_OK")
</pallas_src>

<mosaic_0001>
module attributes {stable_mosaic.version = 11 : i64} {
  func.func @_stage1_kernel(%arg0: i32, %arg1: memref<16x512xf32, #tpu.memory_space<vmem>>, %arg2: memref<512x128xf32, #tpu.memory_space<vmem>>, %arg3: memref<1x128xf32, #tpu.memory_space<vmem>>, %arg4: memref<1x128xf32, #tpu.memory_space<vmem>>, %arg5: memref<5x128x128xf32, #tpu.memory_space<vmem>>, %arg6: memref<1x128xf32, #tpu.memory_space<vmem>>, %arg7: memref<128x128xf32, #tpu.memory_space<vmem>>, %arg8: memref<1x128xf32, #tpu.memory_space<vmem>>, %arg9: memref<7x1x128xf32, #tpu.memory_space<vmem>>, %arg10: memref<1x128xf32, #tpu.memory_space<vmem>>, %arg11: memref<128x128xf32, #tpu.memory_space<vmem>>, %arg12: memref<1x128xf32, #tpu.memory_space<vmem>>, %arg13: memref<11x1x128xf32, #tpu.memory_space<vmem>>, %arg14: memref<1x128xf32, #tpu.memory_space<vmem>>, %arg15: memref<128x128xf32, #tpu.memory_space<vmem>>, %arg16: memref<1x128xf32, #tpu.memory_space<vmem>>, %arg17: memref<21x1x128xf32, #tpu.memory_space<vmem>>, %arg18: memref<1x128xf32, #tpu.memory_space<vmem>>, %arg19: memref<16x128xf32, #tpu.memory_space<vmem>>, %arg20: memref<16x128xf32, #tpu.memory_space<vmem>>, %arg21: memref<2x40x128xf32, #tpu.memory_space<vmem>>) attributes {dimension_semantics = [#tpu.dimension_semantics<arbitrary>], iteration_bounds = array<i64: 1>, scalar_prefetch = 0 : i64, scratch_operands = 1 : i64, tpu.core_type = #tpu.core_type<tc>, window_params = [{pipeline_mode = #tpu.pipeline_mode<synchronous>, transform_indices = @transform_0, window_bounds = array<i64: 16, 512>}, {pipeline_mode = #tpu.pipeline_mode<synchronous>, transform_indices = @transform_1, window_bounds = array<i64: 512, 128>}, {pipeline_mode = #tpu.pipeline_mode<synchronous>, transform_indices = @transform_2, window_bounds = array<i64: 1, 128>}, {pipeline_mode = #tpu.pipeline_mode<synchronous>, transform_indices = @transform_3, window_bounds = array<i64: 1, 128>}, {pipeline_mode = #tpu.pipeline_mode<synchronous>, transform_indices = @transform_4, window_bounds = array<i64: 5, 128, 128>}, {pipeline_mode = #tpu.pipeline_mode<synchronous>, transform_indices = @transform_5, window_bounds = array<i64: 1, 128>}, {pipeline_mode = #tpu.pipeline_mode<synchronous>, transform_indices = @transform_6, window_bounds = array<i64: 128, 128>}, {pipeline_mode = #tpu.pipeline_mode<synchronous>, transform_indices = @transform_7, window_bounds = array<i64: 1, 128>}, {pipeline_mode = #tpu.pipeline_mode<synchronous>, transform_indices = @transform_8, window_bounds = array<i64: 7, 1, 128>}, {pipeline_mode = #tpu.pipeline_mode<synchronous>, transform_indices = @transform_9, window_bounds = array<i64: 1, 128>}, {pipeline_mode = #tpu.pipeline_mode<synchronous>, transform_indices = @transform_10, window_bounds = array<i64: 128, 128>}, {pipeline_mode = #tpu.pipeline_mode<synchronous>, transform_indices = @transform_11, window_bounds = array<i64: 1, 128>}, {pipeline_mode = #tpu.pipeline_mode<synchronous>, transform_indices = @transform_12, window_bounds = array<i64: 11, 1, 128>}, {pipeline_mode = #tpu.pipeline_mode<synchronous>, transform_indices = @transform_13, window_bounds = array<i64: 1, 128>}, {pipeline_mode = #tpu.pipeline_mode<synchronous>, transform_indices = @transform_14, window_bounds = array<i64: 128, 128>}, {pipeline_mode = #tpu.pipeline_mode<synchronous>, transform_indices = @transform_15, window_bounds = array<i64: 1, 128>}, {pipeline_mode = #tpu.pipeline_mode<synchronous>, transform_indices = @transform_16, window_bounds = array<i64: 21, 1, 128>}, {pipeline_mode = #tpu.pipeline_mode<synchronous>, transform_indices = @transform_17, window_bounds = array<i64: 1, 128>}, {pipeline_mode = #tpu.pipeline_mode<synchronous>, transform_indices = @transform_18, window_bounds = array<i64: 16, 128>}, {pipeline_mode = #tpu.pipeline_mode<synchronous>, transform_indices = @transform_19, window_bounds = array<i64: 16, 128>}]} {
    %c0 = arith.constant 0 : index
    %c0_0 = arith.constant 0 : index
    %0 = vector.load %arg1[%c0, %c0_0] : memref<16x512xf32, #tpu.memory_space<vmem>>, vector<16x512xf32>
    %c0_1 = arith.constant 0 : index
    %c0_2 = arith.constant 0 : index
    %1 = vector.load %arg2[%c0_1, %c0_2] : memref<512x128xf32, #tpu.memory_space<vmem>>, vector<512x128xf32>
    %cst = arith.constant dense<0.000000e+00> : vector<16x128xf32>
    %2 = tpu.matmul %0, %1, %cst {dimension_numbers = #tpu.dot_dimension_numbers<[1], [0], [0], [1], [0, 0, 1, 1], [], []>} : vector<16x512xf32>, vector<512x128xf32>, vector<16x128xf32> -> vector<16x128xf32>
    %c0_3 = arith.constant 0 : index
    %c0_4 = arith.constant 0 : index
    %3 = vector.load %arg3[%c0_3, %c0_4] : memref<1x128xf32, #tpu.memory_space<vmem>>, vector<1x128xf32>
    %4 = vector.broadcast %3 : vector<1x128xf32> to vector<16x128xf32>
    %5 = arith.mulf %2, %4 : vector<16x128xf32>
    %c0_5 = arith.constant 0 : index
    %c0_6 = arith.constant 0 : index
    %6 = vector.load %arg4[%c0_5, %c0_6] : memref<1x128xf32, #tpu.memory_space<vmem>>, vector<1x128xf32>
    %7 = vector.broadcast %6 : vector<1x128xf32> to vector<16x128xf32>
    %8 = arith.addf %5, %7 : vector<16x128xf32>
    %cst_7 = arith.constant 0.000000e+00 : f32
    %9 = vector.broadcast %cst_7 : f32 to vector<16x128xf32>
    %10 = arith.maximumf %8, %9 : vector<16x128xf32>
    %c0_8 = arith.constant 0 : index
    %c0_9 = arith.constant 0 : index
    %11 = vector.load %arg19[%c0_8, %c0_9] : memref<16x128xf32, #tpu.memory_space<vmem>>, vector<16x128xf32>
    tpu.vector_store %arg19[%c0_8, %c0_9], %10 {strides = array<i32>} : memref<16x128xf32, #tpu.memory_space<vmem>>, vector<16x128xf32>,
    %12 = vector.shape_cast %10 : vector<16x128xf32> to vector<2x8x128xf32>
    %cst_10 = arith.constant 0.000000e+00 : f32
    %13 = vector.broadcast %cst_10 : f32 to vector<2x40x128xf32>
    %c0_11 = arith.constant 0 : index
    %c0_12 = arith.constant 0 : index
    %c0_13 = arith.constant 0 : index
    %14 = vector.load %arg21[%c0_11, %c0_12, %c0_13] : memref<2x40x128xf32, #tpu.memory_space<vmem>>, vector<2x40x128xf32>
    tpu.vector_store %arg21[%c0_11, %c0_12, %c0_13], %13 {strides = array<i32>} : memref<2x40x128xf32, #tpu.memory_space<vmem>>, vector<2x40x128xf32>,
    %c0_14 = arith.constant 0 : index
    %c16 = arith.constant 16 : index
    %c0_15 = arith.constant 0 : index
    %15 = vector.load %arg21[%c0_14, %c16, %c0_15] : memref<2x40x128xf32, #tpu.memory_space<vmem>>, vector<2x8x128xf32>
    tpu.vector_store %arg21[%c0_14, %c16, %c0_15], %12 {strides = array<i32>} : memref<2x40x128xf32, #tpu.memory_space<vmem>>, vector<2x8x128xf32>,
    %cst_16 = arith.constant 0.000000e+00 : f32
    %16 = vector.broadcast %cst_16 : f32 to vector<2x8x128xf32>
    %c0_17 = arith.constant 0 : index
    %c14 = arith.constant 14 : index
    %c0_18 = arith.constant 0 : index
    %17 = vector.load %arg21[%c0_17, %c14, %c0_18] : memref<2x40x128xf32, #tpu.memory_space<vmem>>, vector<2x8x128xf32>
    %18 = vector.shape_cast %17 : vector<2x8x128xf32> to vector<16x128xf32>
    %c0_19 = arith.constant 0 : index
    %c0_20 = arith.constant 0 : index
    %c0_21 = arith.constant 0 : index
    %19 = vector.load %arg5[%c0_19, %c0_20, %c0_21] : memref<5x128x128xf32, #tpu.memory_space<vmem>>, vector<1x128x128xf32>
    %20 = vector.shape_cast %19 : vector<1x128x128xf32> to vector<128x128xf32>
    %cst_22 = arith.constant dense<0.000000e+00> : vector<16x128xf32>
    %21 = tpu.matmul %18, %20, %cst_22 {dimension_numbers = #tpu.dot_dimension_numbers<[1], [0], [0], [1], [0, 0, 1, 1], [], []>} : vector<16x128xf32>, vector<128x128xf32>, vector<16x128xf32> -> vector<16x128xf32>
    %22 = vector.shape_cast %21 : vector<16x128xf32> to vector<2x8x128xf32>
    %23 = arith.addf %16, %22 : vector<2x8x128xf32>
    %c0_23 = arith.constant 0 : index
    %c15 = arith.constant 15 : index
    %c0_24 = arith.constant 0 : index
    %24 = vector.load %arg21[%c0_23, %c15, %c0_24] : memref<2x40x128xf32, #tpu.memory_space<vmem>>, vector<2x8x128xf32>
    %25 = vector.shape_cast %24 : vector<2x8x128xf32> to vector<16x128xf32>
    %c1 = arith.constant 1 : index
    %c0_25 = arith.constant 0 : index
    %c0_26 = arith.constant 0 : index
    %26 = vector.load %arg5[%c1, %c0_25, %c0_26] : memref<5x128x128xf32, #tpu.memory_space<vmem>>, vector<1x128x128xf32>
    %27 = vector.shape_cast %26 : vector<1x128x128xf32> to vector<128x128xf32>
    %cst_27 = arith.constant dense<0.000000e+00> : vector<16x128xf32>
    %28 = tpu.matmul %25, %27, %cst_27 {dimension_numbers = #tpu.dot_dimension_numbers<[1], [0], [0], [1], [0, 0, 1, 1], [], []>} : vector<16x128xf32>, vector<128x128xf32>, vector<16x128xf32> -> vector<16x128xf32>
    %29 = vector.shape_cast %28 : vector<16x128xf32> to vector<2x8x128xf32>
    %30 = arith.addf %23, %29 : vector<2x8x128xf32>
    %c0_28 = arith.constant 0 : index
    %c16_29 = arith.constant 16 : index
    %c0_30 = arith.constant 0 : index
    %31 = vector.load %arg21[%c0_28, %c16_29, %c0_30] : memref<2x40x128xf32, #tpu.memory_space<vmem>>, vector<2x8x128xf32>
    %32 = vector.shape_cast %31 : vector<2x8x128xf32> to vector<16x128xf32>
    %c2 = arith.constant 2 : index
    %c0_31 = arith.constant 0 : index
    %c0_32 = arith.constant 0 : index
    %33 = vector.load %arg5[%c2, %c0_31, %c0_32] : memref<5x128x128xf32, #tpu.memory_space<vmem>>, vector<1x128x128xf32>
    %34 = vector.shape_cast %33 : vector<1x128x128xf32> to vector<128x128xf32>
    %cst_33 = arith.constant dense<0.000000e+00> : vector<16x128xf32>
    %35 = tpu.matmul %32, %34, %cst_33 {dimension_numbers = #tpu.dot_dimension_numbers<[1], [0], [0], [1], [0, 0, 1, 1], [], []>} : vector<16x128xf32>, vector<128x128xf32>, vector<16x128xf32> -> vector<16x128xf32>
    %36 = vector.shape_cast %35 : vector<16x128xf32> to vector<2x8x128xf32>
    %37 = arith.addf %30, %36 : vector<2x8x128xf32>
    %c0_34 = arith.constant 0 : index
    %c17 = arith.constant 17 : index
    %c0_35 = arith.constant 0 : index
    %38 = vector.load %arg21[%c0_34, %c17, %c0_35] : memref<2x40x128xf32, #tpu.memory_space<vmem>>, vector<2x8x128xf32>
    %39 = vector.shape_cast %38 : vector<2x8x128xf32> to vector<16x128xf32>
    %c3 = arith.constant 3 : index
    %c0_36 = arith.constant 0 : index
    %c0_37 = arith.constant 0 : index
    %40 = vector.load %arg5[%c3, %c0_36, %c0_37] : memref<5x128x128xf32, #tpu.memory_space<vmem>>, vector<1x128x128xf32>
    %41 = vector.shape_cast %40 : vector<1x128x128xf32> to vector<128x128xf32>
    %cst_38 = arith.constant dense<0.000000e+00> : vector<16x128xf32>
    %42 = tpu.matmul %39, %41, %cst_38 {dimension_numbers = #tpu.dot_dimension_numbers<[1], [0], [0], [1], [0, 0, 1, 1], [], []>} : vector<16x128xf32>, vector<128x128xf32>, vector<16x128xf32> -> vector<16x128xf32>
    %43 = vector.shape_cast %42 : vector<16x128xf32> to vector<2x8x128xf32>
    %44 = arith.addf %37, %43 : vector<2x8x128xf32>
    %c0_39 = arith.constant 0 : index
    %c18 = arith.constant 18 : index
    %c0_40 = arith.constant 0 : index
    %45 = vector.load %arg21[%c0_39, %c18, %c0_40] : memref<2x40x128xf32, #tpu.memory_space<vmem>>, vector<2x8x128xf32>
    %46 = vector.shape_cast %45 : vector<2x8x128xf32> to vector<16x128xf32>
    %c4 = arith.constant 4 : index
    %c0_41 = arith.constant 0 : index
    %c0_42 = arith.constant 0 : index
    %47 = vector.load %arg5[%c4, %c0_41, %c0_42] : memref<5x128x128xf32, #tpu.memory_space<vmem>>, vector<1x128x128xf32>
    %48 = vector.shape_cast %47 : vector<1x128x128xf32> to vector<128x128xf32>
    %cst_43 = arith.constant dense<0.000000e+00> : vector<16x128xf32>
    %49 = tpu.matmul %46, %48, %cst_43 {dimension_numbers = #tpu.dot_dimension_numbers<[1], [0], [0], [1], [0, 0, 1, 1], [], []>} : vector<16x128xf32>, vector<128x128xf32>, vector<16x128xf32> -> vector<16x128xf32>
    %50 = vector.shape_cast %49 : vector<16x128xf32> to vector<2x8x128xf32>
    %51 = arith.addf %44, %50 : vector<2x8x128xf32>
    %c0_44 = arith.constant 0 : index
    %c0_45 = arith.constant 0 : index
    %52 = vector.load %arg6[%c0_44, %c0_45] : memref<1x128xf32, #tpu.memory_space<vmem>>, vector<1x128xf32>
    %53 = vector.shape_cast %52 : vector<1x128xf32> to vector<1x1x128xf32>
    %54 = vector.broadcast %53 : vector<1x1x128xf32> to vector<2x8x128xf32>
    %55 = arith.addf %51, %54 : vector<2x8x128xf32>
    %56 = vector.shape_cast %55 : vector<2x8x128xf32> to vector<16x128xf32>
    %c0_46 = arith.constant 0 : index
    %c0_47 = arith.constant 0 : index
    %57 = vector.load %arg7[%c0_46, %c0_47] : memref<128x128xf32, #tpu.memory_space<vmem>>, vector<128x128xf32>
    %cst_48 = arith.constant dense<0.000000e+00> : vector<16x128xf32>
    %58 = tpu.matmul %56, %57, %cst_48 {dimension_numbers = #tpu.dot_dimension_numbers<[1], [0], [0], [1], [0, 0, 1, 1], [], []>} : vector<16x128xf32>, vector<128x128xf32>, vector<16x128xf32> -> vector<16x128xf32>
    %59 = vector.shape_cast %58 : vector<16x128xf32> to vector<2x8x128xf32>
    %c0_49 = arith.constant 0 : index
    %c0_50 = arith.constant 0 : index
    %60 = vector.load %arg8[%c0_49, %c0_50] : memref<1x128xf32, #tpu.memory_space<vmem>>, vector<1x128xf32>
    %61 = vector.shape_cast %60 : vector<1x128xf32> to vector<1x1x128xf32>
    %62 = vector.broadcast %61 : vector<1x1x128xf32> to vector<2x8x128xf32>
    %63 = arith.addf %59, %62 : vector<2x8x128xf32>
    %c0_51 = arith.constant 0 : index
    %c16_52 = arith.constant 16 : index
    %c0_53 = arith.constant 0 : index
    %64 = vector.load %arg21[%c0_51, %c16_52, %c0_53] : memref<2x40x128xf32, #tpu.memory_space<vmem>>, vector<2x8x128xf32>
    tpu.vector_store %arg21[%c0_51, %c16_52, %c0_53], %63 {strides = array<i32>} : memref<2x40x128xf32, #tpu.memory_space<vmem>>, vector<2x8x128xf32>,
    %cst_54 = arith.constant 0.000000e+00 : f32
    %65 = vector.broadcast %cst_54 : f32 to vector<2x8x128xf32>
    %c0_55 = arith.constant 0 : index
    %c13 = arith.constant 13 : index
    %c0_56 = arith.constant 0 : index
    %66 = vector.load %arg21[%c0_55, %c13, %c0_56] : memref<2x40x128xf32, #tpu.memory_space<vmem>>, vector<2x8x128xf32>
    %c0_57 = arith.constant 0 : index
    %c0_58 = arith.constant 0 : index
    %c0_59 = arith.constant 0 : index
    %67 = vector.load %arg9[%c0_57, %c0_58, %c0_59] : memref<7x1x128xf32, #tpu.memory_space<vmem>>, vector<1x1x128xf32>
    %68 = vector.shape_cast %67 : vector<1x1x128xf32> to vector<1x128xf32>
    %69 = vector.shape_cast %68 : vector<1x128xf32> to vector<1x1x128xf32>
    %70 = vector.broadcast %69 : vector<1x1x128xf32> to vector<2x8x128xf32>
    %71 = arith.mulf %66, %70 : vector<2x8x128xf32>
    %72 = arith.addf %65, %71 : vector<2x8x128xf32>
    %c0_60 = arith.constant 0 : index
    %c14_61 = arith.constant 14 : index
    %c0_62 = arith.constant 0 : index
    %73 = vector.load %arg21[%c0_60, %c14_61, %c0_62] : memref<2x40x128xf32, #tpu.memory_space<vmem>>, vector<2x8x128xf32>
    %c1_63 = arith.constant 1 : index
    %c0_64 = arith.constant 0 : index
    %c0_65 = arith.constant 0 : index
    %74 = vector.load %arg9[%c1_63, %c0_64, %c0_65] : memref<7x1x128xf32, #tpu.memory_space<vmem>>, vector<1x1x128xf32>
    %75 = vector.shape_cast %74 : vector<1x1x128xf32> to vector<1x128xf32>
    %76 = vector.shape_cast %75 : vector<1x128xf32> to vector<1x1x128xf32>
    %77 = vector.broadcast %76 : vector<1x1x128xf32> to vector<2x8x128xf32>
    %78 = arith.mulf %73, %77 : vector<2x8x128xf32>
    %79 = arith.addf %72, %78 : vector<2x8x128xf32>
    %c0_66 = arith.constant 0 : index
    %c15_67 = arith.constant 15 : index
    %c0_68 = arith.constant 0 : index
    %80 = vector.load %arg21[%c0_66, %c15_67, %c0_68] : memref<2x40x128xf32, #tpu.memory_space<vmem>>, vector<2x8x128xf32>
    %c2_69 = arith.constant 2 : index
    %c0_70 = arith.constant 0 : index
    %c0_71 = arith.constant 0 : index
    %81 = vector.load %arg9[%c2_69, %c0_70, %c0_71] : memref<7x1x128xf32, #tpu.memory_space<vmem>>, vector<1x1x128xf32>
    %82 = vector.shape_cast %81 : vector<1x1x128xf32> to vector<1x128xf32>
    %83 = vector.shape_cast %82 : vector<1x128xf32> to vector<1x1x128xf32>
    %84 = vector.broadcast %83 : vector<1x1x128xf32> to vector<2x8x128xf32>
    %85 = arith.mulf %80, %84 : vector<2x8x128xf32>
    %86 = arith.addf %79, %85 : vector<2x8x128xf32>
    %c0_72 = arith.constant 0 : index
    %c16_73 = arith.constant 16 : index
    %c0_74 = arith.constant 0 : index
    %87 = vector.load %arg21[%c0_72, %c16_73, %c0_74] : memref<2x40x128xf32, #tpu.memory_space<vmem>>, vector<2x8x128xf32>
    %c3_75 = arith.constant 3 : index
    %c0_76 = arith.constant 0 : index
    %c0_77 = arith.constant 0 : index
    %88 = vector.load %arg9[%c3_75, %c0_76, %c0_77] : memref<7x1x128xf32, #tpu.memory_space<vmem>>, vector<1x1x128xf32>
    %89 = vector.shape_cast %88 : vector<1x1x128xf32> to vector<1x128xf32>
    %90 = vector.shape_cast %89 : vector<1x128xf32> to vector<1x1x128xf32>
    %91 = vector.broadcast %90 : vector<1x1x128xf32> to vector<2x8x128xf32>
    %92 = arith.mulf %87, %91 : vector<2x8x128xf32>
    %93 = arith.addf %86, %92 : vector<2x8x128xf32>
    %c0_78 = arith.constant 0 : index
    %c17_79 = arith.constant 17 : index
    %c0_80 = arith.constant 0 : index
    %94 = vector.load %arg21[%c0_78, %c17_79, %c0_80] : memref<2x40x128xf32, #tpu.memory_space<vmem>>, vector<2x8x128xf32>
    %c4_81 = arith.constant 4 : index
    %c0_82 = arith.constant 0 : index
    %c0_83 = arith.constant 0 : index
    %95 = vector.load %arg9[%c4_81, %c0_82, %c0_83] : memref<7x1x128xf32, #tpu.memory_space<vmem>>, vector<1x1x128xf32>
    %96 = vector.shape_cast %95 : vector<1x1x128xf32> to vector<1x128xf32>
    %97 = vector.shape_cast %96 : vector<1x128xf32> to vector<1x1x128xf32>
    %98 = vector.broadcast %97 : vector<1x1x128xf32> to vector<2x8x128xf32>
    %99 = arith.mulf %94, %98 : vector<2x8x128xf32>
    %100 = arith.addf %93, %99 : vector<2x8x128xf32>
    %c0_84 = arith.constant 0 : index
    %c18_85 = arith.constant 18 : index
    %c0_86 = arith.constant 0 : index
    %101 = vector.load %arg21[%c0_84, %c18_85, %c0_86] : memref<2x40x128xf32, #tpu.memory_space<vmem>>, vector<2x8x128xf32>
    %c5 = arith.constant 5 : index
    %c0_87 = arith.constant 0 : index
    %c0_88 = arith.constant 0 : index
    %102 = vector.load %arg9[%c5, %c0_87, %c0_88] : memref<7x1x128xf32, #tpu.memory_space<vmem>>, vector<1x1x128xf32>
    %103 = vector.shape_cast %102 : vector<1x1x128xf32> to vector<1x128xf32>
    %104 = vector.shape_cast %103 : vector<1x128xf32> to vector<1x1x128xf32>
    %105 = vector.broadcast %104 : vector<1x1x128xf32> to vector<2x8x128xf32>
    %106 = arith.mulf %101, %105 : vector<2x8x128xf32>
    %107 = arith.addf %100, %106 : vector<2x8x128xf32>
    %c0_89 = arith.constant 0 : index
    %c19 = arith.constant 19 : index
    %c0_90 = arith.constant 0 : index
    %108 = vector.load %arg21[%c0_89, %c19, %c0_90] : memref<2x40x128xf32, #tpu.memory_space<vmem>>, vector<2x8x128xf32>
    %c6 = arith.constant 6 : index
    %c0_91 = arith.constant 0 : index
    %c0_92 = arith.constant 0 : index
    %109 = vector.load %arg9[%c6, %c0_91, %c0_92] : memref<7x1x128xf32, #tpu.memory_space<vmem>>, vector<1x1x128xf32>
    %110 = vector.shape_cast %109 : vector<1x1x128xf32> to vector<1x128xf32>
    %111 = vector.shape_cast %110 : vector<1x128xf32> to vector<1x1x128xf32>
    %112 = vector.broadcast %111 : vector<1x1x128xf32> to vector<2x8x128xf32>
    %113 = arith.mulf %108, %112 : vector<2x8x128xf32>
    %114 = arith.addf %107, %113 : vector<2x8x128xf32>
    %c0_93 = arith.constant 0 : index
    %c0_94 = arith.constant 0 : index
    %115 = vector.load %arg10[%c0_93, %c0_94] : memref<1x128xf32, #tpu.memory_space<vmem>>, vector<1x128xf32>
    %116 = vector.shape_cast %115 : vector<1x128xf32> to vector<1x1x128xf32>
    %117 = vector.broadcast %116 : vector<1x1x128xf32> to vector<2x8x128xf32>
    %118 = arith.addf %114, %117 : vector<2x8x128xf32>
    %119 = vector.shape_cast %55 : vector<2x8x128xf32> to vector<16x128xf32>
    %c0_95 = arith.constant 0 : index
    %c0_96 = arith.constant 0 : index
    %120 = vector.load %arg11[%c0_95, %c0_96] : memref<128x128xf32, #tpu.memory_space<vmem>>, vector<128x128xf32>
    %cst_97 = arith.constant dense<0.000000e+00> : vector<16x128xf32>
    %121 = tpu.matmul %119, %120, %cst_97 {dimension_numbers = #tpu.dot_dimension_numbers<[1], [0], [0], [1], [0, 0, 1, 1], [], []>} : vector<16x128xf32>, vector<128x128xf32>, vector<16x128xf32> -> vector<16x128xf32>
    %122 = vector.shape_cast %121 : vector<16x128xf32> to vector<2x8x128xf32>
    %c0_98 = arith.constant 0 : index
    %c0_99 = arith.constant 0 : index
    %123 = vector.load %arg12[%c0_98, %c0_99] : memref<1x128xf32, #tpu.memory_space<vmem>>, vector<1x128xf32>
    %124 = vector.shape_cast %123 : vector<1x128xf32> to vector<1x1x128xf32>
    %125 = vector.broadcast %124 : vector<1x1x128xf32> to vector<2x8x128xf32>
    %126 = arith.addf %122, %125 : vector<2x8x128xf32>
    %c0_100 = arith.constant 0 : index
    %c16_101 = arith.constant 16 : index
    %c0_102 = arith.constant 0 : index
    %127 = vector.load %arg21[%c0_100, %c16_101, %c0_102] : memref<2x40x128xf32, #tpu.memory_space<vmem>>, vector<2x8x128xf32>
    tpu.vector_store %arg21[%c0_100, %c16_101, %c0_102], %126 {strides = array<i32>} : memref<2x40x128xf32, #tpu.memory_space<vmem>>, vector<2x8x128xf32>,
    %cst_103 = arith.constant 0.000000e+00 : f32
    %128 = vector.broadcast %cst_103 : f32 to vector<2x8x128xf32>
    %c0_104 = arith.constant 0 : index
    %c11 = arith.constant 11 : index
    %c0_105 = arith.constant 0 : index
    %129 = vector.load %arg21[%c0_104, %c11, %c0_105] : memref<2x40x128xf32, #tpu.memory_space<vmem>>, vector<2x8x128xf32>
    %c0_106 = arith.constant 0 : index
    %c0_107 = arith.constant 0 : index
    %c0_108 = arith.constant 0 : index
    %130 = vector.load %arg13[%c0_106, %c0_107, %c0_108] : memref<11x1x128xf32, #tpu.memory_space<vmem>>, vector<1x1x128xf32>
    %131 = vector.shape_cast %130 : vector<1x1x128xf32> to vector<1x128xf32>
    %132 = vector.shape_cast %131 : vector<1x128xf32> to vector<1x1x128xf32>
    %133 = vector.broadcast %132 : vector<1x1x128xf32> to vector<2x8x128xf32>
    %134 = arith.mulf %129, %133 : vector<2x8x128xf32>
    %135 = arith.addf %128, %134 : vector<2x8x128xf32>
    %c0_109 = arith.constant 0 : index
    %c12 = arith.constant 12 : index
    %c0_110 = arith.constant 0 : index
    %136 = vector.load %arg21[%c0_109, %c12, %c0_110] : memref<2x40x128xf32, #tpu.memory_space<vmem>>, vector<2x8x128xf32>
    %c1_111 = arith.constant 1 : index
    %c0_112 = arith.constant 0 : index
    %c0_113 = arith.constant 0 : index
    %137 = vector.load %arg13[%c1_111, %c0_112, %c0_113] : memref<11x1x128xf32, #tpu.memory_space<vmem>>, vector<1x1x128xf32>
    %138 = vector.shape_cast %137 : vector<1x1x128xf32> to vector<1x128xf32>
    %139 = vector.shape_cast %138 : vector<1x128xf32> to vector<1x1x128xf32>
    %140 = vector.broadcast %139 : vector<1x1x128xf32> to vector<2x8x128xf32>
    %141 = arith.mulf %136, %140 : vector<2x8x128xf32>
    %142 = arith.addf %135, %141 : vector<2x8x128xf32>
    %c0_114 = arith.constant 0 : index
    %c13_115 = arith.constant 13 : index
    %c0_116 = arith.constant 0 : index
    %143 = vector.load %arg21[%c0_114, %c13_115, %c0_116] : memref<2x40x128xf32, #tpu.memory_space<vmem>>, vector<2x8x128xf32>
    %c2_117 = arith.constant 2 : index
    %c0_118 = arith.constant 0 : index
    %c0_119 = arith.constant 0 : index
    %144 = vector.load %arg13[%c2_117, %c0_118, %c0_119] : memref<11x1x128xf32, #tpu.memory_space<vmem>>, vector<1x1x128xf32>
    %145 = vector.shape_cast %144 : vector<1x1x128xf32> to vector<1x128xf32>
    %146 = vector.shape_cast %145 : vector<1x128xf32> to vector<1x1x128xf32>
    %147 = vector.broadcast %146 : vector<1x1x128xf32> to vector<2x8x128xf32>
    %148 = arith.mulf %143, %147 : vector<2x8x128xf32>
    %149 = arith.addf %142, %148 : vector<2x8x128xf32>
    %c0_120 = arith.constant 0 : index
    %c14_121 = arith.constant 14 : index
    %c0_122 = arith.constant 0 : index
    %150 = vector.load %arg21[%c0_120, %c14_121, %c0_122] : memref<2x40x128xf32, #tpu.memory_space<vmem>>, vector<2x8x128xf32>
    %c3_123 = arith.constant 3 : index
    %c0_124 = arith.constant 0 : index
    %c0_125 = arith.constant 0 : index
    %151 = vector.load %arg13[%c3_123, %c0_124, %c0_125] : memref<11x1x128xf32, #tpu.memory_space<vmem>>, vector<1x1x128xf32>
    %152 = vector.shape_cast %151 : vector<1x1x128xf32> to vector<1x128xf32>
    %153 = vector.shape_cast %152 : vector<1x128xf32> to vector<1x1x128xf32>
    %154 = vector.broadcast %153 : vector<1x1x128xf32> to vector<2x8x128xf32>
    %155 = arith.mulf %150, %154 : vector<2x8x128xf32>
    %156 = arith.addf %149, %155 : vector<2x8x128xf32>
    %c0_126 = arith.constant 0 : index
    %c15_127 = arith.constant 15 : index
    %c0_128 = arith.constant 0 : index
    %157 = vector.load %arg21[%c0_126, %c15_127, %c0_128] : memref<2x40x128xf32, #tpu.memory_space<vmem>>, vector<2x8x128xf32>
    %c4_129 = arith.constant 4 : index
    %c0_130 = arith.constant 0 : index
    %c0_131 = arith.constant 0 : index
    %158 = vector.load %arg13[%c4_129, %c0_130, %c0_131] : memref<11x1x128xf32, #tpu.memory_space<vmem>>, vector<1x1x128xf32>
    %159 = vector.shape_cast %158 : vector<1x1x128xf32> to vector<1x128xf32>
    %160 = vector.shape_cast %159 : vector<1x128xf32> to vector<1x1x128xf32>
    %161 = vector.broadcast %160 : vector<1x1x128xf32> to vector<2x8x128xf32>
    %162 = arith.mulf %157, %161 : vector<2x8x128xf32>
    %163 = arith.addf %156, %162 : vector<2x8x128xf32>
    %c0_132 = arith.constant 0 : index
    %c16_133 = arith.constant 16 : index
    %c0_134 = arith.constant 0 : index
    %164 = vector.load %arg21[%c0_132, %c16_133, %c0_134] : memref<2x40x128xf32, #tpu.memory_space<vmem>>, vector<2x8x128xf32>
    %c5_135 = arith.constant 5 : index
    %c0_136 = arith.constant 0 : index
    %c0_137 = arith.constant 0 : index
    %165 = vector.load %arg13[%c5_135, %c0_136, %c0_137] : memref<11x1x128xf32, #tpu.memory_space<vmem>>, vector<1x1x128xf32>
    %166 = vector.shape_cast %165 : vector<1x1x128xf32> to vector<1x128xf32>
    %167 = vector.shape_cast %166 : vector<1x128xf32> to vector<1x1x128xf32>
    %168 = vector.broadcast %167 : vector<1x1x128xf32> to vector<2x8x128xf32>
    %169 = arith.mulf %164, %168 : vector<2x8x128xf32>
    %170 = arith.addf %163, %169 : vector<2x8x128xf32>
    %c0_138 = arith.constant 0 : index
    %c17_139 = arith.constant 17 : index
    %c0_140 = arith.constant 0 : index
    %171 = vector.load %arg21[%c0_138, %c17_139, %c0_140] : memref<2x40x128xf32, #tpu.memory_space<vmem>>, vector<2x8x128xf32>
    %c6_141 = arith.constant 6 : index
    %c0_142 = arith.constant 0 : index
    %c0_143 = arith.constant 0 : index
    %172 = vector.load %arg13[%c6_141, %c0_142, %c0_143] : memref<11x1x128xf32, #tpu.memory_space<vmem>>, vector<1x1x128xf32>
    %173 = vector.shape_cast %172 : vector<1x1x128xf32> to vector<1x128xf32>
    %174 = vector.shape_cast %173 : vector<1x128xf32> to vector<1x1x128xf32>
    %175 = vector.broadcast %174 : vector<1x1x128xf32> to vector<2x8x128xf32>
    %176 = arith.mulf %171, %175 : vector<2x8x128xf32>
    %177 = arith.addf %170, %176 : vector<2x8x128xf32>
    %c0_144 = arith.constant 0 : index
    %c18_145 = arith.constant 18 : index
    %c0_146 = arith.constant 0 : index
    %178 = vector.load %arg21[%c0_144, %c18_145, %c0_146] : memref<2x40x128xf32, #tpu.memory_space<vmem>>, vector<2x8x128xf32>
    %c7 = arith.constant 7 : index
    %c0_147 = arith.constant 0 : index
    %c0_148 = arith.constant 0 : index
    %179 = vector.load %arg13[%c7, %c0_147, %c0_148] : memref<11x1x128xf32, #tpu.memory_space<vmem>>, vector<1x1x128xf32>
    %180 = vector.shape_cast %179 : vector<1x1x128xf32> to vector<1x128xf32>
    %181 = vector.shape_cast %180 : vector<1x128xf32> to vector<1x1x128xf32>
    %182 = vector.broadcast %181 : vector<1x1x128xf32> to vector<2x8x128xf32>
    %183 = arith.mulf %178, %182 : vector<2x8x128xf32>
    %184 = arith.addf %177, %183 : vector<2x8x128xf32>
    %c0_149 = arith.constant 0 : index
    %c19_150 = arith.constant 19 : index
    %c0_151 = arith.constant 0 : index
    %185 = vector.load %arg21[%c0_149, %c19_150, %c0_151] : memref<2x40x128xf32, #tpu.memory_space<vmem>>, vector<2x8x128xf32>
    %c8 = arith.constant 8 : index
    %c0_152 = arith.constant 0 : index
    %c0_153 = arith.constant 0 : index
    %186 = vector.load %arg13[%c8, %c0_152, %c0_153] : memref<11x1x128xf32, #tpu.memory_space<vmem>>, vector<1x1x128xf32>
    %187 = vector.shape_cast %186 : vector<1x1x128xf32> to vector<1x128xf32>
    %188 = vector.shape_cast %187 : vector<1x128xf32> to vector<1x1x128xf32>
    %189 = vector.broadcast %188 : vector<1x1x128xf32> to vector<2x8x128xf32>
    %190 = arith.mulf %185, %189 : vector<2x8x128xf32>
    %191 = arith.addf %184, %190 : vector<2x8x128xf32>
    %c0_154 = arith.constant 0 : index
    %c20 = arith.constant 20 : index
    %c0_155 = arith.constant 0 : index
    %192 = vector.load %arg21[%c0_154, %c20, %c0_155] : memref<2x40x128xf32, #tpu.memory_space<vmem>>, vector<2x8x128xf32>
    %c9 = arith.constant 9 : index
    %c0_156 = arith.constant 0 : index
    %c0_157 = arith.constant 0 : index
    %193 = vector.load %arg13[%c9, %c0_156, %c0_157] : memref<11x1x128xf32, #tpu.memory_space<vmem>>, vector<1x1x128xf32>
    %194 = vector.shape_cast %193 : vector<1x1x128xf32> to vector<1x128xf32>
    %195 = vector.shape_cast %194 : vector<1x128xf32> to vector<1x1x128xf32>
    %196 = vector.broadcast %195 : vector<1x1x128xf32> to vector<2x8x128xf32>
    %197 = arith.mulf %192, %196 : vector<2x8x128xf32>
    %198 = arith.addf %191, %197 : vector<2x8x128xf32>
    %c0_158 = arith.constant 0 : index
    %c21 = arith.constant 21 : index
    %c0_159 = arith.constant 0 : index
    %199 = vector.load %arg21[%c0_158, %c21, %c0_159] : memref<2x40x128xf32, #tpu.memory_space<vmem>>, vector<2x8x128xf32>
    %c10 = arith.constant 10 : index
    %c0_160 = arith.constant 0 : index
    %c0_161 = arith.constant 0 : index
    %200 = vector.load %arg13[%c10, %c0_160, %c0_161] : memref<11x1x128xf32, #tpu.memory_space<vmem>>, vector<1x1x128xf32>
    %201 = vector.shape_cast %200 : vector<1x1x128xf32> to vector<1x128xf32>
    %202 = vector.shape_cast %201 : vector<1x128xf32> to vector<1x1x128xf32>
    %203 = vector.broadcast %202 : vector<1x1x128xf32> to vector<2x8x128xf32>
    %204 = arith.mulf %199, %203 : vector<2x8x128xf32>
    %205 = arith.addf %198, %204 : vector<2x8x128xf32>
    %c0_162 = arith.constant 0 : index
    %c0_163 = arith.constant 0 : index
    %206 = vector.load %arg14[%c0_162, %c0_163] : memref<1x128xf32, #tpu.memory_space<vmem>>, vector<1x128xf32>
    %207 = vector.shape_cast %206 : vector<1x128xf32> to vector<1x1x128xf32>
    %208 = vector.broadcast %207 : vector<1x1x128xf32> to vector<2x8x128xf32>
    %209 = arith.addf %205, %208 : vector<2x8x128xf32>
    %210 = vector.shape_cast %55 : vector<2x8x128xf32> to vector<16x128xf32>
    %c0_164 = arith.constant 0 : index
    %c0_165 = arith.constant 0 : index
    %211 = vector.load %arg15[%c0_164, %c0_165] : memref<128x128xf32, #tpu.memory_space<vmem>>, vector<128x128xf32>
    %cst_166 = arith.constant dense<0.000000e+00> : vector<16x128xf32>
    %212 = tpu.matmul %210, %211, %cst_166 {dimension_numbers = #tpu.dot_dimension_numbers<[1], [0], [0], [1], [0, 0, 1, 1], [], []>} : vector<16x128xf32>, vector<128x128xf32>, vector<16x128xf32> -> vector<16x128xf32>
    %213 = vector.shape_cast %212 : vector<16x128xf32> to vector<2x8x128xf32>
    %c0_167 = arith.constant 0 : index
    %c0_168 = arith.constant 0 : index
    %214 = vector.load %arg16[%c0_167, %c0_168] : memref<1x128xf32, #tpu.memory_space<vmem>>, vector<1x128xf32>
    %215 = vector.shape_cast %214 : vector<1x128xf32> to vector<1x1x128xf32>
    %216 = vector.broadcast %215 : vector<1x1x128xf32> to vector<2x8x128xf32>
    %217 = arith.addf %213, %216 : vector<2x8x128xf32>
    %c0_169 = arith.constant 0 : index
    %c16_170 = arith.constant 16 : index
    %c0_171 = arith.constant 0 : index
    %218 = vector.load %arg21[%c0_169, %c16_170, %c0_171] : memref<2x40x128xf32, #tpu.memory_space<vmem>>, vector<2x8x128xf32>
    tpu.vector_store %arg21[%c0_169, %c16_170, %c0_171], %217 {strides = array<i32>} : memref<2x40x128xf32, #tpu.memory_space<vmem>>, vector<2x8x128xf32>,
    %cst_172 = arith.constant 0.000000e+00 : f32
    %219 = vector.broadcast %cst_172 : f32 to vector<2x8x128xf32>
    %c0_173 = arith.constant 0 : index
    %c9_174 = arith.constant 9 : index
    %c0_175 = arith.constant 0 : index
    %220 = vector.load %arg21[%c0_173, %c9_174, %c0_175] : memref<2x40x128xf32, #tpu.memory_space<vmem>>, vector<2x8x128xf32>
    %c3_176 = arith.constant 3 : index
    %c0_177 = arith.constant 0 : index
    %c0_178 = arith.constant 0 : index
    %221 = vector.load %arg17[%c3_176, %c0_177, %c0_178] : memref<21x1x128xf32, #tpu.memory_space<vmem>>, vector<1x1x128xf32>
    %222 = vector.shape_cast %221 : vector<1x1x128xf32> to vector<1x128xf32>
    %223 = vector.shape_cast %222 : vector<1x128xf32> to vector<1x1x128xf32>
    %224 = vector.broadcast %223 : vector<1x1x128xf32> to vector<2x8x128xf32>
    %225 = arith.mulf %220, %224 : vector<2x8x128xf32>
    %226 = arith.addf %219, %225 : vector<2x8x128xf32>
    %c0_179 = arith.constant 0 : index
    %c10_180 = arith.constant 10 : index
    %c0_181 = arith.constant 0 : index
    %227 = vector.load %arg21[%c0_179, %c10_180, %c0_181] : memref<2x40x128xf32, #tpu.memory_space<vmem>>, vector<2x8x128xf32>
    %c4_182 = arith.constant 4 : index
    %c0_183 = arith.constant 0 : index
    %c0_184 = arith.constant 0 : index
    %228 = vector.load %arg17[%c4_182, %c0_183, %c0_184] : memref<21x1x128xf32, #tpu.memory_space<vmem>>, vector<1x1x128xf32>
    %229 = vector.shape_cast %228 : vector<1x1x128xf32> to vector<1x128xf32>
    %230 = vector.shape_cast %229 : vector<1x128xf32> to vector<1x1x128xf32>
    %231 = vector.broadcast %230 : vector<1x1x128xf32> to vector<2x8x128xf32>
    %232 = arith.mulf %227, %231 : vector<2x8x128xf32>
    %233 = arith.addf %226, %232 : vector<2x8x128xf32>
    %c0_185 = arith.constant 0 : index
    %c11_186 = arith.constant 11 : index
    %c0_187 = arith.constant 0 : index
    %234 = vector.load %arg21[%c0_185, %c11_186, %c0_187] : memref<2x40x128xf32, #tpu.memory_space<vmem>>, vector<2x8x128xf32>
    %c5_188 = arith.constant 5 : index
    %c0_189 = arith.constant 0 : index
    %c0_190 = arith.constant 0 : index
    %235 = vector.load %arg17[%c5_188, %c0_189, %c0_190] : memref<21x1x128xf32, #tpu.memory_space<vmem>>, vector<1x1x128xf32>
    %236 = vector.shape_cast %235 : vector<1x1x128xf32> to vector<1x128xf32>
    %237 = vector.shape_cast %236 : vector<1x128xf32> to vector<1x1x128xf32>
    %238 = vector.broadcast %237 : vector<1x1x128xf32> to vector<2x8x128xf32>
    %239 = arith.mulf %234, %238 : vector<2x8x128xf32>
    %240 = arith.addf %233, %239 : vector<2x8x128xf32>
    %c0_191 = arith.constant 0 : index
    %c12_192 = arith.constant 12 : index
    %c0_193 = arith.constant 0 : index
    %241 = vector.load %arg21[%c0_191, %c12_192, %c0_193] : memref<2x40x128xf32, #tpu.memory_space<vmem>>, vector<2x8x128xf32>
    %c6_194 = arith.constant 6 : index
    %c0_195 = arith.constant 0 : index
    %c0_196 = arith.constant 0 : index
    %242 = vector.load %arg17[%c6_194, %c0_195, %c0_196] : memref<21x1x128xf32, #tpu.memory_space<vmem>>, vector<1x1x128xf32>
    %243 = vector.shape_cast %242 : vector<1x1x128xf32> to vector<1x128xf32>
    %244 = vector.shape_cast %243 : vector<1x128xf32> to vector<1x1x128xf32>
    %245 = vector.broadcast %244 : vector<1x1x128xf32> to vector<2x8x128xf32>
    %246 = arith.mulf %241, %245 : vector<2x8x128xf32>
    %247 = arith.addf %240, %246 : vector<2x8x128xf32>
    %c0_197 = arith.constant 0 : index
    %c13_198 = arith.constant 13 : index
    %c0_199 = arith.constant 0 : index
    %248 = vector.load %arg21[%c0_197, %c13_198, %c0_199] : memref<2x40x128xf32, #tpu.memory_space<vmem>>, vector<2x8x128xf32>
    %c7_200 = arith.constant 7 : index
    %c0_201 = arith.constant 0 : index
    %c0_202 = arith.constant 0 : index
    %249 = vector.load %arg17[%c7_200, %c0_201, %c0_202] : memref<21x1x128xf32, #tpu.memory_space<vmem>>, vector<1x1x128xf32>
    %250 = vector.shape_cast %249 : vector<1x1x128xf32> to vector<1x128xf32>
    %251 = vector.shape_cast %250 : vector<1x128xf32> to vector<1x1x128xf32>
    %252 = vector.broadcast %251 : vector<1x1x128xf32> to vector<2x8x128xf32>
    %253 = arith.mulf %248, %252 : vector<2x8x128xf32>
    %254 = arith.addf %247, %253 : vector<2x8x128xf32>
    %c0_203 = arith.constant 0 : index
    %c14_204 = arith.constant 14 : index
    %c0_205 = arith.constant 0 : index
    %255 = vector.load %arg21[%c0_203, %c14_204, %c0_205] : memref<2x40x128xf32, #tpu.memory_space<vmem>>, vector<2x8x128xf32>
    %c8_206 = arith.constant 8 : index
    %c0_207 = arith.constant 0 : index
    %c0_208 = arith.constant 0 : index
    %256 = vector.load %arg17[%c8_206, %c0_207, %c0_208] : memref<21x1x128xf32, #tpu.memory_space<vmem>>, vector<1x1x128xf32>
    %257 = vector.shape_cast %256 : vector<1x1x128xf32> to vector<1x128xf32>
    %258 = vector.shape_cast %257 : vector<1x128xf32> to vector<1x1x128xf32>
    %259 = vector.broadcast %258 : vector<1x1x128xf32> to vector<2x8x128xf32>
    %260 = arith.mulf %255, %259 : vector<2x8x128xf32>
    %261 = arith.addf %254, %260 : vector<2x8x128xf32>
    %c0_209 = arith.constant 0 : index
    %c15_210 = arith.constant 15 : index
    %c0_211 = arith.constant 0 : index
    %262 = vector.load %arg21[%c0_209, %c15_210, %c0_211] : memref<2x40x128xf32, #tpu.memory_space<vmem>>, vector<2x8x128xf32>
    %c9_212 = arith.constant 9 : index
    %c0_213 = arith.constant 0 : index
    %c0_214 = arith.constant 0 : index
    %263 = vector.load %arg17[%c9_212, %c0_213, %c0_214] : memref<21x1x128xf32, #tpu.memory_space<vmem>>, vector<1x1x128xf32>
    %264 = vector.shape_cast %263 : vector<1x1x128xf32> to vector<1x128xf32>
    %265 = vector.shape_cast %264 : vector<1x128xf32> to vector<1x1x128xf32>
    %266 = vector.broadcast %265 : vector<1x1x128xf32> to vector<2x8x128xf32>
    %267 = arith.mulf %262, %266 : vector<2x8x128xf32>
    %268 = arith.addf %261, %267 : vector<2x8x128xf32>
    %c0_215 = arith.constant 0 : index
    %c16_216 = arith.constant 16 : index
    %c0_217 = arith.constant 0 : index
    %269 = vector.load %arg21[%c0_215, %c16_216, %c0_217] : memref<2x40x128xf32, #tpu.memory_space<vmem>>, vector<2x8x128xf32>
    %c10_218 = arith.constant 10 : index
    %c0_219 = arith.constant 0 : index
    %c0_220 = arith.constant 0 : index
    %270 = vector.load %arg17[%c10_218, %c0_219, %c0_220] : memref<21x1x128xf32, #tpu.memory_space<vmem>>, vector<1x1x128xf32>
    %271 = vector.shape_cast %270 : vector<1x1x128xf32> to vector<1x128xf32>
    %272 = vector.shape_cast %271 : vector<1x128xf32> to vector<1x1x128xf32>
    %273 = vector.broadcast %272 : vector<1x1x128xf32> to vector<2x8x128xf32>
    %274 = arith.mulf %269, %273 : vector<2x8x128xf32>
    %275 = arith.addf %268, %274 : vector<2x8x128xf32>
    %c0_221 = arith.constant 0 : index
    %c17_222 = arith.constant 17 : index
    %c0_223 = arith.constant 0 : index
    %276 = vector.load %arg21[%c0_221, %c17_222, %c0_223] : memref<2x40x128xf32, #tpu.memory_space<vmem>>, vector<2x8x128xf32>
    %c11_224 = arith.constant 11 : index
    %c0_225 = arith.constant 0 : index
    %c0_226 = arith.constant 0 : index
    %277 = vector.load %arg17[%c11_224, %c0_225, %c0_226] : memref<21x1x128xf32, #tpu.memory_space<vmem>>, vector<1x1x128xf32>
    %278 = vector.shape_cast %277 : vector<1x1x128xf32> to vector<1x128xf32>
    %279 = vector.shape_cast %278 : vector<1x128xf32> to vector<1x1x128xf32>
    %280 = vector.broadcast %279 : vector<1x1x128xf32> to vector<2x8x128xf32>
    %281 = arith.mulf %276, %280 : vector<2x8x128xf32>
    %282 = arith.addf %275, %281 : vector<2x8x128xf32>
    %c0_227 = arith.constant 0 : index
    %c18_228 = arith.constant 18 : index
    %c0_229 = arith.constant 0 : index
    %283 = vector.load %arg21[%c0_227, %c18_228, %c0_229] : memref<2x40x128xf32, #tpu.memory_space<vmem>>, vector<2x8x128xf32>
    %c12_230 = arith.constant 12 : index
    %c0_231 = arith.constant 0 : index
    %c0_232 = arith.constant 0 : index
    %284 = vector.load %arg17[%c12_230, %c0_231, %c0_232] : memref<21x1x128xf32, #tpu.memory_space<vmem>>, vector<1x1x128xf32>
    %285 = vector.shape_cast %284 : vector<1x1x128xf32> to vector<1x128xf32>
    %286 = vector.shape_cast %285 : vector<1x128xf32> to vector<1x1x128xf32>
    %287 = vector.broadcast %286 : vector<1x1x128xf32> to vector<2x8x128xf32>
    %288 = arith.mulf %283, %287 : vector<2x8x128xf32>
    %289 = arith.addf %282, %288 : vector<2x8x128xf32>
    %c0_233 = arith.constant 0 : index
    %c19_234 = arith.constant 19 : index
    %c0_235 = arith.constant 0 : index
    %290 = vector.load %arg21[%c0_233, %c19_234, %c0_235] : memref<2x40x128xf32, #tpu.memory_space<vmem>>, vector<2x8x128xf32>
    %c13_236 = arith.constant 13 : index
    %c0_237 = arith.constant 0 : index
    %c0_238 = arith.constant 0 : index
    %291 = vector.load %arg17[%c13_236, %c0_237, %c0_238] : memref<21x1x128xf32, #tpu.memory_space<vmem>>, vector<1x1x128xf32>
    %292 = vector.shape_cast %291 : vector<1x1x128xf32> to vector<1x128xf32>
    %293 = vector.shape_cast %292 : vector<1x128xf32> to vector<1x1x128xf32>
    %294 = vector.broadcast %293 : vector<1x1x128xf32> to vector<2x8x128xf32>
    %295 = arith.mulf %290, %294 : vector<2x8x128xf32>
    %296 = arith.addf %289, %295 : vector<2x8x128xf32>
    %c0_239 = arith.constant 0 : index
    %c20_240 = arith.constant 20 : index
    %c0_241 = arith.constant 0 : index
    %297 = vector.load %arg21[%c0_239, %c20_240, %c0_241] : memref<2x40x128xf32, #tpu.memory_space<vmem>>, vector<2x8x128xf32>
    %c14_242 = arith.constant 14 : index
    %c0_243 = arith.constant 0 : index
    %c0_244 = arith.constant 0 : index
    %298 = vector.load %arg17[%c14_242, %c0_243, %c0_244] : memref<21x1x128xf32, #tpu.memory_space<vmem>>, vector<1x1x128xf32>
    %299 = vector.shape_cast %298 : vector<1x1x128xf32> to vector<1x128xf32>
    %300 = vector.shape_cast %299 : vector<1x128xf32> to vector<1x1x128xf32>
    %301 = vector.broadcast %300 : vector<1x1x128xf32> to vector<2x8x128xf32>
    %302 = arith.mulf %297, %301 : vector<2x8x128xf32>
    %303 = arith.addf %296, %302 : vector<2x8x128xf32>
    %c0_245 = arith.constant 0 : index
    %c21_246 = arith.constant 21 : index
    %c0_247 = arith.constant 0 : index
    %304 = vector.load %arg21[%c0_245, %c21_246, %c0_247] : memref<2x40x128xf32, #tpu.memory_space<vmem>>, vector<2x8x128xf32>
    %c15_248 = arith.constant 15 : index
    %c0_249 = arith.constant 0 : index
    %c0_250 = arith.constant 0 : index
    %305 = vector.load %arg17[%c15_248, %c0_249, %c0_250] : memref<21x1x128xf32, #tpu.memory_space<vmem>>, vector<1x1x128xf32>
    %306 = vector.shape_cast %305 : vector<1x1x128xf32> to vector<1x128xf32>
    %307 = vector.shape_cast %306 : vector<1x128xf32> to vector<1x1x128xf32>
    %308 = vector.broadcast %307 : vector<1x1x128xf32> to vector<2x8x128xf32>
    %309 = arith.mulf %304, %308 : vector<2x8x128xf32>
    %310 = arith.addf %303, %309 : vector<2x8x128xf32>
    %c0_251 = arith.constant 0 : index
    %c22 = arith.constant 22 : index
    %c0_252 = arith.constant 0 : index
    %311 = vector.load %arg21[%c0_251, %c22, %c0_252] : memref<2x40x128xf32, #tpu.memory_space<vmem>>, vector<2x8x128xf32>
    %c16_253 = arith.constant 16 : index
    %c0_254 = arith.constant 0 : index
    %c0_255 = arith.constant 0 : index
    %312 = vector.load %arg17[%c16_253, %c0_254, %c0_255] : memref<21x1x128xf32, #tpu.memory_space<vmem>>, vector<1x1x128xf32>
    %313 = vector.shape_cast %312 : vector<1x1x128xf32> to vector<1x128xf32>
    %314 = vector.shape_cast %313 : vector<1x128xf32> to vector<1x1x128xf32>
    %315 = vector.broadcast %314 : vector<1x1x128xf32> to vector<2x8x128xf32>
    %316 = arith.mulf %311, %315 : vector<2x8x128xf32>
    %317 = arith.addf %310, %316 : vector<2x8x128xf32>
    %c0_256 = arith.constant 0 : index
    %c23 = arith.constant 23 : index
    %c0_257 = arith.constant 0 : index
    %318 = vector.load %arg21[%c0_256, %c23, %c0_257] : memref<2x40x128xf32, #tpu.memory_space<vmem>>, vector<2x8x128xf32>
    %c17_258 = arith.constant 17 : index
    %c0_259 = arith.constant 0 : index
    %c0_260 = arith.constant 0 : index
    %319 = vector.load %arg17[%c17_258, %c0_259, %c0_260] : memref<21x1x128xf32, #tpu.memory_space<vmem>>, vector<1x1x128xf32>
    %320 = vector.shape_cast %319 : vector<1x1x128xf32> to vector<1x128xf32>
    %321 = vector.shape_cast %320 : vector<1x128xf32> to vector<1x1x128xf32>
    %322 = vector.broadcast %321 : vector<1x1x128xf32> to vector<2x8x128xf32>
    %323 = arith.mulf %318, %322 : vector<2x8x128xf32>
    %324 = arith.addf %317, %323 : vector<2x8x128xf32>
    %c0_261 = arith.constant 0 : index
    %c0_262 = arith.constant 0 : index
    %325 = vector.load %arg18[%c0_261, %c0_262] : memref<1x128xf32, #tpu.memory_space<vmem>>, vector<1x128xf32>
    %326 = vector.shape_cast %325 : vector<1x128xf32> to vector<1x1x128xf32>
    %327 = vector.broadcast %326 : vector<1x1x128xf32> to vector<2x8x128xf32>
    %328 = arith.addf %324, %327 : vector<2x8x128xf32>
    %329 = arith.addf %55, %118 : vector<2x8x128xf32>
    %330 = arith.addf %329, %209 : vector<2x8x128xf32>
    %331 = arith.addf %330, %328 : vector<2x8x128xf32>
    %332 = vector.shape_cast %331 : vector<2x8x128xf32> to vector<16x128xf32>
    %c0_263 = arith.constant 0 : index
    %c0_264 = arith.constant 0 : index
    %333 = vector.load %arg20[%c0_263, %c0_264] : memref<16x128xf32, #tpu.memory_space<vmem>>, vector<16x128xf32>
    tpu.vector_store %arg20[%c0_263, %c0_264], %332 {strides = array<i32>} : memref<16x128xf32, #tpu.memory_space<vmem>>, vector<16x128xf32>,
    return
  }
  func.func @transform_0(%arg0: i32) -> (i32, i32) {
    %c0_i32 = arith.constant 0 : i32
    %c0_i32_0 = arith.constant 0 : i32
    %c0_i32_1 = arith.constant 0 : i32
    return %c0_i32, %c0_i32_0 : i32, i32
  }
  func.func @transform_1(%arg0: i32) -> (i32, i32) {
    %c0_i32 = arith.constant 0 : i32
    %c0_i32_0 = arith.constant 0 : i32
    %c0_i32_1 = arith.constant 0 : i32
    return %c0_i32, %c0_i32_0 : i32, i32
  }
  func.func @transform_2(%arg0: i32) -> (i32, i32) {
    %c0_i32 = arith.constant 0 : i32
    %c0_i32_0 = arith.constant 0 : i32
    %c0_i32_1 = arith.constant 0 : i32
    return %c0_i32, %c0_i32_0 : i32, i32
  }
  func.func @transform_3(%arg0: i32) -> (i32, i32) {
    %c0_i32 = arith.constant 0 : i32
    %c0_i32_0 = arith.constant 0 : i32
    %c0_i32_1 = arith.constant 0 : i32
    return %c0_i32, %c0_i32_0 : i32, i32
  }
  func.func @transform_4(%arg0: i32) -> (i32, i32, i32) {
    %c0_i32 = arith.constant 0 : i32
    %c0_i32_0 = arith.constant 0 : i32
    %c0_i32_1 = arith.constant 0 : i32
    %c0_i32_2 = arith.constant 0 : i32
    return %c0_i32, %c0_i32_0, %c0_i32_1 : i32, i32, i32
  }
  func.func @transform_5(%arg0: i32) -> (i32, i32) {
    %c0_i32 = arith.constant 0 : i32
    %c0_i32_0 = arith.constant 0 : i32
    %c0_i32_1 = arith.constant 0 : i32
    return %c0_i32, %c0_i32_0 : i32, i32
  }
  func.func @transform_6(%arg0: i32) -> (i32, i32) {
    %c0_i32 = arith.constant 0 : i32
    %c0_i32_0 = arith.constant 0 : i32
    %c0_i32_1 = arith.constant 0 : i32
    return %c0_i32, %c0_i32_0 : i32, i32
  }
  func.func @transform_7(%arg0: i32) -> (i32, i32) {
    %c0_i32 = arith.constant 0 : i32
    %c0_i32_0 = arith.constant 0 : i32
    %c0_i32_1 = arith.constant 0 : i32
    return %c0_i32, %c0_i32_0 : i32, i32
  }
  func.func @transform_8(%arg0: i32) -> (i32, i32, i32) {
    %c0_i32 = arith.constant 0 : i32
    %c0_i32_0 = arith.constant 0 : i32
    %c0_i32_1 = arith.constant 0 : i32
    %c0_i32_2 = arith.constant 0 : i32
    return %c0_i32, %c0_i32_0, %c0_i32_1 : i32, i32, i32
  }
  func.func @transform_9(%arg0: i32) -> (i32, i32) {
    %c0_i32 = arith.constant 0 : i32
    %c0_i32_0 = arith.constant 0 : i32
    %c0_i32_1 = arith.constant 0 : i32
    return %c0_i32, %c0_i32_0 : i32, i32
  }
  func.func @transform_10(%arg0: i32) -> (i32, i32) {
    %c0_i32 = arith.constant 0 : i32
    %c0_i32_0 = arith.constant 0 : i32
    %c0_i32_1 = arith.constant 0 : i32
    return %c0_i32, %c0_i32_0 : i32, i32
  }
  func.func @transform_11(%arg0: i32) -> (i32, i32) {
    %c0_i32 = arith.constant 0 : i32
    %c0_i32_0 = arith.constant 0 : i32
    %c0_i32_1 = arith.constant 0 : i32
    return %c0_i32, %c0_i32_0 : i32, i32
  }
  func.func @transform_12(%arg0: i32) -> (i32, i32, i32) {
    %c0_i32 = arith.constant 0 : i32
    %c0_i32_0 = arith.constant 0 : i32
    %c0_i32_1 = arith.constant 0 : i32
    %c0_i32_2 = arith.constant 0 : i32
    return %c0_i32, %c0_i32_0, %c0_i32_1 : i32, i32, i32
  }
  func.func @transform_13(%arg0: i32) -> (i32, i32) {
    %c0_i32 = arith.constant 0 : i32
    %c0_i32_0 = arith.constant 0 : i32
    %c0_i32_1 = arith.constant 0 : i32
    return %c0_i32, %c0_i32_0 : i32, i32
  }
  func.func @transform_14(%arg0: i32) -> (i32, i32) {
    %c0_i32 = arith.constant 0 : i32
    %c0_i32_0 = arith.constant 0 : i32
    %c0_i32_1 = arith.constant 0 : i32
    return %c0_i32, %c0_i32_0 : i32, i32
  }
  func.func @transform_15(%arg0: i32) -> (i32, i32) {
    %c0_i32 = arith.constant 0 : i32
    %c0_i32_0 = arith.constant 0 : i32
    %c0_i32_1 = arith.constant 0 : i32
    return %c0_i32, %c0_i32_0 : i32, i32
  }
  func.func @transform_16(%arg0: i32) -> (i32, i32, i32) {
    %c0_i32 = arith.constant 0 : i32
    %c0_i32_0 = arith.constant 0 : i32
    %c0_i32_1 = arith.constant 0 : i32
    %c0_i32_2 = arith.constant 0 : i32
    return %c0_i32, %c0_i32_0, %c0_i32_1 : i32, i32, i32
  }
  func.func @transform_17(%arg0: i32) -> (i32, i32) {
    %c0_i32 = arith.constant 0 : i32
    %c0_i32_0 = arith.constant 0 : i32
    %c0_i32_1 = arith.constant 0 : i32
    return %c0_i32, %c0_i32_0 : i32, i32
  }
  func.func @transform_18(%arg0: i32) -> (i32, i32) {
    %c0_i32 = arith.constant 0 : i32
    %c0_i32_0 = arith.constant 0 : i32
    %c0_i32_1 = arith.constant 0 : i32
    return %c0_i32, %c0_i32_0 : i32, i32
  }
  func.func @transform_19(%arg0: i32) -> (i32, i32) {
    %c0_i32 = arith.constant 0 : i32
    %c0_i32_0 = arith.constant 0 : i32
    %c0_i32_1 = arith.constant 0 : i32
    return %c0_i32, %c0_i32_0 : i32, i32
  }
}

module attributes {stable_mosaic.version = 11 : i64} {
  func.func @_stage2_kernel(%arg0: i32, %arg1: memref<128x16xf32, #tpu.memory_space<vmem>>, %arg2: memref<128x16xf32, #tpu.memory_space<vmem>>, %arg3: memref<16x16xf32, #tpu.memory_space<vmem>>, %arg4: memref<1x16xf32, #tpu.memory_space<vmem>>, %arg5: memref<16x128xf32, #tpu.memory_space<vmem>>, %arg6: memref<1x128xf32, #tpu.memory_space<vmem>>, %arg7: memref<1x128xf32, #tpu.memory_space<vmem>>, %arg8: memref<16x16xf32, #tpu.memory_space<vmem>>, %arg9: memref<1x16xf32, #tpu.memory_space<vmem>>, %arg10: memref<16x16xf32, #tpu.memory_space<vmem>>, %arg11: memref<1x16xf32, #tpu.memory_space<vmem>>, %arg12: memref<8x1xf32, #tpu.memory_space<vmem>>, %arg13: memref<8x1xf32, #tpu.memory_space<vmem>>, %arg14: memref<16x2xf32, #tpu.memory_space<vmem>>, %arg15: memref<1x2xf32, #tpu.memory_space<vmem>>, %arg16: memref<16x2xf32, #tpu.memory_space<vmem>>, %arg17: memref<1x2xf32, #tpu.memory_space<vmem>>, %arg18: memref<16x16xf32, #tpu.memory_space<vmem>>, %arg19: memref<1x16xf32, #tpu.memory_space<vmem>>, %arg20: memref<2x16xf32, #tpu.memory_space<vmem>>, %arg21: memref<1x16xf32, #tpu.memory_space<vmem>>, %arg22: memref<16x16xf32, #tpu.memory_space<vmem>>, %arg23: memref<1x16xf32, #tpu.memory_space<vmem>>, %arg24: memref<1x16xf32, #tpu.memory_space<vmem>>, %arg25: memref<16x16xf32, #tpu.memory_space<vmem>>, %arg26: memref<16x16xf32, #tpu.memory_space<vmem>>, %arg27: memref<1x16xf32, #tpu.memory_space<vmem>>, %arg28: memref<1x16xf32, #tpu.memory_space<vmem>>, %arg29: memref<8x16xf32, #tpu.memory_space<vmem>>, %arg30: memref<2x8x1xf32, #tpu.memory_space<vmem>>, %arg31: memref<2x8x16xf32, #tpu.memory_space<vmem>>) attributes {dimension_semantics = [#tpu.dimension_semantics<arbitrary>], iteration_bounds = array<i64: 1>, scalar_prefetch = 0 : i64, scratch_operands = 1 : i64, tpu.core_type = #tpu.core_type<tc>, window_params = [{pipeline_mode = #tpu.pipeline_mode<synchronous>, transform_indices = @transform_0, window_bounds = array<i64: 128, 16>}, {pipeline_mode = #tpu.pipeline_mode<synchronous>, transform_indices = @transform_1, window_bounds = array<i64: 128, 16>}, {pipeline_mode = #tpu.pipeline_mode<synchronous>, transform_indices = @transform_2, window_bounds = array<i64: 16, 16>}, {pipeline_mode = #tpu.pipeline_mode<synchronous>, transform_indices = @transform_3, window_bounds = array<i64: 1, 16>}, {pipeline_mode = #tpu.pipeline_mode<synchronous>, transform_indices = @transform_4, window_bounds = array<i64: 16, 128>}, {pipeline_mode = #tpu.pipeline_mode<synchronous>, transform_indices = @transform_5, window_bounds = array<i64: 1, 128>}, {pipeline_mode = #tpu.pipeline_mode<synchronous>, transform_indices = @transform_6, window_bounds = array<i64: 1, 128>}, {pipeline_mode = #tpu.pipeline_mode<synchronous>, transform_indices = @transform_7, window_bounds = array<i64: 16, 16>}, {pipeline_mode = #tpu.pipeline_mode<synchronous>, transform_indices = @transform_8, window_bounds = array<i64: 1, 16>}, {pipeline_mode = #tpu.pipeline_mode<synchronous>, transform_indices = @transform_9, window_bounds = array<i64: 16, 16>}, {pipeline_mode = #tpu.pipeline_mode<synchronous>, transform_indices = @transform_10, window_bounds = array<i64: 1, 16>}, {pipeline_mode = #tpu.pipeline_mode<synchronous>, transform_indices = @transform_11, window_bounds = array<i64: 8, 1>}, {pipeline_mode = #tpu.pipeline_mode<synchronous>, transform_indices = @transform_12, window_bounds = array<i64: 8, 1>}, {pipeline_mode = #tpu.pipeline_mode<synchronous>, transform_indices = @transform_13, window_bounds = array<i64: 16, 2>}, {pipeline_mode = #tpu.pipeline_mode<synchronous>, transform_indices = @transform_14, window_bounds = array<i64: 1, 2>}, {pipeline_mode = #tpu.pipeline_mode<synchronous>, transform_indices = @transform_15, window_bounds = array<i64: 16, 2>}, {pipeline_mode = #tpu.pipeline_mode<synchronous>, transform_indices = @transform_16, window_bounds = array<i64: 1, 2>}, {pipeline_mode = #tpu.pipeline_mode<synchronous>, transform_indices = @transform_17, window_bounds = array<i64: 16, 16>}, {pipeline_mode = #tpu.pipeline_mode<synchronous>, transform_indices = @transform_18, window_bounds = array<i64: 1, 16>}, {pipeline_mode = #tpu.pipeline_mode<synchronous>, transform_indices = @transform_19, window_bounds = array<i64: 2, 16>}, {pipeline_mode = #tpu.pipeline_mode<synchronous>, transform_indices = @transform_20, window_bounds = array<i64: 1, 16>}, {pipeline_mode = #tpu.pipeline_mode<synchronous>, transform_indices = @transform_21, window_bounds = array<i64: 16, 16>}, {pipeline_mode = #tpu.pipeline_mode<synchronous>, transform_indices = @transform_22, window_bounds = array<i64: 1, 16>}, {pipeline_mode = #tpu.pipeline_mode<synchronous>, transform_indices = @transform_23, window_bounds = array<i64: 1, 16>}, {pipeline_mode = #tpu.pipeline_mode<synchronous>, transform_indices = @transform_24, window_bounds = array<i64: 16, 16>}, {pipeline_mode = #tpu.pipeline_mode<synchronous>, transform_indices = @transform_25, window_bounds = array<i64: 16, 16>}, {pipeline_mode = #tpu.pipeline_mode<synchronous>, transform_indices = @transform_26, window_bounds = array<i64: 1, 16>}, {pipeline_mode = #tpu.pipeline_mode<synchronous>, transform_indices = @transform_27, window_bounds = array<i64: 1, 16>}, {pipeline_mode = #tpu.pipeline_mode<synchronous>, transform_indices = @transform_28, window_bounds = array<i64: 8, 16>}, {pipeline_mode = #tpu.pipeline_mode<synchronous>, transform_indices = @transform_29, window_bounds = array<i64: 2, 8, 1>}]} {
    %c0 = arith.constant 0 : index
    %c0_0 = arith.constant 0 : index
    %0 = vector.load %arg1[%c0, %c0_0] : memref<128x16xf32, #tpu.memory_space<vmem>>, vector<128x16xf32>
    %c0_1 = arith.constant 0 : index
    %c0_2 = arith.constant 0 : index
    %1 = vector.load %arg2[%c0_1, %c0_2] : memref<128x16xf32, #tpu.memory_space<vmem>>, vector<128x16xf32>
    %c0_3 = arith.constant 0 : index
    %c0_4 = arith.constant 0 : index
    %2 = vector.load %arg3[%c0_3, %c0_4] : memref<16x16xf32, #tpu.memory_space<vmem>>, vector<16x16xf32>
    %cst = arith.constant dense<0.000000e+00> : vector<128x16xf32>
    %3 = tpu.matmul %1, %2, %cst {dimension_numbers = #tpu.dot_dimension_numbers<[1], [0], [0], [1], [0, 0, 1, 1], [], []>} : vector<128x16xf32>, vector<16x16xf32>, vector<128x16xf32> -> vector<128x16xf32>
    %c0_5 = arith.constant 0 : index
    %c0_6 = arith.constant 0 : index
    %4 = vector.load %arg4[%c0_5, %c0_6] : memref<1x16xf32, #tpu.memory_space<vmem>>, vector<1x16xf32>
    %5 = vector.broadcast %4 : vector<1x16xf32> to vector<128x16xf32>
    %6 = arith.addf %3, %5 : vector<128x16xf32>
    %7 = arith.mulf %6, %0 : vector<128x16xf32>
    %c0_7 = arith.constant 0 : index
    %c0_8 = arith.constant 0 : index
    %8 = vector.load %arg5[%c0_7, %c0_8] : memref<16x128xf32, #tpu.memory_space<vmem>>, vector<16x128xf32>
    %cst_9 = arith.constant dense<0.000000e+00> : vector<128x128xf32>
    %9 = tpu.matmul %7, %8, %cst_9 {dimension_numbers = #tpu.dot_dimension_numbers<[1], [0], [0], [1], [0, 0, 1, 1], [], []>} : vector<128x16xf32>, vector<16x128xf32>, vector<128x128xf32> -> vector<128x128xf32>
    %c0_10 = arith.constant 0 : index
    %c0_11 = arith.constant 0 : index
    %10 = vector.load %arg6[%c0_10, %c0_11] : memref<1x128xf32, #tpu.memory_space<vmem>>, vector<1x128xf32>
    %11 = vector.broadcast %10 : vector<1x128xf32> to vector<128x128xf32>
    %12 = arith.mulf %9, %11 : vector<128x128xf32>
    %c0_12 = arith.constant 0 : index
    %c0_13 = arith.constant 0 : index
    %13 = vector.load %arg7[%c0_12, %c0_13] : memref<1x128xf32, #tpu.memory_space<vmem>>, vector<1x128xf32>
    %14 = vector.broadcast %13 : vector<1x128xf32> to vector<128x128xf32>
    %15 = arith.addf %12, %14 : vector<128x128xf32>
    %cst_14 = arith.constant 0.000000e+00 : f32
    %16 = vector.broadcast %cst_14 : f32 to vector<128x128xf32>
    %17 = arith.maximumf %15, %16 : vector<128x128xf32>
    %18 = vector.shape_cast %17 : vector<128x128xf32> to vector<2x64x128xf32>
    %cst_15 = arith.constant dense<0.000000e+00> : vector<2x128xf32>
    %19 = vector.multi_reduction <add>, %18, %cst_15 [1] : vector<2x64x128xf32> to vector<2x128xf32>
    %cst_16 = arith.constant 6.400000e+01 : f32
    %20 = vector.broadcast %cst_16 : f32 to vector<2x128xf32>
    %21 = arith.divf %19, %20 : vector<2x128xf32>
    %22 = vector.extract_strided_slice %21 {offsets = [0, 0], sizes = [2, 16], strides = [1, 1]} : vector<2x128xf32> to vector<2x16xf32>
    %23 = vector.shape_cast %22 : vector<2x16xf32> to vector<2x1x16xf32>
    %c0_17 = arith.constant 0 : index
    %c0_18 = arith.constant 0 : index
    %c0_19 = arith.constant 0 : index
    %24 = vector.load %arg31[%c0_17, %c0_18, %c0_19] : memref<2x8x16xf32, #tpu.memory_space<vmem>>, vector<2x1x16xf32>
    tpu.vector_store %arg31[%c0_17, %c0_18, %c0_19], %23 {strides = array<i32>} : memref<2x8x16xf32, #tpu.memory_space<vmem>>, vector<2x1x16xf32>,
    %25 = vector.extract_strided_slice %21 {offsets = [0, 16], sizes = [2, 16], strides = [1, 1]} : vector<2x128xf32> to vector<2x16xf32>
    %26 = vector.shape_cast %25 : vector<2x16xf32> to vector<2x1x16xf32>
    %c0_20 = arith.constant 0 : index
    %c1 = arith.constant 1 : index
    %c0_21 = arith.constant 0 : index
    %27 = vector.load %arg31[%c0_20, %c1, %c0_21] : memref<2x8x16xf32, #tpu.memory_space<vmem>>, vector<2x1x16xf32>
    tpu.vector_store %arg31[%c0_20, %c1, %c0_21], %26 {strides = array<i32>} : memref<2x8x16xf32, #tpu.memory_space<vmem>>, vector<2x1x16xf32>,
    %28 = vector.extract_strided_slice %21 {offsets = [0, 32], sizes = [2, 16], strides = [1, 1]} : vector<2x128xf32> to vector<2x16xf32>
    %29 = vector.shape_cast %28 : vector<2x16xf32> to vector<2x1x16xf32>
    %c0_22 = arith.constant 0 : index
    %c2 = arith.constant 2 : index
    %c0_23 = arith.constant 0 : index
    %30 = vector.load %arg31[%c0_22, %c2, %c0_23] : memref<2x8x16xf32, #tpu.memory_space<vmem>>, vector<2x1x16xf32>
    tpu.vector_store %arg31[%c0_22, %c2, %c0_23], %29 {strides = array<i32>} : memref<2x8x16xf32, #tpu.memory_space<vmem>>, vector<2x1x16xf32>,
    %31 = vector.extract_strided_slice %21 {offsets = [0, 48], sizes = [2, 16], strides = [1, 1]} : vector<2x128xf32> to vector<2x16xf32>
    %32 = vector.shape_cast %31 : vector<2x16xf32> to vector<2x1x16xf32>
    %c0_24 = arith.constant 0 : index
    %c3 = arith.constant 3 : index
    %c0_25 = arith.constant 0 : index
    %33 = vector.load %arg31[%c0_24, %c3, %c0_25] : memref<2x8x16xf32, #tpu.memory_space<vmem>>, vector<2x1x16xf32>
    tpu.vector_store %arg31[%c0_24, %c3, %c0_25], %32 {strides = array<i32>} : memref<2x8x16xf32, #tpu.memory_space<vmem>>, vector<2x1x16xf32>,
    %34 = vector.extract_strided_slice %21 {offsets = [0, 64], sizes = [2, 16], strides = [1, 1]} : vector<2x128xf32> to vector<2x16xf32>
    %35 = vector.shape_cast %34 : vector<2x16xf32> to vector<2x1x16xf32>
    %c0_26 = arith.constant 0 : index
    %c4 = arith.constant 4 : index
    %c0_27 = arith.constant 0 : index
    %36 = vector.load %arg31[%c0_26, %c4, %c0_27] : memref<2x8x16xf32, #tpu.memory_space<vmem>>, vector<2x1x16xf32>
    tpu.vector_store %arg31[%c0_26, %c4, %c0_27], %35 {strides = array<i32>} : memref<2x8x16xf32, #tpu.memory_space<vmem>>, vector<2x1x16xf32>,
    %37 = vector.extract_strided_slice %21 {offsets = [0, 80], sizes = [2, 16], strides = [1, 1]} : vector<2x128xf32> to vector<2x16xf32>
    %38 = vector.shape_cast %37 : vector<2x16xf32> to vector<2x1x16xf32>
    %c0_28 = arith.constant 0 : index
    %c5 = arith.constant 5 : index
    %c0_29 = arith.constant 0 : index
    %39 = vector.load %arg31[%c0_28, %c5, %c0_29] : memref<2x8x16xf32, #tpu.memory_space<vmem>>, vector<2x1x16xf32>
    tpu.vector_store %arg31[%c0_28, %c5, %c0_29], %38 {strides = array<i32>} : memref<2x8x16xf32, #tpu.memory_space<vmem>>, vector<2x1x16xf32>,
    %40 = vector.extract_strided_slice %21 {offsets = [0, 96], sizes = [2, 16], strides = [1, 1]} : vector<2x128xf32> to vector<2x16xf32>
    %41 = vector.shape_cast %40 : vector<2x16xf32> to vector<2x1x16xf32>
    %c0_30 = arith.constant 0 : index
    %c6 = arith.constant 6 : index
    %c0_31 = arith.constant 0 : index
    %42 = vector.load %arg31[%c0_30, %c6, %c0_31] : memref<2x8x16xf32, #tpu.memory_space<vmem>>, vector<2x1x16xf32>
    tpu.vector_store %arg31[%c0_30, %c6, %c0_31], %41 {strides = array<i32>} : memref<2x8x16xf32, #tpu.memory_space<vmem>>, vector<2x1x16xf32>,
    %43 = vector.extract_strided_slice %21 {offsets = [0, 112], sizes = [2, 16], strides = [1, 1]} : vector<2x128xf32> to vector<2x16xf32>
    %44 = vector.shape_cast %43 : vector<2x16xf32> to vector<2x1x16xf32>
    %c0_32 = arith.constant 0 : index
    %c7 = arith.constant 7 : index
    %c0_33 = arith.constant 0 : index
    %45 = vector.load %arg31[%c0_32, %c7, %c0_33] : memref<2x8x16xf32, #tpu.memory_space<vmem>>, vector<2x1x16xf32>
    tpu.vector_store %arg31[%c0_32, %c7, %c0_33], %44 {strides = array<i32>} : memref<2x8x16xf32, #tpu.memory_space<vmem>>, vector<2x1x16xf32>,
    %46 = tpu.iota {dimensions = array<i32: 0>} : vector<8x8xi32>
    %47 = tpu.iota {dimensions = array<i32: 1>} : vector<8x8xi32>
    %48 = arith.cmpi eq, %46, %47 : vector<8x8xi32>
    %c0_34 = arith.constant 0 : index
    %c0_35 = arith.constant 0 : index
    %c0_36 = arith.constant 0 : index
    %49 = vector.load %arg31[%c0_34, %c0_35, %c0_36] : memref<2x8x16xf32, #tpu.memory_space<vmem>>, vector<1x8x16xf32>
    %50 = vector.shape_cast %49 : vector<1x8x16xf32> to vector<8x16xf32>
    %51 = tpu.transpose %50, [1, 0] : vector<8x16xf32> -> vector<16x8xf32>
    %cst_37 = arith.constant dense<0.000000e+00> : vector<8x8xf32>
    %52 = tpu.matmul %50, %51, %cst_37 {dimension_numbers = #tpu.dot_dimension_numbers<[1], [0], [0], [1], [0, 0, 1, 1], [], []>} : vector<8x16xf32>, vector<16x8xf32>, vector<8x8xf32> -> vector<8x8xf32>
    %cst_38 = arith.constant -1.000000e+30 : f32
    %53 = vector.broadcast %cst_38 : f32 to vector<8x1xf32>
    %54 = vector.extract_strided_slice %52 {offsets = [0, 0], sizes = [8, 1], strides = [1, 1]} : vector<8x8xf32> to vector<8x1xf32>
    %55 = vector.broadcast %54 : vector<8x1xf32> to vector<8x8xf32>
    %56 = arith.cmpf oge, %52, %55 : vector<8x8xf32>
    %cst_39 = arith.constant 1.000000e+00 : f32
    %cst_40 = arith.constant 0.000000e+00 : f32
    %57 = vector.broadcast %cst_39 : f32 to vector<8x8xf32>
    %58 = vector.broadcast %cst_40 : f32 to vector<8x8xf32>
    %59 = arith.select %56, %57, %58 : vector<8x8xi1>, vector<8x8xf32>
    %cst_41 = arith.constant dense<0.000000e+00> : vector<8xf32>
    %60 = vector.multi_reduction <add>, %59, %cst_41 [1] : vector<8x8xf32> to vector<8xf32>
    %61 = vector.shape_cast %60 : vector<8xf32> to vector<8x1xf32>
    %cst_42 = arith.constant 4.000000e+00 : f32
    %62 = vector.broadcast %cst_42 : f32 to vector<8x1xf32>
    %63 = arith.cmpf oge, %61, %62 : vector<8x1xf32>
    %cst_43 = arith.constant -1.000000e+30 : f32
    %64 = vector.broadcast %cst_43 : f32 to vector<8x1xf32>
    %65 = arith.select %63, %54, %64 : vector<8x1xi1>, vector<8x1xf32>
    %66 = arith.maximumf %53, %65 : vector<8x1xf32>
    %67 = vector.extract_strided_slice %52 {offsets = [0, 1], sizes = [8, 1], strides = [1, 1]} : vector<8x8xf32> to vector<8x1xf32>
    %68 = vector.broadcast %67 : vector<8x1xf32> to vector<8x8xf32>
    %69 = arith.cmpf oge, %52, %68 : vector<8x8xf32>
    %cst_44 = arith.constant 1.000000e+00 : f32
    %cst_45 = arith.constant 0.000000e+00 : f32
    %70 = vector.broadcast %cst_44 : f32 to vector<8x8xf32>
    %71 = vector.broadcast %cst_45 : f32 to vector<8x8xf32>
    %72 = arith.select %69, %70, %71 : vector<8x8xi1>, vector<8x8xf32>
    %cst_46 = arith.constant dense<0.000000e+00> : vector<8xf32>
    %73 = vector.multi_reduction <add>, %72, %cst_46 [1] : vector<8x8xf32> to vector<8xf32>
    %74 = vector.shape_cast %73 : vector<8xf32> to vector<8x1xf32>
    %cst_47 = arith.constant 4.000000e+00 : f32
    %75 = vector.broadcast %cst_47 : f32 to vector<8x1xf32>
    %76 = arith.cmpf oge, %74, %75 : vector<8x1xf32>
    %cst_48 = arith.constant -1.000000e+30 : f32
    %77 = vector.broadcast %cst_48 : f32 to vector<8x1xf32>
    %78 = arith.select %76, %67, %77 : vector<8x1xi1>, vector<8x1xf32>
    %79 = arith.maximumf %66, %78 : vector<8x1xf32>
    %80 = vector.extract_strided_slice %52 {offsets = [0, 2], sizes = [8, 1], strides = [1, 1]} : vector<8x8xf32> to vector<8x1xf32>
    %81 = vector.broadcast %80 : vector<8x1xf32> to vector<8x8xf32>
    %82 = arith.cmpf oge, %52, %81 : vector<8x8xf32>
    %cst_49 = arith.constant 1.000000e+00 : f32
    %cst_50 = arith.constant 0.000000e+00 : f32
    %83 = vector.broadcast %cst_49 : f32 to vector<8x8xf32>
    %84 = vector.broadcast %cst_50 : f32 to vector<8x8xf32>
    %85 = arith.select %82, %83, %84 : vector<8x8xi1>, vector<8x8xf32>
    %cst_51 = arith.constant dense<0.000000e+00> : vector<8xf32>
    %86 = vector.multi_reduction <add>, %85, %cst_51 [1] : vector<8x8xf32> to vector<8xf32>
    %87 = vector.shape_cast %86 : vector<8xf32> to vector<8x1xf32>
    %cst_52 = arith.constant 4.000000e+00 : f32
    %88 = vector.broadcast %cst_52 : f32 to vector<8x1xf32>
    %89 = arith.cmpf oge, %87, %88 : vector<8x1xf32>
    %cst_53 = arith.constant -1.000000e+30 : f32
    %90 = vector.broadcast %cst_53 : f32 to vector<8x1xf32>
    %91 = arith.select %89, %80, %90 : vector<8x1xi1>, vector<8x1xf32>
    %92 = arith.maximumf %79, %91 : vector<8x1xf32>
    %93 = vector.extract_strided_slice %52 {offsets = [0, 3], sizes = [8, 1], strides = [1, 1]} : vector<8x8xf32> to vector<8x1xf32>
    %94 = vector.broadcast %93 : vector<8x1xf32> to vector<8x8xf32>
    %95 = arith.cmpf oge, %52, %94 : vector<8x8xf32>
    %cst_54 = arith.constant 1.000000e+00 : f32
    %cst_55 = arith.constant 0.000000e+00 : f32
    %96 = vector.broadcast %cst_54 : f32 to vector<8x8xf32>
    %97 = vector.broadcast %cst_55 : f32 to vector<8x8xf32>
    %98 = arith.select %95, %96, %97 : vector<8x8xi1>, vector<8x8xf32>
    %cst_56 = arith.constant dense<0.000000e+00> : vector<8xf32>
    %99 = vector.multi_reduction <add>, %98, %cst_56 [1] : vector<8x8xf32> to vector<8xf32>
    %100 = vector.shape_cast %99 : vector<8xf32> to vector<8x1xf32>
    %cst_57 = arith.constant 4.000000e+00 : f32
    %101 = vector.broadcast %cst_57 : f32 to vector<8x1xf32>
    %102 = arith.cmpf oge, %100, %101 : vector<8x1xf32>
    %cst_58 = arith.constant -1.000000e+30 : f32
    %103 = vector.broadcast %cst_58 : f32 to vector<8x1xf32>
    %104 = arith.select %102, %93, %103 : vector<8x1xi1>, vector<8x1xf32>
    %105 = arith.maximumf %92, %104 : vector<8x1xf32>
    %106 = vector.extract_strided_slice %52 {offsets = [0, 4], sizes = [8, 1], strides = [1, 1]} : vector<8x8xf32> to vector<8x1xf32>
    %107 = vector.broadcast %106 : vector<8x1xf32> to vector<8x8xf32>
    %108 = arith.cmpf oge, %52, %107 : vector<8x8xf32>
    %cst_59 = arith.constant 1.000000e+00 : f32
    %cst_60 = arith.constant 0.000000e+00 : f32
    %109 = vector.broadcast %cst_59 : f32 to vector<8x8xf32>
    %110 = vector.broadcast %cst_60 : f32 to vector<8x8xf32>
    %111 = arith.select %108, %109, %110 : vector<8x8xi1>, vector<8x8xf32>
    %cst_61 = arith.constant dense<0.000000e+00> : vector<8xf32>
    %112 = vector.multi_reduction <add>, %111, %cst_61 [1] : vector<8x8xf32> to vector<8xf32>
    %113 = vector.shape_cast %112 : vector<8xf32> to vector<8x1xf32>
    %cst_62 = arith.constant 4.000000e+00 : f32
    %114 = vector.broadcast %cst_62 : f32 to vector<8x1xf32>
    %115 = arith.cmpf oge, %113, %114 : vector<8x1xf32>
    %cst_63 = arith.constant -1.000000e+30 : f32
    %116 = vector.broadcast %cst_63 : f32 to vector<8x1xf32>
    %117 = arith.select %115, %106, %116 : vector<8x1xi1>, vector<8x1xf32>
    %118 = arith.maximumf %105, %117 : vector<8x1xf32>
    %119 = vector.extract_strided_slice %52 {offsets = [0, 5], sizes = [8, 1], strides = [1, 1]} : vector<8x8xf32> to vector<8x1xf32>
    %120 = vector.broadcast %119 : vector<8x1xf32> to vector<8x8xf32>
    %121 = arith.cmpf oge, %52, %120 : vector<8x8xf32>
    %cst_64 = arith.constant 1.000000e+00 : f32
    %cst_65 = arith.constant 0.000000e+00 : f32
    %122 = vector.broadcast %cst_64 : f32 to vector<8x8xf32>
    %123 = vector.broadcast %cst_65 : f32 to vector<8x8xf32>
    %124 = arith.select %121, %122, %123 : vector<8x8xi1>, vector<8x8xf32>
    %cst_66 = arith.constant dense<0.000000e+00> : vector<8xf32>
    %125 = vector.multi_reduction <add>, %124, %cst_66 [1] : vector<8x8xf32> to vector<8xf32>
    %126 = vector.shape_cast %125 : vector<8xf32> to vector<8x1xf32>
    %cst_67 = arith.constant 4.000000e+00 : f32
    %127 = vector.broadcast %cst_67 : f32 to vector<8x1xf32>
    %128 = arith.cmpf oge, %126, %127 : vector<8x1xf32>
    %cst_68 = arith.constant -1.000000e+30 : f32
    %129 = vector.broadcast %cst_68 : f32 to vector<8x1xf32>
    %130 = arith.select %128, %119, %129 : vector<8x1xi1>, vector<8x1xf32>
    %131 = arith.maximumf %118, %130 : vector<8x1xf32>
    %132 = vector.extract_strided_slice %52 {offsets = [0, 6], sizes = [8, 1], strides = [1, 1]} : vector<8x8xf32> to vector<8x1xf32>
    %133 = vector.broadcast %132 : vector<8x1xf32> to vector<8x8xf32>
    %134 = arith.cmpf oge, %52, %133 : vector<8x8xf32>
    %cst_69 = arith.constant 1.000000e+00 : f32
    %cst_70 = arith.constant 0.000000e+00 : f32
    %135 = vector.broadcast %cst_69 : f32 to vector<8x8xf32>
    %136 = vector.broadcast %cst_70 : f32 to vector<8x8xf32>
    %137 = arith.select %134, %135, %136 : vector<8x8xi1>, vector<8x8xf32>
    %cst_71 = arith.constant dense<0.000000e+00> : vector<8xf32>
    %138 = vector.multi_reduction <add>, %137, %cst_71 [1] : vector<8x8xf32> to vector<8xf32>
    %139 = vector.shape_cast %138 : vector<8xf32> to vector<8x1xf32>
    %cst_72 = arith.constant 4.000000e+00 : f32
    %140 = vector.broadcast %cst_72 : f32 to vector<8x1xf32>
    %141 = arith.cmpf oge, %139, %140 : vector<8x1xf32>
    %cst_73 = arith.constant -1.000000e+30 : f32
    %142 = vector.broadcast %cst_73 : f32 to vector<8x1xf32>
    %143 = arith.select %141, %132, %142 : vector<8x1xi1>, vector<8x1xf32>
    %144 = arith.maximumf %131, %143 : vector<8x1xf32>
    %145 = vector.extract_strided_slice %52 {offsets = [0, 7], sizes = [8, 1], strides = [1, 1]} : vector<8x8xf32> to vector<8x1xf32>
    %146 = vector.broadcast %145 : vector<8x1xf32> to vector<8x8xf32>
    %147 = arith.cmpf oge, %52, %146 : vector<8x8xf32>
    %cst_74 = arith.constant 1.000000e+00 : f32
    %cst_75 = arith.constant 0.000000e+00 : f32
    %148 = vector.broadcast %cst_74 : f32 to vector<8x8xf32>
    %149 = vector.broadcast %cst_75 : f32 to vector<8x8xf32>
    %150 = arith.select %147, %148, %149 : vector<8x8xi1>, vector<8x8xf32>
    %cst_76 = arith.constant dense<0.000000e+00> : vector<8xf32>
    %151 = vector.multi_reduction <add>, %150, %cst_76 [1] : vector<8x8xf32> to vector<8xf32>
    %152 = vector.shape_cast %151 : vector<8xf32> to vector<8x1xf32>
    %cst_77 = arith.constant 4.000000e+00 : f32
    %153 = vector.broadcast %cst_77 : f32 to vector<8x1xf32>
    %154 = arith.cmpf oge, %152, %153 : vector<8x1xf32>
    %cst_78 = arith.constant -1.000000e+30 : f32
    %155 = vector.broadcast %cst_78 : f32 to vector<8x1xf32>
    %156 = arith.select %154, %145, %155 : vector<8x1xi1>, vector<8x1xf32>
    %157 = arith.maximumf %144, %156 : vector<8x1xf32>
    %158 = vector.broadcast %157 : vector<8x1xf32> to vector<8x8xf32>
    %159 = arith.cmpf oge, %52, %158 : vector<8x8xf32>
    %cst_79 = arith.constant 1.000000e+00 : f32
    %cst_80 = arith.constant 0.000000e+00 : f32
    %160 = vector.broadcast %cst_79 : f32 to vector<8x8xf32>
    %161 = vector.broadcast %cst_80 : f32 to vector<8x8xf32>
    %162 = arith.select %159, %160, %161 : vector<8x8xi1>, vector<8x8xf32>
    %cst_81 = arith.constant dense<0.000000e+00> : vector<8xf32>
    %163 = vector.multi_reduction <add>, %162, %cst_81 [1] : vector<8x8xf32> to vector<8xf32>
    %164 = vector.shape_cast %163 : vector<8xf32> to vector<8x1xf32>
    %165 = math.rsqrt %164 : vector<8x1xf32>
    %cst_82 = arith.constant 0.000000e+00 : f32
    %166 = vector.shape_cast %165 : vector<8x1xf32> to vector<8x1xf32>
    %167 = vector.broadcast %166 : vector<8x1xf32> to vector<8x8xf32>
    %168 = vector.broadcast %cst_82 : f32 to vector<8x8xf32>
    %169 = arith.select %48, %167, %168 : vector<8x8xi1>, vector<8x8xf32>
    %cst_83 = arith.constant dense<0.000000e+00> : vector<8x8xf32>
    %170 = tpu.matmul %169, %162, %cst_83 {dimension_numbers = #tpu.dot_dimension_numbers<[1], [0], [0], [1], [0, 0, 1, 1], [], []>} : vector<8x8xf32>, vector<8x8xf32>, vector<8x8xf32> -> vector<8x8xf32>
    %cst_84 = arith.constant dense<0.000000e+00> : vector<8x8xf32>
    %171 = tpu.matmul %170, %169, %cst_84 {dimension_numbers = #tpu.dot_dimension_numbers<[1], [0], [0], [1], [0, 0, 1, 1], [], []>} : vector<8x8xf32>, vector<8x8xf32>, vector<8x8xf32> -> vector<8x8xf32>
    %c0_85 = arith.constant 0 : index
    %c0_86 = arith.constant 0 : index
    %172 = vector.load %arg10[%c0_85, %c0_86] : memref<16x16xf32, #tpu.memory_space<vmem>>, vector<16x16xf32>
    %cst_87 = arith.constant dense<0.000000e+00> : vector<8x16xf32>
    %173 = tpu.matmul %50, %172, %cst_87 {dimension_numbers = #tpu.dot_dimension_numbers<[1], [0], [0], [1], [0, 0, 1, 1], [], []>} : vector<8x16xf32>, vector<16x16xf32>, vector<8x16xf32> -> vector<8x16xf32>
    %c0_88 = arith.constant 0 : index
    %c0_89 = arith.constant 0 : index
    %174 = vector.load %arg11[%c0_88, %c0_89] : memref<1x16xf32, #tpu.memory_space<vmem>>, vector<1x16xf32>
    %175 = vector.broadcast %174 : vector<1x16xf32> to vector<8x16xf32>
    %176 = arith.addf %173, %175 : vector<8x16xf32>
    %c0_90 = arith.constant 0 : index
    %c0_91 = arith.constant 0 : index
    %177 = vector.load %arg8[%c0_90, %c0_91] : memref<16x16xf32, #tpu.memory_space<vmem>>, vector<16x16xf32>
    %cst_92 = arith.constant dense<0.000000e+00> : vector<8x16xf32>
    %178 = tpu.matmul %50, %177, %cst_92 {dimension_numbers = #tpu.dot_dimension_numbers<[1], [0], [0], [1], [0, 0, 1, 1], [], []>} : vector<8x16xf32>, vector<16x16xf32>, vector<8x16xf32> -> vector<8x16xf32>
    %c0_93 = arith.constant 0 : index
    %c0_94 = arith.constant 0 : index
    %179 = vector.load %arg9[%c0_93, %c0_94] : memref<1x16xf32, #tpu.memory_space<vmem>>, vector<1x16xf32>
    %180 = vector.broadcast %179 : vector<1x16xf32> to vector<8x16xf32>
    %181 = arith.addf %178, %180 : vector<8x16xf32>
    %cst_95 = arith.constant dense<0.000000e+00> : vector<8x16xf32>
    %182 = tpu.matmul %171, %176, %cst_95 {dimension_numbers = #tpu.dot_dimension_numbers<[1], [0], [0], [1], [0, 0, 1, 1], [], []>} : vector<8x8xf32>, vector<8x16xf32>, vector<8x16xf32> -> vector<8x16xf32>
    %183 = arith.addf %182, %181 : vector<8x16xf32>
    %c0_96 = arith.constant 0 : index
    %c0_97 = arith.constant 0 : index
    %184 = vector.load %arg12[%c0_96, %c0_97] : memref<8x1xf32, #tpu.memory_space<vmem>>, vector<8x1xf32>
    %185 = vector.broadcast %184 : vector<8x1xf32> to vector<8x16xf32>
    %186 = arith.mulf %183, %185 : vector<8x16xf32>
    %c0_98 = arith.constant 0 : index
    %c0_99 = arith.constant 0 : index
    %187 = vector.load %arg13[%c0_98, %c0_99] : memref<8x1xf32, #tpu.memory_space<vmem>>, vector<8x1xf32>
    %188 = vector.broadcast %187 : vector<8x1xf32> to vector<8x16xf32>
    %189 = arith.addf %186, %188 : vector<8x16xf32>
    %190 = arith.addf %50, %189 : vector<8x16xf32>
    %cst_100 = arith.constant 0.000000e+00 : f32
    %191 = vector.broadcast %cst_100 : f32 to vector<8x16xf32>
    %192 = arith.maximumf %190, %191 : vector<8x16xf32>
    %c1_101 = arith.constant 1 : index
    %c0_102 = arith.constant 0 : index
    %c0_103 = arith.constant 0 : index
    %193 = vector.load %arg31[%c1_101, %c0_102, %c0_103] : memref<2x8x16xf32, #tpu.memory_space<vmem>>, vector<1x8x16xf32>
    %194 = vector.shape_cast %193 : vector<1x8x16xf32> to vector<8x16xf32>
    %195 = tpu.transpose %194, [1, 0] : vector<8x16xf32> -> vector<16x8xf32>
    %cst_104 = arith.constant dense<0.000000e+00> : vector<8x8xf32>
    %196 = tpu.matmul %194, %195, %cst_104 {dimension_numbers = #tpu.dot_dimension_numbers<[1], [0], [0], [1], [0, 0, 1, 1], [], []>} : vector<8x16xf32>, vector<16x8xf32>, vector<8x8xf32> -> vector<8x8xf32>
    %cst_105 = arith.constant -1.000000e+30 : f32
    %197 = vector.broadcast %cst_105 : f32 to vector<8x1xf32>
    %198 = vector.extract_strided_slice %196 {offsets = [0, 0], sizes = [8, 1], strides = [1, 1]} : vector<8x8xf32> to vector<8x1xf32>
    %199 = vector.broadcast %198 : vector<8x1xf32> to vector<8x8xf32>
    %200 = arith.cmpf oge, %196, %199 : vector<8x8xf32>
    %cst_106 = arith.constant 1.000000e+00 : f32
    %cst_107 = arith.constant 0.000000e+00 : f32
    %201 = vector.broadcast %cst_106 : f32 to vector<8x8xf32>
    %202 = vector.broadcast %cst_107 : f32 to vector<8x8xf32>
    %203 = arith.select %200, %201, %202 : vector<8x8xi1>, vector<8x8xf32>
    %cst_108 = arith.constant dense<0.000000e+00> : vector<8xf32>
    %204 = vector.multi_reduction <add>, %203, %cst_108 [1] : vector<8x8xf32> to vector<8xf32>
    %205 = vector.shape_cast %204 : vector<8xf32> to vector<8x1xf32>
    %cst_109 = arith.constant 4.000000e+00 : f32
    %206 = vector.broadcast %cst_109 : f32 to vector<8x1xf32>
    %207 = arith.cmpf oge, %205, %206 : vector<8x1xf32>
    %cst_110 = arith.constant -1.000000e+30 : f32
    %208 = vector.broadcast %cst_110 : f32 to vector<8x1xf32>
    %209 = arith.select %207, %198, %208 : vector<8x1xi1>, vector<8x1xf32>
    %210 = arith.maximumf %197, %209 : vector<8x1xf32>
    %211 = vector.extract_strided_slice %196 {offsets = [0, 1], sizes = [8, 1], strides = [1, 1]} : vector<8x8xf32> to vector<8x1xf32>
    %212 = vector.broadcast %211 : vector<8x1xf32> to vector<8x8xf32>
    %213 = arith.cmpf oge, %196, %212 : vector<8x8xf32>
    %cst_111 = arith.constant 1.000000e+00 : f32
    %cst_112 = arith.constant 0.000000e+00 : f32
    %214 = vector.broadcast %cst_111 : f32 to vector<8x8xf32>
    %215 = vector.broadcast %cst_112 : f32 to vector<8x8xf32>
    %216 = arith.select %213, %214, %215 : vector<8x8xi1>, vector<8x8xf32>
    %cst_113 = arith.constant dense<0.000000e+00> : vector<8xf32>
    %217 = vector.multi_reduction <add>, %216, %cst_113 [1] : vector<8x8xf32> to vector<8xf32>
    %218 = vector.shape_cast %217 : vector<8xf32> to vector<8x1xf32>
    %cst_114 = arith.constant 4.000000e+00 : f32
    %219 = vector.broadcast %cst_114 : f32 to vector<8x1xf32>
    %220 = arith.cmpf oge, %218, %219 : vector<8x1xf32>
    %cst_115 = arith.constant -1.000000e+30 : f32
    %221 = vector.broadcast %cst_115 : f32 to vector<8x1xf32>
    %222 = arith.select %220, %211, %221 : vector<8x1xi1>, vector<8x1xf32>
    %223 = arith.maximumf %210, %222 : vector<8x1xf32>
    %224 = vector.extract_strided_slice %196 {offsets = [0, 2], sizes = [8, 1], strides = [1, 1]} : vector<8x8xf32> to vector<8x1xf32>
    %225 = vector.broadcast %224 : vector<8x1xf32> to vector<8x8xf32>
    %226 = arith.cmpf oge, %196, %225 : vector<8x8xf32>
    %cst_116 = arith.constant 1.000000e+00 : f32
    %cst_117 = arith.constant 0.000000e+00 : f32
    %227 = vector.broadcast %cst_116 : f32 to vector<8x8xf32>
    %228 = vector.broadcast %cst_117 : f32 to vector<8x8xf32>
    %229 = arith.select %226, %227, %228 : vector<8x8xi1>, vector<8x8xf32>
    %cst_118 = arith.constant dense<0.000000e+00> : vector<8xf32>
    %230 = vector.multi_reduction <add>, %229, %cst_118 [1] : vector<8x8xf32> to vector<8xf32>
    %231 = vector.shape_cast %230 : vector<8xf32> to vector<8x1xf32>
    %cst_119 = arith.constant 4.000000e+00 : f32
    %232 = vector.broadcast %cst_119 : f32 to vector<8x1xf32>
    %233 = arith.cmpf oge, %231, %232 : vector<8x1xf32>
    %cst_120 = arith.constant -1.000000e+30 : f32
    %234 = vector.broadcast %cst_120 : f32 to vector<8x1xf32>
    %235 = arith.select %233, %224, %234 : vector<8x1xi1>, vector<8x1xf32>
    %236 = arith.maximumf %223, %235 : vector<8x1xf32>
    %237 = vector.extract_strided_slice %196 {offsets = [0, 3], sizes = [8, 1], strides = [1, 1]} : vector<8x8xf32> to vector<8x1xf32>
    %238 = vector.broadcast %237 : vector<8x1xf32> to vector<8x8xf32>
    %239 = arith.cmpf oge, %196, %238 : vector<8x8xf32>
    %cst_121 = arith.constant 1.000000e+00 : f32
    %cst_122 = arith.constant 0.000000e+00 : f32
    %240 = vector.broadcast %cst_121 : f32 to vector<8x8xf32>
    %241 = vector.broadcast %cst_122 : f32 to vector<8x8xf32>
    %242 = arith.select %239, %240, %241 : vector<8x8xi1>, vector<8x8xf32>
    %cst_123 = arith.constant dense<0.000000e+00> : vector<8xf32>
    %243 = vector.multi_reduction <add>, %242, %cst_123 [1] : vector<8x8xf32> to vector<8xf32>
    %244 = vector.shape_cast %243 : vector<8xf32> to vector<8x1xf32>
    %cst_124 = arith.constant 4.000000e+00 : f32
    %245 = vector.broadcast %cst_124 : f32 to vector<8x1xf32>
    %246 = arith.cmpf oge, %244, %245 : vector<8x1xf32>
    %cst_125 = arith.constant -1.000000e+30 : f32
    %247 = vector.broadcast %cst_125 : f32 to vector<8x1xf32>
    %248 = arith.select %246, %237, %247 : vector<8x1xi1>, vector<8x1xf32>
    %249 = arith.maximumf %236, %248 : vector<8x1xf32>
    %250 = vector.extract_strided_slice %196 {offsets = [0, 4], sizes = [8, 1], strides = [1, 1]} : vector<8x8xf32> to vector<8x1xf32>
    %251 = vector.broadcast %250 : vector<8x1xf32> to vector<8x8xf32>
    %252 = arith.cmpf oge, %196, %251 : vector<8x8xf32>
    %cst_126 = arith.constant 1.000000e+00 : f32
    %cst_127 = arith.constant 0.000000e+00 : f32
    %253 = vector.broadcast %cst_126 : f32 to vector<8x8xf32>
    %254 = vector.broadcast %cst_127 : f32 to vector<8x8xf32>
    %255 = arith.select %252, %253, %254 : vector<8x8xi1>, vector<8x8xf32>
    %cst_128 = arith.constant dense<0.000000e+00> : vector<8xf32>
    %256 = vector.multi_reduction <add>, %255, %cst_128 [1] : vector<8x8xf32> to vector<8xf32>
    %257 = vector.shape_cast %256 : vector<8xf32> to vector<8x1xf32>
    %cst_129 = arith.constant 4.000000e+00 : f32
    %258 = vector.broadcast %cst_129 : f32 to vector<8x1xf32>
    %259 = arith.cmpf oge, %257, %258 : vector<8x1xf32>
    %cst_130 = arith.constant -1.000000e+30 : f32
    %260 = vector.broadcast %cst_130 : f32 to vector<8x1xf32>
    %261 = arith.select %259, %250, %260 : vector<8x1xi1>, vector<8x1xf32>
    %262 = arith.maximumf %249, %261 : vector<8x1xf32>
    %263 = vector.extract_strided_slice %196 {offsets = [0, 5], sizes = [8, 1], strides = [1, 1]} : vector<8x8xf32> to vector<8x1xf32>
    %264 = vector.broadcast %263 : vector<8x1xf32> to vector<8x8xf32>
    %265 = arith.cmpf oge, %196, %264 : vector<8x8xf32>
    %cst_131 = arith.constant 1.000000e+00 : f32
    %cst_132 = arith.constant 0.000000e+00 : f32
    %266 = vector.broadcast %cst_131 : f32 to vector<8x8xf32>
    %267 = vector.broadcast %cst_132 : f32 to vector<8x8xf32>
    %268 = arith.select %265, %266, %267 : vector<8x8xi1>, vector<8x8xf32>
    %cst_133 = arith.constant dense<0.000000e+00> : vector<8xf32>
    %269 = vector.multi_reduction <add>, %268, %cst_133 [1] : vector<8x8xf32> to vector<8xf32>
    %270 = vector.shape_cast %269 : vector<8xf32> to vector<8x1xf32>
    %cst_134 = arith.constant 4.000000e+00 : f32
    %271 = vector.broadcast %cst_134 : f32 to vector<8x1xf32>
    %272 = arith.cmpf oge, %270, %271 : vector<8x1xf32>
    %cst_135 = arith.constant -1.000000e+30 : f32
    %273 = vector.broadcast %cst_135 : f32 to vector<8x1xf32>
    %274 = arith.select %272, %263, %273 : vector<8x1xi1>, vector<8x1xf32>
    %275 = arith.maximumf %262, %274 : vector<8x1xf32>
    %276 = vector.extract_strided_slice %196 {offsets = [0, 6], sizes = [8, 1], strides = [1, 1]} : vector<8x8xf32> to vector<8x1xf32>
    %277 = vector.broadcast %276 : vector<8x1xf32> to vector<8x8xf32>
    %278 = arith.cmpf oge, %196, %277 : vector<8x8xf32>
    %cst_136 = arith.constant 1.000000e+00 : f32
    %cst_137 = arith.constant 0.000000e+00 : f32
    %279 = vector.broadcast %cst_136 : f32 to vector<8x8xf32>
    %280 = vector.broadcast %cst_137 : f32 to vector<8x8xf32>
    %281 = arith.select %278, %279, %280 : vector<8x8xi1>, vector<8x8xf32>
    %cst_138 = arith.constant dense<0.000000e+00> : vector<8xf32>
    %282 = vector.multi_reduction <add>, %281, %cst_138 [1] : vector<8x8xf32> to vector<8xf32>
    %283 = vector.shape_cast %282 : vector<8xf32> to vector<8x1xf32>
    %cst_139 = arith.constant 4.000000e+00 : f32
    %284 = vector.broadcast %cst_139 : f32 to vector<8x1xf32>
    %285 = arith.cmpf oge, %283, %284 : vector<8x1xf32>
    %cst_140 = arith.constant -1.000000e+30 : f32
    %286 = vector.broadcast %cst_140 : f32 to vector<8x1xf32>
    %287 = arith.select %285, %276, %286 : vector<8x1xi1>, vector<8x1xf32>
    %288 = arith.maximumf %275, %287 : vector<8x1xf32>
    %289 = vector.extract_strided_slice %196 {offsets = [0, 7], sizes = [8, 1], strides = [1, 1]} : vector<8x8xf32> to vector<8x1xf32>
    %290 = vector.broadcast %289 : vector<8x1xf32> to vector<8x8xf32>
    %291 = arith.cmpf oge, %196, %290 : vector<8x8xf32>
    %cst_141 = arith.constant 1.000000e+00 : f32
    %cst_142 = arith.constant 0.000000e+00 : f32
    %292 = vector.broadcast %cst_141 : f32 to vector<8x8xf32>
    %293 = vector.broadcast %cst_142 : f32 to vector<8x8xf32>
    %294 = arith.select %291, %292, %293 : vector<8x8xi1>, vector<8x8xf32>
    %cst_143 = arith.constant dense<0.000000e+00> : vector<8xf32>
    %295 = vector.multi_reduction <add>, %294, %cst_143 [1] : vector<8x8xf32> to vector<8xf32>
    %296 = vector.shape_cast %295 : vector<8xf32> to vector<8x1xf32>
    %cst_144 = arith.constant 4.000000e+00 : f32
    %297 = vector.broadcast %cst_144 : f32 to vector<8x1xf32>
    %298 = arith.cmpf oge, %296, %297 : vector<8x1xf32>
    %cst_145 = arith.constant -1.000000e+30 : f32
    %299 = vector.broadcast %cst_145 : f32 to vector<8x1xf32>
    %300 = arith.select %298, %289, %299 : vector<8x1xi1>, vector<8x1xf32>
    %301 = arith.maximumf %288, %300 : vector<8x1xf32>
    %302 = vector.broadcast %301 : vector<8x1xf32> to vector<8x8xf32>
    %303 = arith.cmpf oge, %196, %302 : vector<8x8xf32>
    %cst_146 = arith.constant 1.000000e+00 : f32
    %cst_147 = arith.constant 0.000000e+00 : f32
    %304 = vector.broadcast %cst_146 : f32 to vector<8x8xf32>
    %305 = vector.broadcast %cst_147 : f32 to vector<8x8xf32>
    %306 = arith.select %303, %304, %305 : vector<8x8xi1>, vector<8x8xf32>
    %cst_148 = arith.constant dense<0.000000e+00> : vector<8xf32>
    %307 = vector.multi_reduction <add>, %306, %cst_148 [1] : vector<8x8xf32> to vector<8xf32>
    %308 = vector.shape_cast %307 : vector<8xf32> to vector<8x1xf32>
    %309 = math.rsqrt %308 : vector<8x1xf32>
    %cst_149 = arith.constant 0.000000e+00 : f32
    %310 = vector.shape_cast %309 : vector<8x1xf32> to vector<8x1xf32>
    %311 = vector.broadcast %310 : vector<8x1xf32> to vector<8x8xf32>
    %312 = vector.broadcast %cst_149 : f32 to vector<8x8xf32>
    %313 = arith.select %48, %311, %312 : vector<8x8xi1>, vector<8x8xf32>
    %cst_150 = arith.constant dense<0.000000e+00> : vector<8x8xf32>
    %314 = tpu.matmul %313, %306, %cst_150 {dimension_numbers = #tpu.dot_dimension_numbers<[1], [0], [0], [1], [0, 0, 1, 1], [], []>} : vector<8x8xf32>, vector<8x8xf32>, vector<8x8xf32> -> vector<8x8xf32>
    %cst_151 = arith.constant dense<0.000000e+00> : vector<8x8xf32>
    %315 = tpu.matmul %314, %313, %cst_151 {dimension_numbers = #tpu.dot_dimension_numbers<[1], [0], [0], [1], [0, 0, 1, 1], [], []>} : vector<8x8xf32>, vector<8x8xf32>, vector<8x8xf32> -> vector<8x8xf32>
    %c0_152 = arith.constant 0 : index
    %c0_153 = arith.constant 0 : index
    %316 = vector.load %arg10[%c0_152, %c0_153] : memref<16x16xf32, #tpu.memory_space<vmem>>, vector<16x16xf32>
    %cst_154 = arith.constant dense<0.000000e+00> : vector<8x16xf32>
    %317 = tpu.matmul %194, %316, %cst_154 {dimension_numbers = #tpu.dot_dimension_numbers<[1], [0], [0], [1], [0, 0, 1, 1], [], []>} : vector<8x16xf32>, vector<16x16xf32>, vector<8x16xf32> -> vector<8x16xf32>
    %c0_155 = arith.constant 0 : index
    %c0_156 = arith.constant 0 : index
    %318 = vector.load %arg11[%c0_155, %c0_156] : memref<1x16xf32, #tpu.memory_space<vmem>>, vector<1x16xf32>
    %319 = vector.broadcast %318 : vector<1x16xf32> to vector<8x16xf32>
    %320 = arith.addf %317, %319 : vector<8x16xf32>
    %c0_157 = arith.constant 0 : index
    %c0_158 = arith.constant 0 : index
    %321 = vector.load %arg8[%c0_157, %c0_158] : memref<16x16xf32, #tpu.memory_space<vmem>>, vector<16x16xf32>
    %cst_159 = arith.constant dense<0.000000e+00> : vector<8x16xf32>
    %322 = tpu.matmul %194, %321, %cst_159 {dimension_numbers = #tpu.dot_dimension_numbers<[1], [0], [0], [1], [0, 0, 1, 1], [], []>} : vector<8x16xf32>, vector<16x16xf32>, vector<8x16xf32> -> vector<8x16xf32>
    %c0_160 = arith.constant 0 : index
    %c0_161 = arith.constant 0 : index
    %323 = vector.load %arg9[%c0_160, %c0_161] : memref<1x16xf32, #tpu.memory_space<vmem>>, vector<1x16xf32>
    %324 = vector.broadcast %323 : vector<1x16xf32> to vector<8x16xf32>
    %325 = arith.addf %322, %324 : vector<8x16xf32>
    %cst_162 = arith.constant dense<0.000000e+00> : vector<8x16xf32>
    %326 = tpu.matmul %315, %320, %cst_162 {dimension_numbers = #tpu.dot_dimension_numbers<[1], [0], [0], [1], [0, 0, 1, 1], [], []>} : vector<8x8xf32>, vector<8x16xf32>, vector<8x16xf32> -> vector<8x16xf32>
    %327 = arith.addf %326, %325 : vector<8x16xf32>
    %c0_163 = arith.constant 0 : index
    %c0_164 = arith.constant 0 : index
    %328 = vector.load %arg12[%c0_163, %c0_164] : memref<8x1xf32, #tpu.memory_space<vmem>>, vector<8x1xf32>
    %329 = vector.broadcast %328 : vector<8x1xf32> to vector<8x16xf32>
    %330 = arith.mulf %327, %329 : vector<8x16xf32>
    %c0_165 = arith.constant 0 : index
    %c0_166 = arith.constant 0 : index
    %331 = vector.load %arg13[%c0_165, %c0_166] : memref<8x1xf32, #tpu.memory_space<vmem>>, vector<8x1xf32>
    %332 = vector.broadcast %331 : vector<8x1xf32> to vector<8x16xf32>
    %333 = arith.addf %330, %332 : vector<8x16xf32>
    %334 = arith.addf %194, %333 : vector<8x16xf32>
    %cst_167 = arith.constant 0.000000e+00 : f32
    %335 = vector.broadcast %cst_167 : f32 to vector<8x16xf32>
    %336 = arith.maximumf %334, %335 : vector<8x16xf32>
    %c0_168 = arith.constant 0 : index
    %c0_169 = arith.constant 0 : index
    %337 = vector.load %arg14[%c0_168, %c0_169] : memref<16x2xf32, #tpu.memory_space<vmem>>, vector<16x2xf32>
    %cst_170 = arith.constant dense<0.000000e+00> : vector<128x2xf32>
    %338 = tpu.matmul %0, %337, %cst_170 {dimension_numbers = #tpu.dot_dimension_numbers<[1], [0], [0], [1], [0, 0, 1, 1], [], []>} : vector<128x16xf32>, vector<16x2xf32>, vector<128x2xf32> -> vector<128x2xf32>
    %c0_171 = arith.constant 0 : index
    %c0_172 = arith.constant 0 : index
    %339 = vector.load %arg15[%c0_171, %c0_172] : memref<1x2xf32, #tpu.memory_space<vmem>>, vector<1x2xf32>
    %340 = vector.broadcast %339 : vector<1x2xf32> to vector<128x2xf32>
    %341 = arith.addf %338, %340 : vector<128x2xf32>
    %c0_173 = arith.constant 0 : index
    %c0_174 = arith.constant 0 : index
    %342 = vector.load %arg16[%c0_173, %c0_174] : memref<16x2xf32, #tpu.memory_space<vmem>>, vector<16x2xf32>
    %cst_175 = arith.constant dense<0.000000e+00> : vector<128x2xf32>
    %343 = tpu.matmul %0, %342, %cst_175 {dimension_numbers = #tpu.dot_dimension_numbers<[1], [0], [0], [1], [0, 0, 1, 1], [], []>} : vector<128x16xf32>, vector<16x2xf32>, vector<128x2xf32> -> vector<128x2xf32>
    %c0_176 = arith.constant 0 : index
    %c0_177 = arith.constant 0 : index
    %344 = vector.load %arg17[%c0_176, %c0_177] : memref<1x2xf32, #tpu.memory_space<vmem>>, vector<1x2xf32>
    %345 = vector.broadcast %344 : vector<1x2xf32> to vector<128x2xf32>
    %346 = arith.addf %343, %345 : vector<128x2xf32>
    %c0_178 = arith.constant 0 : index
    %c0_179 = arith.constant 0 : index
    %347 = vector.load %arg18[%c0_178, %c0_179] : memref<16x16xf32, #tpu.memory_space<vmem>>, vector<16x16xf32>
    %cst_180 = arith.constant dense<0.000000e+00> : vector<128x16xf32>
    %348 = tpu.matmul %0, %347, %cst_180 {dimension_numbers = #tpu.dot_dimension_numbers<[1], [0], [0], [1], [0, 0, 1, 1], [], []>} : vector<128x16xf32>, vector<16x16xf32>, vector<128x16xf32> -> vector<128x16xf32>
    %c0_181 = arith.constant 0 : index
    %c0_182 = arith.constant 0 : index
    %349 = vector.load %arg19[%c0_181, %c0_182] : memref<1x16xf32, #tpu.memory_space<vmem>>, vector<1x16xf32>
    %350 = vector.broadcast %349 : vector<1x16xf32> to vector<128x16xf32>
    %351 = arith.addf %348, %350 : vector<128x16xf32>
    %352 = vector.shape_cast %341 : vector<128x2xf32> to vector<2x8x8x2xf32>
    %cst_183 = arith.constant dense<0.000000e+00> : vector<2x8x2xf32>
    %353 = vector.multi_reduction <add>, %352, %cst_183 [1] : vector<2x8x8x2xf32> to vector<2x8x2xf32>
    %cst_184 = arith.constant 8.000000e+00 : f32
    %354 = vector.broadcast %cst_184 : f32 to vector<2x8x2xf32>
    %355 = arith.divf %353, %354 : vector<2x8x2xf32>
    %356 = vector.shape_cast %346 : vector<128x2xf32> to vector<2x8x8x2xf32>
    %cst_185 = arith.constant dense<0.000000e+00> : vector<2x8x2xf32>
    %357 = vector.multi_reduction <add>, %356, %cst_185 [1] : vector<2x8x8x2xf32> to vector<2x8x2xf32>
    %cst_186 = arith.constant 8.000000e+00 : f32
    %358 = vector.broadcast %cst_186 : f32 to vector<2x8x2xf32>
    %359 = arith.divf %357, %358 : vector<2x8x2xf32>
    %360 = vector.shape_cast %351 : vector<128x16xf32> to vector<2x8x8x16xf32>
    %cst_187 = arith.constant dense<0.000000e+00> : vector<2x8x16xf32>
    %361 = vector.multi_reduction <add>, %360, %cst_187 [1] : vector<2x8x8x16xf32> to vector<2x8x16xf32>
    %cst_188 = arith.constant 0.000000e+00 : f32
    %362 = vector.broadcast %cst_188 : f32 to vector<2x8x2xf32>
    %363 = vector.extract_strided_slice %355 {offsets = [0, 0, 0], sizes = [2, 1, 2], strides = [1, 1, 1]} : vector<2x8x2xf32> to vector<2x1x2xf32>
    %364 = vector.broadcast %363 : vector<2x1x2xf32> to vector<2x8x2xf32>
    %365 = arith.subf %364, %359 : vector<2x8x2xf32>
    %366 = math.tanh %365 : vector<2x8x2xf32>
    %367 = arith.addf %362, %366 : vector<2x8x2xf32>
    %368 = vector.extract_strided_slice %355 {offsets = [0, 1, 0], sizes = [2, 1, 2], strides = [1, 1, 1]} : vector<2x8x2xf32> to vector<2x1x2xf32>
    %369 = vector.broadcast %368 : vector<2x1x2xf32> to vector<2x8x2xf32>
    %370 = arith.subf %369, %359 : vector<2x8x2xf32>
    %371 = math.tanh %370 : vector<2x8x2xf32>
    %372 = arith.addf %367, %371 : vector<2x8x2xf32>
    %373 = vector.extract_strided_slice %355 {offsets = [0, 2, 0], sizes = [2, 1, 2], strides = [1, 1, 1]} : vector<2x8x2xf32> to vector<2x1x2xf32>
    %374 = vector.broadcast %373 : vector<2x1x2xf32> to vector<2x8x2xf32>
    %375 = arith.subf %374, %359 : vector<2x8x2xf32>
    %376 = math.tanh %375 : vector<2x8x2xf32>
    %377 = arith.addf %372, %376 : vector<2x8x2xf32>
    %378 = vector.extract_strided_slice %355 {offsets = [0, 3, 0], sizes = [2, 1, 2], strides = [1, 1, 1]} : vector<2x8x2xf32> to vector<2x1x2xf32>
    %379 = vector.broadcast %378 : vector<2x1x2xf32> to vector<2x8x2xf32>
    %380 = arith.subf %379, %359 : vector<2x8x2xf32>
    %381 = math.tanh %380 : vector<2x8x2xf32>
    %382 = arith.addf %377, %381 : vector<2x8x2xf32>
    %383 = vector.extract_strided_slice %355 {offsets = [0, 4, 0], sizes = [2, 1, 2], strides = [1, 1, 1]} : vector<2x8x2xf32> to vector<2x1x2xf32>
    %384 = vector.broadcast %383 : vector<2x1x2xf32> to vector<2x8x2xf32>
    %385 = arith.subf %384, %359 : vector<2x8x2xf32>
    %386 = math.tanh %385 : vector<2x8x2xf32>
    %387 = arith.addf %382, %386 : vector<2x8x2xf32>
    %388 = vector.extract_strided_slice %355 {offsets = [0, 5, 0], sizes = [2, 1, 2], strides = [1, 1, 1]} : vector<2x8x2xf32> to vector<2x1x2xf32>
    %389 = vector.broadcast %388 : vector<2x1x2xf32> to vector<2x8x2xf32>
    %390 = arith.subf %389, %359 : vector<2x8x2xf32>
    %391 = math.tanh %390 : vector<2x8x2xf32>
    %392 = arith.addf %387, %391 : vector<2x8x2xf32>
    %393 = vector.extract_strided_slice %355 {offsets = [0, 6, 0], sizes = [2, 1, 2], strides = [1, 1, 1]} : vector<2x8x2xf32> to vector<2x1x2xf32>
    %394 = vector.broadcast %393 : vector<2x1x2xf32> to vector<2x8x2xf32>
    %395 = arith.subf %394, %359 : vector<2x8x2xf32>
    %396 = math.tanh %395 : vector<2x8x2xf32>
    %397 = arith.addf %392, %396 : vector<2x8x2xf32>
    %398 = vector.extract_strided_slice %355 {offsets = [0, 7, 0], sizes = [2, 1, 2], strides = [1, 1, 1]} : vector<2x8x2xf32> to vector<2x1x2xf32>
    %399 = vector.broadcast %398 : vector<2x1x2xf32> to vector<2x8x2xf32>
    %400 = arith.subf %399, %359 : vector<2x8x2xf32>
    %401 = math.tanh %400 : vector<2x8x2xf32>
    %402 = arith.addf %397, %401 : vector<2x8x2xf32>
    %403 = vector.shape_cast %402 : vector<2x8x2xf32> to vector<16x2xf32>
    %c0_189 = arith.constant 0 : index
    %c0_190 = arith.constant 0 : index
    %404 = vector.load %arg20[%c0_189, %c0_190] : memref<2x16xf32, #tpu.memory_space<vmem>>, vector<2x16xf32>
    %cst_191 = arith.constant dense<0.000000e+00> : vector<16x16xf32>
    %405 = tpu.matmul %403, %404, %cst_191 {dimension_numbers = #tpu.dot_dimension_numbers<[1], [0], [0], [1], [0, 0, 1, 1], [], []>} : vector<16x2xf32>, vector<2x16xf32>, vector<16x16xf32> -> vector<16x16xf32>
    %406 = vector.shape_cast %405 : vector<16x16xf32> to vector<2x8x16xf32>
    %c0_192 = arith.constant 0 : index
    %c0_193 = arith.constant 0 : index
    %407 = vector.load %arg21[%c0_192, %c0_193] : memref<1x16xf32, #tpu.memory_space<vmem>>, vector<1x16xf32>
    %cst_194 = arith.constant 8.000000e+00 : f32
    %408 = vector.broadcast %cst_194 : f32 to vector<1x16xf32>
    %409 = arith.mulf %408, %407 : vector<1x16xf32>
    %410 = vector.shape_cast %409 : vector<1x16xf32> to vector<1x1x16xf32>
    %411 = vector.broadcast %410 : vector<1x1x16xf32> to vector<2x8x16xf32>
    %412 = arith.addf %406, %411 : vector<2x8x16xf32>
    %413 = arith.mulf %412, %361 : vector<2x8x16xf32>
    %cst_195 = arith.constant dense<0.000000e+00> : vector<2x16xf32>
    %414 = vector.multi_reduction <add>, %413, %cst_195 [1] : vector<2x8x16xf32> to vector<2x16xf32>
    %cst_196 = arith.constant 6.400000e+01 : f32
    %415 = vector.broadcast %cst_196 : f32 to vector<2x16xf32>
    %416 = arith.divf %414, %415 : vector<2x16xf32>
    %c0_197 = arith.constant 0 : index
    %c0_198 = arith.constant 0 : index
    %417 = vector.load %arg22[%c0_197, %c0_198] : memref<16x16xf32, #tpu.memory_space<vmem>>, vector<16x16xf32>
    %cst_199 = arith.constant dense<0.000000e+00> : vector<2x16xf32>
    %418 = tpu.matmul %416, %417, %cst_199 {dimension_numbers = #tpu.dot_dimension_numbers<[1], [0], [0], [1], [0, 0, 1, 1], [], []>} : vector<2x16xf32>, vector<16x16xf32>, vector<2x16xf32> -> vector<2x16xf32>
    %c0_200 = arith.constant 0 : index
    %c0_201 = arith.constant 0 : index
    %419 = vector.load %arg23[%c0_200, %c0_201] : memref<1x16xf32, #tpu.memory_space<vmem>>, vector<1x16xf32>
    %420 = vector.broadcast %419 : vector<1x16xf32> to vector<2x16xf32>
    %421 = arith.mulf %418, %420 : vector<2x16xf32>
    %c0_202 = arith.constant 0 : index
    %c0_203 = arith.constant 0 : index
    %422 = vector.load %arg24[%c0_202, %c0_203] : memref<1x16xf32, #tpu.memory_space<vmem>>, vector<1x16xf32>
    %423 = vector.broadcast %422 : vector<1x16xf32> to vector<2x16xf32>
    %424 = arith.addf %421, %423 : vector<2x16xf32>
    %cst_204 = arith.constant 0.000000e+00 : f32
    %425 = vector.broadcast %cst_204 : f32 to vector<2x16xf32>
    %426 = arith.maximumf %424, %425 : vector<2x16xf32>
    %c0_205 = arith.constant 0 : index
    %c0_206 = arith.constant 0 : index
    %427 = vector.load %arg25[%c0_205, %c0_206] : memref<16x16xf32, #tpu.memory_space<vmem>>, vector<16x16xf32>
    %cst_207 = arith.constant dense<0.000000e+00> : vector<8x16xf32>
    %428 = tpu.matmul %192, %427, %cst_207 {dimension_numbers = #tpu.dot_dimension_numbers<[1], [0], [0], [1], [0, 0, 1, 1], [], []>} : vector<8x16xf32>, vector<16x16xf32>, vector<8x16xf32> -> vector<8x16xf32>
    %429 = vector.extract_strided_slice %426 {offsets = [0, 0], sizes = [1, 16], strides = [1, 1]} : vector<2x16xf32> to vector<1x16xf32>
    %c0_208 = arith.constant 0 : index
    %c0_209 = arith.constant 0 : index
    %430 = vector.load %arg26[%c0_208, %c0_209] : memref<16x16xf32, #tpu.memory_space<vmem>>, vector<16x16xf32>
    %cst_210 = arith.constant dense<0.000000e+00> : vector<1x16xf32>
    %431 = tpu.matmul %429, %430, %cst_210 {dimension_numbers = #tpu.dot_dimension_numbers<[1], [0], [0], [1], [0, 0, 1, 1], [], []>} : vector<1x16xf32>, vector<16x16xf32>, vector<1x16xf32> -> vector<1x16xf32>
    %432 = vector.broadcast %431 : vector<1x16xf32> to vector<8x16xf32>
    %433 = arith.addf %428, %432 : vector<8x16xf32>
    %c0_211 = arith.constant 0 : index
    %c0_212 = arith.constant 0 : index
    %434 = vector.load %arg27[%c0_211, %c0_212] : memref<1x16xf32, #tpu.memory_space<vmem>>, vector<1x16xf32>
    %435 = vector.broadcast %434 : vector<1x16xf32> to vector<8x16xf32>
    %436 = arith.mulf %433, %435 : vector<8x16xf32>
    %c0_213 = arith.constant 0 : index
    %c0_214 = arith.constant 0 : index
    %437 = vector.load %arg28[%c0_213, %c0_214] : memref<1x16xf32, #tpu.memory_space<vmem>>, vector<1x16xf32>
    %438 = vector.broadcast %437 : vector<1x16xf32> to vector<8x16xf32>
    %439 = arith.addf %436, %438 : vector<8x16xf32>
    %cst_215 = arith.constant 0.000000e+00 : f32
    %440 = vector.broadcast %cst_215 : f32 to vector<8x16xf32>
    %441 = arith.maximumf %439, %440 : vector<8x16xf32>
    %442 = arith.mulf %441, %441 : vector<8x16xf32>
    %cst_216 = arith.constant dense<0.000000e+00> : vector<8xf32>
    %443 = vector.multi_reduction <add>, %442, %cst_216 [1] : vector<8x16xf32> to vector<8xf32>
    %444 = vector.shape_cast %443 : vector<8xf32> to vector<8x1xf32>
    %cst_217 = arith.constant 1.000000e-24 : f32
    %445 = vector.broadcast %cst_217 : f32 to vector<8x1xf32>
    %446 = arith.maximumf %444, %445 : vector<8x1xf32>
    %447 = math.rsqrt %446 : vector<8x1xf32>
    %448 = vector.broadcast %447 : vector<8x1xf32> to vector<8x16xf32>
    %449 = arith.mulf %441, %448 : vector<8x16xf32>
    %c0_218 = arith.constant 0 : index
    %c0_219 = arith.constant 0 : index
    %450 = vector.load %arg29[%c0_218, %c0_219] : memref<8x16xf32, #tpu.memory_space<vmem>>, vector<8x16xf32>
    %451 = arith.mulf %449, %450 : vector<8x16xf32>
    %cst_220 = arith.constant dense<0.000000e+00> : vector<8xf32>
    %452 = vector.multi_reduction <add>, %451, %cst_220 [1] : vector<8x16xf32> to vector<8xf32>
    %453 = vector.shape_cast %452 : vector<8xf32> to vector<8x1xf32>
    %c0_221 = arith.constant 0 : index
    %c0_222 = arith.constant 0 : index
    %c0_223 = arith.constant 0 : index
    %454 = vector.load %arg30[%c0_221, %c0_222, %c0_223] : memref<2x8x1xf32, #tpu.memory_space<vmem>>, vector<1x8x1xf32>
    %455 = vector.shape_cast %454 : vector<1x8x1xf32> to vector<8x1xf32>
    %456 = vector.shape_cast %453 : vector<8x1xf32> to vector<1x8x1xf32>
    tpu.vector_store %arg30[%c0_221, %c0_222, %c0_223], %456 {strides = array<i32>} : memref<2x8x1xf32, #tpu.memory_space<vmem>>, vector<1x8x1xf32>,
    %c0_224 = arith.constant 0 : index
    %c0_225 = arith.constant 0 : index
    %457 = vector.load %arg25[%c0_224, %c0_225] : memref<16x16xf32, #tpu.memory_space<vmem>>, vector<16x16xf32>
    %cst_226 = arith.constant dense<0.000000e+00> : vector<8x16xf32>
    %458 = tpu.matmul %336, %457, %cst_226 {dimension_numbers = #tpu.dot_dimension_numbers<[1], [0], [0], [1], [0, 0, 1, 1], [], []>} : vector<8x16xf32>, vector<16x16xf32>, vector<8x16xf32> -> vector<8x16xf32>
    %459 = vector.extract_strided_slice %426 {offsets = [1, 0], sizes = [1, 16], strides = [1, 1]} : vector<2x16xf32> to vector<1x16xf32>
    %c0_227 = arith.constant 0 : index
    %c0_228 = arith.constant 0 : index
    %460 = vector.load %arg26[%c0_227, %c0_228] : memref<16x16xf32, #tpu.memory_space<vmem>>, vector<16x16xf32>
    %cst_229 = arith.constant dense<0.000000e+00> : vector<1x16xf32>
    %461 = tpu.matmul %459, %460, %cst_229 {dimension_numbers = #tpu.dot_dimension_numbers<[1], [0], [0], [1], [0, 0, 1, 1], [], []>} : vector<1x16xf32>, vector<16x16xf32>, vector<1x16xf32> -> vector<1x16xf32>
    %462 = vector.broadcast %461 : vector<1x16xf32> to vector<8x16xf32>
    %463 = arith.addf %458, %462 : vector<8x16xf32>
    %c0_230 = arith.constant 0 : index
    %c0_231 = arith.constant 0 : index
    %464 = vector.load %arg27[%c0_230, %c0_231] : memref<1x16xf32, #tpu.memory_space<vmem>>, vector<1x16xf32>
    %465 = vector.broadcast %464 : vector<1x16xf32> to vector<8x16xf32>
    %466 = arith.mulf %463, %465 : vector<8x16xf32>
    %c0_232 = arith.constant 0 : index
    %c0_233 = arith.constant 0 : index
    %467 = vector.load %arg28[%c0_232, %c0_233] : memref<1x16xf32, #tpu.memory_space<vmem>>, vector<1x16xf32>
    %468 = vector.broadcast %467 : vector<1x16xf32> to vector<8x16xf32>
    %469 = arith.addf %466, %468 : vector<8x16xf32>
    %cst_234 = arith.constant 0.000000e+00 : f32
    %470 = vector.broadcast %cst_234 : f32 to vector<8x16xf32>
    %471 = arith.maximumf %469, %470 : vector<8x16xf32>
    %472 = arith.mulf %471, %471 : vector<8x16xf32>
    %cst_235 = arith.constant dense<0.000000e+00> : vector<8xf32>
    %473 = vector.multi_reduction <add>, %472, %cst_235 [1] : vector<8x16xf32> to vector<8xf32>
    %474 = vector.shape_cast %473 : vector<8xf32> to vector<8x1xf32>
    %cst_236 = arith.constant 1.000000e-24 : f32
    %475 = vector.broadcast %cst_236 : f32 to vector<8x1xf32>
    %476 = arith.maximumf %474, %475 : vector<8x1xf32>
    %477 = math.rsqrt %476 : vector<8x1xf32>
    %478 = vector.broadcast %477 : vector<8x1xf32> to vector<8x16xf32>
    %479 = arith.mulf %471, %478 : vector<8x16xf32>
    %c0_237 = arith.constant 0 : index
    %c0_238 = arith.constant 0 : index
    %480 = vector.load %arg29[%c0_237, %c0_238] : memref<8x16xf32, #tpu.memory_space<vmem>>, vector<8x16xf32>
    %481 = arith.mulf %479, %480 : vector<8x16xf32>
    %cst_239 = arith.constant dense<0.000000e+00> : vector<8xf32>
    %482 = vector.multi_reduction <add>, %481, %cst_239 [1] : vector<8x16xf32> to vector<8xf32>
    %483 = vector.shape_cast %482 : vector<8xf32> to vector<8x1xf32>
    %c1_240 = arith.constant 1 : index
    %c0_241 = arith.constant 0 : index
    %c0_242 = arith.constant 0 : index
    %484 = vector.load %arg30[%c1_240, %c0_241, %c0_242] : memref<2x8x1xf32, #tpu.memory_space<vmem>>, vector<1x8x1xf32>
    %485 = vector.shape_cast %484 : vector<1x8x1xf32> to vector<8x1xf32>
    %486 = vector.shape_cast %483 : vector<8x1xf32> to vector<1x8x1xf32>
    tpu.vector_store %arg30[%c1_240, %c0_241, %c0_242], %486 {strides = array<i32>} : memref<2x8x1xf32, #tpu.memory_space<vmem>>, vector<1x8x1xf32>,
    return
  }
  func.func @transform_0(%arg0: i32) -> (i32, i32) {
    %c0_i32 = arith.constant 0 : i32
    %c0_i32_0 = arith.constant 0 : i32
    %c0_i32_1 = arith.constant 0 : i32
    return %c0_i32, %c0_i32_0 : i32, i32
  }
  func.func @transform_1(%arg0: i32) -> (i32, i32) {
    %c0_i32 = arith.constant 0 : i32
    %c0_i32_0 = arith.constant 0 : i32
    %c0_i32_1 = arith.constant 0 : i32
    return %c0_i32, %c0_i32_0 : i32, i32
  }
  func.func @transform_2(%arg0: i32) -> (i32, i32) {
    %c0_i32 = arith.constant 0 : i32
    %c0_i32_0 = arith.constant 0 : i32
    %c0_i32_1 = arith.constant 0 : i32
    return %c0_i32, %c0_i32_0 : i32, i32
  }
  func.func @transform_3(%arg0: i32) -> (i32, i32) {
    %c0_i32 = arith.constant 0 : i32
    %c0_i32_0 = arith.constant 0 : i32
    %c0_i32_1 = arith.constant 0 : i32
    return %c0_i32, %c0_i32_0 : i32, i32
  }
  func.func @transform_4(%arg0: i32) -> (i32, i32) {
    %c0_i32 = arith.constant 0 : i32
    %c0_i32_0 = arith.constant 0 : i32
    %c0_i32_1 = arith.constant 0 : i32
    return %c0_i32, %c0_i32_0 : i32, i32
  }
  func.func @transform_5(%arg0: i32) -> (i32, i32) {
    %c0_i32 = arith.constant 0 : i32
    %c0_i32_0 = arith.constant 0 : i32
    %c0_i32_1 = arith.constant 0 : i32
    return %c0_i32, %c0_i32_0 : i32, i32
  }
  func.func @transform_6(%arg0: i32) -> (i32, i32) {
    %c0_i32 = arith.constant 0 : i32
    %c0_i32_0 = arith.constant 0 : i32
    %c0_i32_1 = arith.constant 0 : i32
    return %c0_i32, %c0_i32_0 : i32, i32
  }
  func.func @transform_7(%arg0: i32) -> (i32, i32) {
    %c0_i32 = arith.constant 0 : i32
    %c0_i32_0 = arith.constant 0 : i32
    %c0_i32_1 = arith.constant 0 : i32
    return %c0_i32, %c0_i32_0 : i32, i32
  }
  func.func @transform_8(%arg0: i32) -> (i32, i32) {
    %c0_i32 = arith.constant 0 : i32
    %c0_i32_0 = arith.constant 0 : i32
    %c0_i32_1 = arith.constant 0 : i32
    return %c0_i32, %c0_i32_0 : i32, i32
  }
  func.func @transform_9(%arg0: i32) -> (i32, i32) {
    %c0_i32 = arith.constant 0 : i32
    %c0_i32_0 = arith.constant 0 : i32
    %c0_i32_1 = arith.constant 0 : i32
    return %c0_i32, %c0_i32_0 : i32, i32
  }
  func.func @transform_10(%arg0: i32) -> (i32, i32) {
    %c0_i32 = arith.constant 0 : i32
    %c0_i32_0 = arith.constant 0 : i32
    %c0_i32_1 = arith.constant 0 : i32
    return %c0_i32, %c0_i32_0 : i32, i32
  }
  func.func @transform_11(%arg0: i32) -> (i32, i32) {
    %c0_i32 = arith.constant 0 : i32
    %c0_i32_0 = arith.constant 0 : i32
    %c0_i32_1 = arith.constant 0 : i32
    return %c0_i32, %c0_i32_0 : i32, i32
  }
  func.func @transform_12(%arg0: i32) -> (i32, i32) {
    %c0_i32 = arith.constant 0 : i32
    %c0_i32_0 = arith.constant 0 : i32
    %c0_i32_1 = arith.constant 0 : i32
    return %c0_i32, %c0_i32_0 : i32, i32
  }
  func.func @transform_13(%arg0: i32) -> (i32, i32) {
    %c0_i32 = arith.constant 0 : i32
    %c0_i32_0 = arith.constant 0 : i32
    %c0_i32_1 = arith.constant 0 : i32
    return %c0_i32, %c0_i32_0 : i32, i32
  }
  func.func @transform_14(%arg0: i32) -> (i32, i32) {
    %c0_i32 = arith.constant 0 : i32
    %c0_i32_0 = arith.constant 0 : i32
    %c0_i32_1 = arith.constant 0 : i32
    return %c0_i32, %c0_i32_0 : i32, i32
  }
  func.func @transform_15(%arg0: i32) -> (i32, i32) {
    %c0_i32 = arith.constant 0 : i32
    %c0_i32_0 = arith.constant 0 : i32
    %c0_i32_1 = arith.constant 0 : i32
    return %c0_i32, %c0_i32_0 : i32, i32
  }
  func.func @transform_16(%arg0: i32) -> (i32, i32) {
    %c0_i32 = arith.constant 0 : i32
    %c0_i32_0 = arith.constant 0 : i32
    %c0_i32_1 = arith.constant 0 : i32
    return %c0_i32, %c0_i32_0 : i32, i32
  }
  func.func @transform_17(%arg0: i32) -> (i32, i32) {
    %c0_i32 = arith.constant 0 : i32
    %c0_i32_0 = arith.constant 0 : i32
    %c0_i32_1 = arith.constant 0 : i32
    return %c0_i32, %c0_i32_0 : i32, i32
  }
  func.func @transform_18(%arg0: i32) -> (i32, i32) {
    %c0_i32 = arith.constant 0 : i32
    %c0_i32_0 = arith.constant 0 : i32
    %c0_i32_1 = arith.constant 0 : i32
    return %c0_i32, %c0_i32_0 : i32, i32
  }
  func.func @transform_19(%arg0: i32) -> (i32, i32) {
    %c0_i32 = arith.constant 0 : i32
    %c0_i32_0 = arith.constant 0 : i32
    %c0_i32_1 = arith.constant 0 : i32
    return %c0_i32, %c0_i32_0 : i32, i32
  }
  func.func @transform_20(%arg0: i32) -> (i32, i32) {
    %c0_i32 = arith.constant 0 : i32
    %c0_i32_0 = arith.constant 0 : i32
    %c0_i32_1 = arith.constant 0 : i32
    return %c0_i32, %c0_i32_0 : i32, i32
  }
  func.func @transform_21(%arg0: i32) -> (i32, i32) {
    %c0_i32 = arith.constant 0 : i32
    %c0_i32_0 = arith.constant 0 : i32
    %c0_i32_1 = arith.constant 0 : i32
    return %c0_i32, %c0_i32_0 : i32, i32
  }
  func.func @transform_22(%arg0: i32) -> (i32, i32) {
    %c0_i32 = arith.constant 0 : i32
    %c0_i32_0 = arith.constant 0 : i32
    %c0_i32_1 = arith.constant 0 : i32
    return %c0_i32, %c0_i32_0 : i32, i32
  }
  func.func @transform_23(%arg0: i32) -> (i32, i32) {
    %c0_i32 = arith.constant 0 : i32
    %c0_i32_0 = arith.constant 0 : i32
    %c0_i32_1 = arith.constant 0 : i32
    return %c0_i32, %c0_i32_0 : i32, i32
  }
  func.func @transform_24(%arg0: i32) -> (i32, i32) {
    %c0_i32 = arith.constant 0 : i32
    %c0_i32_0 = arith.constant 0 : i32
    %c0_i32_1 = arith.constant 0 : i32
    return %c0_i32, %c0_i32_0 : i32, i32
  }
  func.func @transform_25(%arg0: i32) -> (i32, i32) {
    %c0_i32 = arith.constant 0 : i32
    %c0_i32_0 = arith.constant 0 : i32
    %c0_i32_1 = arith.constant 0 : i32
    return %c0_i32, %c0_i32_0 : i32, i32
  }
  func.func @transform_26(%arg0: i32) -> (i32, i32) {
    %c0_i32 = arith.constant 0 : i32
    %c0_i32_0 = arith.constant 0 : i32
    %c0_i32_1 = arith.constant 0 : i32
    return %c0_i32, %c0_i32_0 : i32, i32
  }
  func.func @transform_27(%arg0: i32) -> (i32, i32) {
    %c0_i32 = arith.constant 0 : i32
    %c0_i32_0 = arith.constant 0 : i32
    %c0_i32_1 = arith.constant 0 : i32
    return %c0_i32, %c0_i32_0 : i32, i32
  }
  func.func @transform_28(%arg0: i32) -> (i32, i32) {
    %c0_i32 = arith.constant 0 : i32
    %c0_i32_0 = arith.constant 0 : i32
    %c0_i32_1 = arith.constant 0 : i32
    return %c0_i32, %c0_i32_0 : i32, i32
  }
  func.func @transform_29(%arg0: i32) -> (i32, i32, i32) {
    %c0_i32 = arith.constant 0 : i32
    %c0_i32_0 = arith.constant 0 : i32
    %c0_i32_1 = arith.constant 0 : i32
    %c0_i32_2 = arith.constant 0 : i32
    return %c0_i32, %c0_i32_0, %c0_i32_1 : i32, i32, i32
  }
}

</mosaic_0001>

<bundles_post_ra>
// kernel: macg_forward.2
= control target key start
LH: loop header
LB: loop body
LE: loop exit
PB: predicated region body
PF: predicated region fallthrough
CT: control target
= control target key end

     0   :  { %s2777_s0 = inlined_call_operand.vmem [shape: f32[16,512], index: 0, kind: input, shape index: {}]   ;;  %s2778_s1 = inlined_call_operand.hbm [shape: f32[512,128], index: 1, kind: input, shape index: {}]   ;;  %s2779_s2 = inlined_call_operand.vmem [shape: f32[1,128], index: 2, kind: input, shape index: {}]   ;;  %s2780_s3 = inlined_call_operand.vmem [shape: f32[1,128], index: 3, kind: input, shape index: {}]   ;;  %s2781_s4 = inlined_call_operand.hbm [shape: f32[5,128,128], index: 4, kind: input, shape index: {}]   ;;  %s2782_s5 = inlined_call_operand.vmem [shape: f32[1,128], index: 5, kind: input, shape index: {}]   ;;  %s2783_s6 = inlined_call_operand.vmem [shape: f32[128,128], index: 6, kind: input, shape index: {}]   ;;  %s2784_s7 = inlined_call_operand.vmem [shape: f32[1,128], index: 7, kind: input, shape index: {}]   ;;  %s2785_s8 = inlined_call_operand.vmem [shape: f32[7,1,128], index: 8, kind: input, shape index: {}]   ;;  %s2786_s9 = inlined_call_operand.vmem [shape: f32[1,128], index: 9, kind: input, shape index: {}]   ;;  %s2787_s10 = inlined_call_operand.hbm [shape: f32[128,128], index: 10, kind: input, shape index: {}]   ;;  %s2788_s11 = inlined_call_operand.vmem [shape: f32[1,128], index: 11, kind: input, shape index: {}]   ;;  %s2789_s12 = inlined_call_operand.vmem [shape: f32[11,1,128], index: 12, kind: input, shape index: {}]   ;;  %s2790_s13 = inlined_call_operand.vmem [shape: f32[1,128], index: 13, kind: input, shape index: {}]   ;;  %s2791_s14 = inlined_call_operand.hbm [shape: f32[128,128], index: 14, kind: input, shape index: {}]   ;;  %s2792_s15 = inlined_call_operand.vmem [shape: f32[1,128], index: 15, kind: input, shape index: {}]   ;;  %s2793_s16 = inlined_call_operand.vmem [shape: f32[21,1,128], index: 16, kind: input, shape index: {}]   ;;  %s2794_s17 = inlined_call_operand.vmem [shape: f32[1,128], index: 17, kind: input, shape index: {}]   ;;  %s2795_s18 = inlined_call_operand.vmem [shape: f32[16,128], index: 18, kind: output, shape index: {0}]   ;;  %s2796_s19 = inlined_call_operand.vmem [shape: f32[16,128], index: 19, kind: output, shape index: {1}]  }
   0x1   :  { %2798 = sst [smem:[#allocation13_spill]] %s2777_s0 }
   0x2   :  { %2799 = sst [smem:[#allocation14_spill]] %s2778_s1 }
   0x3   :  { %2800 = sst [smem:[#allocation15_spill]] %s2779_s2 }
   0x4   :  { %2801 = sst [smem:[#allocation16_spill]] %s2780_s3 }
   0x5   :  { %25 = vsyncpa [#allocation4], 0 }
   0x6   :  { %26 = vsyncpa [#allocation6], 0 }
   0x7   :  { %27 = vsyncpa [#allocation9], 0  ;;  %s2338_s0 = smov [#allocation5]   ;;  %s2339_s20 = smov [#allocation3]  }
   0x8   :  { %s51_s30 = sshll.u32 %s2338_s0, 4  ;;  %s35_s21 = sshll.u32 %s2339_s20, 4  ;;  %s52_s30 = int_to_ptr.vmem [resolvable:$true] %s51_s30  ;;  %s36_s21 = int_to_ptr.vmem [resolvable:$true] %s35_s21 }
   0x9   :  { %s2260_s1 = scalar_lea.vmem %s52_s30, 10240  ;;  %p2265_p1 = scmp.lt.s32.totalorder %s52_s30, %s52_s30 }
   0xa   :  { %p2261_p0 = scmp.ne.s32.totalorder %s52_s30, %s2260_s1  ;;  %p2266_p2 = scmp.lt.s32.totalorder %s2260_s1, %s2260_s1 }
   0xc   :  { %p2267_p3 = por %p2266_p2, %p2265_p1 }
   0xe   :  { %p2268_p4 = pnand %p2267_p3, %p2261_p0 }
  0x10   :  { %2271 = shalt.err (!%p2268_p4)
}
  0x11   :  { %s2340_s22 = smov 128   ;;  %s2341_s2 = smov 8  }
  0x12   :  { %57 = dma.hbm_to_vmem [thread:$0]  %s2781_s4, 10240, %s52_s30, [#allocation6], %s2340_s22, %s2340_s22, %s2341_s2  }
  0x13   :  { %s2280_s25 = scalar_lea.vmem %s36_s21, 8192  ;;  %p2285_p6 = scmp.lt.s32.totalorder %s36_s21, %s36_s21 }
  0x14   :  { %p2281_p5 = scmp.ne.s32.totalorder %s36_s21, %s2280_s25  ;;  %p2286_p7 = scmp.lt.s32.totalorder %s2280_s25, %s2280_s25 }
  0x16   :  { %p2287_p8 = por %p2286_p7, %p2285_p6 }
  0x18   :  { %p2288_p9 = pnand %p2287_p8, %p2281_p5 }
  0x1a   :  { %2291 = shalt.err (!%p2288_p9)
}
  0x1b   :  { %s2802_s27 = sld [smem:[#allocation14_spill]]  ;;  %s2342_s28 = smov [#allocation7]  }
  0x1c   :  { %s73_s29 = sshll.u32 %s2342_s28, 4  ;;  %s2343_s0 = smov [#allocation8]   ;;  %s74_s29 = int_to_ptr.vmem [resolvable:$true] %s73_s29 }
  0x1d   :  { %s91_s20 = sshll.u32 %s2343_s0, 4  ;;  %s2300_s4 = scalar_lea.vmem %s74_s29, 2048  ;;  %s92_s20 = int_to_ptr.vmem [resolvable:$true] %s91_s20 }
  0x1e   :  { %p2301_p10 = scmp.ne.s32.totalorder %s74_s29, %s2300_s4  ;;  %p2305_p11 = scmp.lt.s32.totalorder %s74_s29, %s74_s29 }
  0x1f   :  { %p2306_p12 = scmp.lt.s32.totalorder %s2300_s4, %s2300_s4 }
  0x21   :  { %41 = dma.hbm_to_vmem [thread:$0]  %s2802_s27, 8192, %s36_s21, [#allocation4], %s2340_s22, %s2340_s22, %s2341_s2  }
  0x22   :  { %p2307_p13 = por %p2306_p12, %p2305_p11 }
  0x24   :  { %p2308_p0 = pnand %p2307_p13, %p2301_p10 }
  0x26   :  { %2311 = shalt.err (!%p2308_p0)
}
  0x27   :  { %79 = dma.hbm_to_vmem [thread:$0]  %s2787_s10, 2048, %s74_s29, [#allocation6], %s2340_s22, %s2340_s22, %s2341_s2  }
  0x28   :  { %s2320_s21 = scalar_lea.vmem %s92_s20, 2048  ;;  %p2325_p2 = scmp.lt.s32.totalorder %s92_s20, %s92_s20 }
  0x29   :  { %p2321_p1 = scmp.ne.s32.totalorder %s92_s20, %s2320_s21  ;;  %p2326_p3 = scmp.lt.s32.totalorder %s2320_s21, %s2320_s21 }
  0x2b   :  { %p2327_p4 = por %p2326_p3, %p2325_p2 }
  0x2d   :  { %p2328_p5 = pnand %p2327_p4, %p2321_p1 }
  0x2f   :  { %2331 = shalt.err (!%p2328_p5)
}
  0x30   :  { %97 = dma.hbm_to_vmem [thread:$0]  %s2791_s14, 2048, %s92_s20, [#allocation9], %s2340_s22, %s2340_s22, %s2341_s2  }
  0x31   :  { %2332 = dma.done.wait [#allocation4], 8192  }
  0x32   :  { %2333 = vsyncadd [#allocation4], 4294959104 }
  0x33   :  { %2334 = dma.done.wait [#allocation6], 12288  }
  0x34   :  { %2335 = vsyncadd [#allocation6], 4294955008 }
  0x35   :  { %2336 = dma.done.wait [#allocation9], 2048  }
  0x36   :  { %2337 = vsyncadd [#allocation9], 4294965248  ;;  %v155_v0 = vld [vmem:[#allocation3 + $0xf8] sm:$0xff]  ;;  %v154_v4 = vld [vmem:[#allocation3 + $0xf0] sm:$0xff]  ;;  %s2803_s22 = sld [smem:[#allocation13_spill]] }
  0x37   :  { %v187_v1 = vld [vmem:[#allocation3 + $0x1f8] sm:$0xff]  ;;  %1745 = vmatprep.subr.mxu0 %v155_v0  ;;  %v186_v5 = vld [vmem:[#allocation3 + $0x1f0] sm:$0xff]  ;;  %v153_v8 = vld [vmem:[#allocation3 + $0xe8] sm:$0xff]  ;;  %s2804_s14 = sld [smem:[#allocation15_spill]] }
  0x38   :  { %v139_v2 = vld [vmem:[#allocation3 + $0x78] sm:$0xff]  ;;  %1783 = vmatprep.subr.mxu1 %v187_v1  ;;  %v138_v6 = vld [vmem:[#allocation3 + $0x70] sm:$0xff]  ;;  %v185_v9 = vld [vmem:[#allocation3 + $0x1e8] sm:$0xff]  ;;  %s2805_s25 = sld [smem:[#allocation16_spill]] }
  0x39   :  { %v171_v3 = vld [vmem:[#allocation3 + $0x178] sm:$0xff]  ;;  %1746 = vmatpush3.msra.mxu0 %v139_v2  ;;  %v170_v7 = vld [vmem:[#allocation3 + $0x170] sm:$0xff]  ;;  %v137_v10 = vld [vmem:[#allocation3 + $0x68] sm:$0xff] }
  0x3a   :  { %1784 = vmatpush3.msra.mxu1 %v171_v3  ;;  %1747 = vmatprep.subr.mxu0 %v154_v4  ;;  %v169_v11 = vld [vmem:[#allocation3 + $0x168] sm:$0xff]  ;;  %v152_v12 = vld [vmem:[#allocation3 + $0xe0] sm:$0xff]  ;;  %v151_v16 = vld [vmem:[#allocation3 + $0xd8] sm:$0xff] }
  0x3b   :  { %1785 = vmatprep.subr.mxu1 %v186_v5  ;;  %1748 = vmatpush3.msra.mxu0 %v138_v6  ;;  %v184_v13 = vld [vmem:[#allocation3 + $0x1e0] sm:$0xff]  ;;  %v183_v17 = vld [vmem:[#allocation3 + $0x1d8] sm:$0xff]  ;;  %v150_v20 = vld [vmem:[#allocation3 + $0xd0] sm:$0xff] }
  0x3c   :  { %1786 = vmatpush3.msra.mxu1 %v170_v7  ;;  %1749 = vmatprep.subr.mxu0 %v153_v8  ;;  %v136_v14 = vld [vmem:[#allocation3 + $0x60] sm:$0xff]  ;;  %v135_v18 = vld [vmem:[#allocation3 + $0x58] sm:$0xff]  ;;  %v182_v21 = vld [vmem:[#allocation3 + $0x1d0] sm:$0xff] }
  0x3d   :  { %1787 = vmatprep.subr.mxu1 %v185_v9  ;;  %v168_v15 = vld [vmem:[#allocation3 + $0x160] sm:$0xff]  ;;  %1750 = vmatpush3.msra.mxu0 %v137_v10  ;;  %v167_v19 = vld [vmem:[#allocation3 + $0x158] sm:$0xff]  ;;  %v134_v22 = vld [vmem:[#allocation3 + $0x50] sm:$0xff] }
  0x3e   :  { %1788 = vmatpush3.msra.mxu1 %v169_v11  ;;  %1751 = vmatprep.subr.mxu0 %v152_v12  ;;  %v166_v23 = vld [vmem:[#allocation3 + $0x150] sm:$0xff]  ;;  %v149_v24 = vld [vmem:[#allocation3 + $0xc8] sm:$0xff]  ;;  %v148_v28 = vld [vmem:[#allocation3 + $0xc0] sm:$0xff] }
  0x3f   :  { %1789 = vmatprep.subr.mxu1 %v184_v13  ;;  %1752 = vmatpush3.msra.mxu0 %v136_v14  ;;  %v181_v25 = vld [vmem:[#allocation3 + $0x1c8] sm:$0xff]  ;;  %v180_v29 = vld [vmem:[#allocation3 + $0x1c0] sm:$0xff]  ;;  %v147_v32 = vld [vmem:[#allocation3 + $0xb8] sm:$0xff] }
  0x40   :  { %1790 = vmatpush3.msra.mxu1 %v168_v15  ;;  %1753 = vmatprep.subr.mxu0 %v151_v16  ;;  %v133_v26 = vld [vmem:[#allocation3 + $0x48] sm:$0xff]  ;;  %v132_v30 = vld [vmem:[#allocation3 + $0x40] sm:$0xff]  ;;  %v179_v33 = vld [vmem:[#allocation3 + $0x1b8] sm:$0xff] }
  0x41   :  { %1791 = vmatprep.subr.mxu1 %v183_v17  ;;  %1754 = vmatpush3.msra.mxu0 %v135_v18  ;;  %v165_v27 = vld [vmem:[#allocation3 + $0x148] sm:$0xff]  ;;  %v164_v31 = vld [vmem:[#allocation3 + $0x140] sm:$0xff]  ;;  %v131_v34 = vld [vmem:[#allocation3 + $0x38] sm:$0xff] }
  0x42   :  { %1792 = vmatpush3.msra.mxu1 %v167_v19  ;;  %1755 = vmatprep.subr.mxu0 %v150_v20  ;;  %v163_v35 = vld [vmem:[#allocation3 + $0x138] sm:$0xff]  ;;  %v146_v36 = vld [vmem:[#allocation3 + $0xb0] sm:$0xff]  ;;  %v145_v40 = vld [vmem:[#allocation3 + $0xa8] sm:$0xff] }
  0x43   :  { %1793 = vmatprep.subr.mxu1 %v182_v21  ;;  %1756 = vmatpush3.msra.mxu0 %v134_v22  ;;  %v178_v37 = vld [vmem:[#allocation3 + $0x1b0] sm:$0xff]  ;;  %v177_v41 = vld [vmem:[#allocation3 + $0x1a8] sm:$0xff]  ;;  %v144_v44 = vld [vmem:[#allocation3 + $0xa0] sm:$0xff] }
  0x44   :  { %1794 = vmatpush3.msra.mxu1 %v166_v23  ;;  %1757 = vmatprep.subr.mxu0 %v149_v24  ;;  %v130_v38 = vld [vmem:[#allocation3 + $0x30] sm:$0xff]  ;;  %v129_v42 = vld [vmem:[#allocation3 + $0x28] sm:$0xff]  ;;  %v176_v45 = vld [vmem:[#allocation3 + $0x1a0] sm:$0xff] }
  0x45   :  { %1795 = vmatprep.subr.mxu1 %v181_v25  ;;  %1758 = vmatpush3.msra.mxu0 %v133_v26  ;;  %v162_v39 = vld [vmem:[#allocation3 + $0x130] sm:$0xff]  ;;  %v161_v43 = vld [vmem:[#allocation3 + $0x128] sm:$0xff]  ;;  %v128_v46 = vld [vmem:[#allocation3 + $0x20] sm:$0xff] }
  0x46   :  { %1796 = vmatpush3.msra.mxu1 %v165_v27  ;;  %1759 = vmatprep.subr.mxu0 %v148_v28  ;;  %v160_v47 = vld [vmem:[#allocation3 + $0x120] sm:$0xff]  ;;  %v143_v48 = vld [vmem:[#allocation3 + $0x98] sm:$0xff]  ;;  %v142_v52 = vld [vmem:[#allocation3 + $0x90] sm:$0xff] }
  0x47   :  { %1797 = vmatprep.subr.mxu1 %v180_v29  ;;  %1760 = vmatpush3.msra.mxu0 %v132_v30  ;;  %v175_v49 = vld [vmem:[#allocation3 + $0x198] sm:$0xff]  ;;  %v174_v53 = vld [vmem:[#allocation3 + $0x190] sm:$0xff]  ;;  %v141_v56 = vld [vmem:[#allocation3 + $0x88] sm:$0xff]  ;;  %v2344_v30 = vmov 0.0  }
  0x48   :  { %1798 = vmatpush3.msra.mxu1 %v164_v31  ;;  %1761 = vmatprep.subr.mxu0 %v147_v32  ;;  %v127_v50 = vld [vmem:[#allocation3 + $0x18] sm:$0xff]  ;;  %v126_v54 = vld [vmem:[#allocation3 + $0x10] sm:$0xff]  ;;  %v173_v57 = vld [vmem:[#allocation3 + $0x188] sm:$0xff]  ;;  %361 = vst [vmem:[#allocation2 + $0x8] sm:$0xff] %v2344_v30 }
  0x49   :  { %1799 = vmatprep.subr.mxu1 %v179_v33  ;;  %1762 = vmatpush3.msra.mxu0 %v131_v34  ;;  %v159_v51 = vld [vmem:[#allocation3 + $0x118] sm:$0xff]  ;;  %v158_v55 = vld [vmem:[#allocation3 + $0x110] sm:$0xff]  ;;  %v125_v58 = vld [vmem:[#allocation3 + $0x8] sm:$0xff]  ;;  %363 = vst [vmem:[#allocation2 + $0x18] sm:$0xff] %v2344_v30 }
  0x4a   :  { %1800 = vmatpush3.msra.mxu1 %v163_v35  ;;  %1763 = vmatprep.subr.mxu0 %v146_v36  ;;  %v157_v59 = vld [vmem:[#allocation3 + $0x108] sm:$0xff]  ;;  %v140_v60 = vld [vmem:[#allocation3 + $0x80] sm:$0xff]  ;;  %v117_v63 = vld [vmem:[%s2803_s22 + $0x8] sm:$0xff]  ;;  %366 = vst [vmem:[#allocation2 + $0x30] sm:$0xff] %v2344_v30 }
  0x4b   :  { %1801 = vmatprep.subr.mxu1 %v178_v37  ;;  %1764 = vmatpush3.msra.mxu0 %v130_v38  ;;  %v172_v61 = vld [vmem:[#allocation3 + $0x180] sm:$0xff]  ;;  %v119_v1 = vld [vmem:[%s2803_s22 + $0x18] sm:$0xff]  ;;  %v116_v2 = vld [vmem:[%s2803_s22] sm:$0xff]  ;;  %368 = vst [vmem:[#allocation2 + $0x40] sm:$0xff] %v2344_v30 }
  0x4c   :  { %1802 = vmatpush3.msra.mxu1 %v162_v39  ;;  %1765 = vmatprep.subr.mxu0 %v145_v40  ;;  %v124_v62 = vld [vmem:[#allocation3] sm:$0xff]  ;;  %v121_v4 = vld [vmem:[%s2803_s22 + $0x28] sm:$0xff]  ;;  %v123_v5 = vld [vmem:[%s2803_s22 + $0x38] sm:$0xff] }
  0x4d   :  { %1803 = vmatprep.subr.mxu1 %v177_v41  ;;  %1766 = vmatpush3.msra.mxu0 %v129_v42  ;;  %v156_v0 = vld [vmem:[#allocation3 + $0x100] sm:$0xff]  ;;  %v389_v6 = vld [vmem:[#allocation5 + $0x78] sm:$0xff]  ;;  %v120_v8 = vld [vmem:[%s2803_s22 + $0x20] sm:$0xff] }
  0x4e   :  { %1804 = vmatpush3.msra.mxu1 %v161_v43  ;;  %1767 = vmatprep.subr.mxu0 %v144_v44  ;;  %v118_v3 = vld [vmem:[%s2803_s22 + $0x10] sm:$0xff]  ;;  %v485_v7 = vld [vmem:[#allocation5 + $0xf8] sm:$0xff]  ;;  %v388_v10 = vld [vmem:[#allocation5 + $0x70] sm:$0xff] }
  0x4f   :  { %1805 = vmatprep.subr.mxu1 %v176_v45  ;;  %1768 = vmatpush3.msra.mxu0 %v128_v46  ;;  %v122_v9 = vld [vmem:[%s2803_s22 + $0x30] sm:$0xff]  ;;  %v484_v11 = vld [vmem:[#allocation5 + $0xf0] sm:$0xff]  ;;  %v387_v12 = vld [vmem:[#allocation5 + $0x68] sm:$0xff] }
  0x50   :  { %1806 = vmatpush3.msra.mxu1 %v160_v47  ;;  %1769 = vmatprep.subr.mxu0 %v143_v48  ;;  %v483_v13 = vld [vmem:[#allocation5 + $0xe8] sm:$0xff]  ;;  %v386_v14 = vld [vmem:[#allocation5 + $0x60] sm:$0xff]  ;;  %v385_v16 = vld [vmem:[#allocation5 + $0x58] sm:$0xff] }
  0x51   :  { %1807 = vmatprep.subr.mxu1 %v175_v49  ;;  %1770 = vmatpush3.msra.mxu0 %v127_v50  ;;  %v482_v15 = vld [vmem:[#allocation5 + $0xe0] sm:$0xff]  ;;  %v481_v17 = vld [vmem:[#allocation5 + $0xd8] sm:$0xff]  ;;  %v384_v18 = vld [vmem:[#allocation5 + $0x50] sm:$0xff] }
  0x52   :  { %1808 = vmatpush3.msra.mxu1 %v159_v51  ;;  %1771 = vmatprep.subr.mxu0 %v142_v52  ;;  %v480_v19 = vld [vmem:[#allocation5 + $0xd0] sm:$0xff]  ;;  %v383_v20 = vld [vmem:[#allocation5 + $0x48] sm:$0xff]  ;;  %v382_v22 = vld [vmem:[#allocation5 + $0x40] sm:$0xff] }
  0x53   :  { %1809 = vmatprep.subr.mxu1 %v174_v53  ;;  %1772 = vmatpush3.msra.mxu0 %v126_v54  ;;  %v479_v21 = vld [vmem:[#allocation5 + $0xc8] sm:$0xff]  ;;  %v478_v23 = vld [vmem:[#allocation5 + $0xc0] sm:$0xff]  ;;  %v381_v24 = vld [vmem:[#allocation5 + $0x38] sm:$0xff] }
  0x54   :  { %1810 = vmatpush3.msra.mxu1 %v158_v55  ;;  %1773 = vmatprep.subr.mxu0 %v141_v56  ;;  %v477_v25 = vld [vmem:[#allocation5 + $0xb8] sm:$0xff]  ;;  %v380_v26 = vld [vmem:[#allocation5 + $0x30] sm:$0xff]  ;;  %v379_v28 = vld [vmem:[#allocation5 + $0x28] sm:$0xff] }
  0x55   :  { %1811 = vmatprep.subr.mxu1 %v173_v57  ;;  %1774 = vmatpush3.msra.mxu0 %v125_v58  ;;  %v476_v27 = vld [vmem:[#allocation5 + $0xb0] sm:$0xff]  ;;  %v475_v29 = vld [vmem:[#allocation5 + $0xa8] sm:$0xff]  ;;  %v378_v31 = vld [vmem:[#allocation5 + $0x20] sm:$0xff] }
  0x56   :  { %1812 = vmatpush3.msra.mxu1 %v157_v59  ;;  %1775 = vmatprep.subr.mxu0 %v140_v60  ;;  %v474_v32 = vld [vmem:[#allocation5 + $0xa0] sm:$0xff]  ;;  %v377_v33 = vld [vmem:[#allocation5 + $0x18] sm:$0xff]  ;;  %v376_v35 = vld [vmem:[#allocation5 + $0x10] sm:$0xff] }
  0x57   :  { %1813 = vmatprep.subr.mxu1 %v172_v61  ;;  %1776 = vmatpush3.msra.mxu0 %v124_v62  ;;  %v473_v34 = vld [vmem:[#allocation5 + $0x98] sm:$0xff]  ;;  %v472_v36 = vld [vmem:[#allocation5 + $0x90] sm:$0xff]  ;;  %v375_v37 = vld [vmem:[#allocation5 + $0x8] sm:$0xff] }
  0x58   :  { %252 = vmatprep.mubr.f32.mxu0 %v117_v63  ;;  %1814 = vmatpush3.msra.mxu1 %v156_v0  ;;  %v471_v38 = vld [vmem:[#allocation5 + $0x88] sm:$0xff]  ;;  %v374_v39 = vld [vmem:[#allocation5] sm:$0xff]  ;;  %v581_v41 = vld [vmem:[#allocation5 + $0x178] sm:$0xff] }
  0x59   :  { %327 = vmatprep.mubr.f32.mxu1 %v119_v1  ;;  %253 = vmatmul.mubr.f32.vlgmr.msra.gmra.mxu0 %v116_v2  ;;  %v470_v40 = vld [vmem:[#allocation5 + $0x80] sm:$0xff]  ;;  %v677_v42 = vld [vmem:[#allocation5 + $0x1f8] sm:$0xff]  ;;  %v1672_v49 = vld [vmem:[%s2804_s14] ss:$0 sm:$0xff] }
  0x5a   :  { %328 = vmatmul.mubr.f32.vlgmr.msra.gmra.mxu1 %v118_v3  ;;  %257 = vmatprep.mubr.f32.mxu0 %v121_v4  ;;  %v1673_v53 = vld [vmem:[%s2805_s25] ss:$0 sm:$0xff] }
  0x5b   :  { %332 = vmatprep.mubr.f32.mxu1 %v123_v5  ;;  %1965 = vmatprep.subr.mxu0 %v389_v6  ;;  %v580_v5 = vld [vmem:[#allocation5 + $0x170] sm:$0xff] }
  0x5c   :  { %2000 = vmatprep.subr.mxu1 %v485_v7  ;;  %1966 = vmatpush3.msra.mxu0 %v389_v6  ;;  %v676_v6 = vld [vmem:[#allocation5 + $0x1f0] sm:$0xff] }
  0x5d   :  { %2001 = vmatpush3.msra.mxu1 %v485_v7  ;;  %258 = vmatmul.mubr.f32.gmra.mxu0 %v120_v8  ;;  %v579_v8 = vld [vmem:[#allocation5 + $0x168] sm:$0xff]  ;;  %v568_v30 = vld [vmem:[#allocation5 + $0x110] sm:$0xff] }
  0x5e   :  { %333 = vmatmul.mubr.f32.gmra.mxu1 %v122_v9  ;;  %1967 = vmatprep.subr.mxu0 %v388_v10  ;;  %v675_v9 = vld [vmem:[#allocation5 + $0x1e8] sm:$0xff] }
  0x5f   :  { %2002 = vmatprep.subr.mxu1 %v484_v11  ;;  %1968 = vmatpush3.msra.mxu0 %v388_v10  ;;  %v578_v10 = vld [vmem:[#allocation5 + $0x160] sm:$0xff] }
  0x60   :  { %2003 = vmatpush3.msra.mxu1 %v484_v11  ;;  %1969 = vmatprep.subr.mxu0 %v387_v12  ;;  %v674_v11 = vld [vmem:[#allocation5 + $0x1e0] sm:$0xff] }
  0x61   :  { %2004 = vmatprep.subr.mxu1 %v483_v13  ;;  %1970 = vmatpush3.msra.mxu0 %v387_v12  ;;  %v577_v12 = vld [vmem:[#allocation5 + $0x158] sm:$0xff] }
  0x62   :  { %2005 = vmatpush3.msra.mxu1 %v483_v13  ;;  %1971 = vmatprep.subr.mxu0 %v386_v14  ;;  %v673_v13 = vld [vmem:[#allocation5 + $0x1d8] sm:$0xff] }
  0x63   :  { %2006 = vmatprep.subr.mxu1 %v482_v15  ;;  %1972 = vmatpush3.msra.mxu0 %v386_v14  ;;  %v576_v14 = vld [vmem:[#allocation5 + $0x150] sm:$0xff] }
  0x64   :  { %2007 = vmatpush3.msra.mxu1 %v482_v15  ;;  %1973 = vmatprep.subr.mxu0 %v385_v16  ;;  %v672_v15 = vld [vmem:[#allocation5 + $0x1d0] sm:$0xff] }
  0x65   :  { %2008 = vmatprep.subr.mxu1 %v481_v17  ;;  %1974 = vmatpush3.msra.mxu0 %v385_v16  ;;  %v575_v16 = vld [vmem:[#allocation5 + $0x148] sm:$0xff] }
  0x66   :  { %2009 = vmatpush3.msra.mxu1 %v481_v17  ;;  %1975 = vmatprep.subr.mxu0 %v384_v18  ;;  %v671_v17 = vld [vmem:[#allocation5 + $0x1c8] sm:$0xff] }
  0x67   :  { %2010 = vmatprep.subr.mxu1 %v480_v19  ;;  %1976 = vmatpush3.msra.mxu0 %v384_v18  ;;  %v574_v18 = vld [vmem:[#allocation5 + $0x140] sm:$0xff] }
  0x68   :  { %2011 = vmatpush3.msra.mxu1 %v480_v19  ;;  %1977 = vmatprep.subr.mxu0 %v383_v20  ;;  %v670_v19 = vld [vmem:[#allocation5 + $0x1c0] sm:$0xff] }
  0x69   :  { %2012 = vmatprep.subr.mxu1 %v479_v21  ;;  %1978 = vmatpush3.msra.mxu0 %v383_v20  ;;  %v573_v20 = vld [vmem:[#allocation5 + $0x138] sm:$0xff] }
  0x6a   :  { %2013 = vmatpush3.msra.mxu1 %v479_v21  ;;  %1979 = vmatprep.subr.mxu0 %v382_v22  ;;  %v669_v21 = vld [vmem:[#allocation5 + $0x1b8] sm:$0xff] }
  0x6b   :  { %2014 = vmatprep.subr.mxu1 %v478_v23  ;;  %1980 = vmatpush3.msra.mxu0 %v382_v22  ;;  %v572_v22 = vld [vmem:[#allocation5 + $0x130] sm:$0xff] }
  0x6c   :  { %2015 = vmatpush3.msra.mxu1 %v478_v23  ;;  %1981 = vmatprep.subr.mxu0 %v381_v24  ;;  %v668_v23 = vld [vmem:[#allocation5 + $0x1b0] sm:$0xff] }
  0x6d   :  { %2016 = vmatprep.subr.mxu1 %v477_v25  ;;  %1982 = vmatpush3.msra.mxu0 %v381_v24  ;;  %v571_v24 = vld [vmem:[#allocation5 + $0x128] sm:$0xff] }
  0x6e   :  { %2017 = vmatpush3.msra.mxu1 %v477_v25  ;;  %1983 = vmatprep.subr.mxu0 %v380_v26  ;;  %v667_v25 = vld [vmem:[#allocation5 + $0x1a8] sm:$0xff] }
  0x6f   :  { %2018 = vmatprep.subr.mxu1 %v476_v27  ;;  %1984 = vmatpush3.msra.mxu0 %v380_v26  ;;  %v570_v26 = vld [vmem:[#allocation5 + $0x120] sm:$0xff] }
  0x70   :  { %2019 = vmatpush3.msra.mxu1 %v476_v27  ;;  %1985 = vmatprep.subr.mxu0 %v379_v28  ;;  %v666_v27 = vld [vmem:[#allocation5 + $0x1a0] sm:$0xff] }
  0x71   :  { %2020 = vmatprep.subr.mxu1 %v475_v29  ;;  %1986 = vmatpush3.msra.mxu0 %v379_v28  ;;  %v569_v28 = vld [vmem:[#allocation5 + $0x118] sm:$0xff] }
  0x72   :  { %2021 = vmatpush3.msra.mxu1 %v475_v29  ;;  %1987 = vmatprep.subr.mxu0 %v378_v31  ;;  %v665_v29 = vld [vmem:[#allocation5 + $0x198] sm:$0xff] }
  0x73   :  { %2022 = vmatprep.subr.mxu1 %v474_v32  ;;  %1988 = vmatpush3.msra.mxu0 %v378_v31  ;;  %v664_v31 = vld [vmem:[#allocation5 + $0x190] sm:$0xff] }
  0x74   :  { %2023 = vmatpush3.msra.mxu1 %v474_v32  ;;  %1989 = vmatprep.subr.mxu0 %v377_v33  ;;  %v567_v32 = vld [vmem:[#allocation5 + $0x108] sm:$0xff] }
  0x75   :  { %2024 = vmatprep.subr.mxu1 %v473_v34  ;;  %1990 = vmatpush3.msra.mxu0 %v377_v33  ;;  %v663_v33 = vld [vmem:[#allocation5 + $0x188] sm:$0xff] }
  0x76   :  { %2025 = vmatpush3.msra.mxu1 %v473_v34  ;;  %1991 = vmatprep.subr.mxu0 %v376_v35  ;;  %v566_v34 = vld [vmem:[#allocation5 + $0x100] sm:$0xff] }
  0x77   :  { %2026 = vmatprep.subr.mxu1 %v472_v36  ;;  %1992 = vmatpush3.msra.mxu0 %v376_v35  ;;  %v662_v35 = vld [vmem:[#allocation5 + $0x180] sm:$0xff] }
  0x78   :  { %2027 = vmatpush3.msra.mxu1 %v472_v36  ;;  %1993 = vmatprep.subr.mxu0 %v375_v37  ;;  %v773_v36 = vld [vmem:[#allocation5 + $0x278] sm:$0xff] }
  0x79   :  { %2028 = vmatprep.subr.mxu1 %v471_v38  ;;  %1994 = vmatpush3.msra.mxu0 %v375_v37 }
  0x7a   :  { %2029 = vmatpush3.msra.mxu1 %v471_v38  ;;  %1995 = vmatprep.subr.mxu0 %v374_v39 }
  0x7b   :  { %2030 = vmatprep.subr.mxu1 %v470_v40  ;;  %1996 = vmatpush3.msra.mxu0 %v374_v39  ;;  %v772_v39 = vld [vmem:[#allocation5 + $0x270] sm:$0xff] }
  0x7c   :  { %2031 = vmatpush3.msra.mxu1 %v470_v40  ;;  %2035 = vmatprep.subr.mxu0 %v581_v41  ;;  %v771_v40 = vld [vmem:[#allocation5 + $0x268] sm:$0xff] }
  0x7d   :  { %2070 = vmatprep.subr.mxu1 %v677_v42 }
 0x119   :  { %v1777_v43 = vpop.f32.mrf.mxu0 }
 0x11a   :  { %v1815_v44 = vpop.f32.mrf.mxu1 }
 0x11b   :  { %v1778_v45 = vpop.f32.mrf.mxu0 }
 0x11c   :  { %v1816_v46 = vpop.f32.mrf.mxu1  ;;  %v1779_v47 = vadd.f32 %v1778_v45, %v1777_v43  ;;  %v768_v43 = vld [vmem:[#allocation5 + $0x250] sm:$0xff]  ;;  %v766_v45 = vld [vmem:[#allocation5 + $0x240] sm:$0xff] }
 0x11d   :  { %v1817_v48 = vadd.f32 %v1816_v46, %v1815_v44  ;;  %v1780_v50 = vpop.f32.mrf.mxu0  ;;  %v767_v44 = vld [vmem:[#allocation5 + $0x248] sm:$0xff]  ;;  %v765_v46 = vld [vmem:[#allocation5 + $0x238] sm:$0xff] }
 0x11e   :  { %v1818_v51 = vpop.f32.mrf.mxu1 }
 0x11f   :  { %v330_v52 = vadd.f32 %v1817_v48, %v1779_v47  ;;  %v1781_v54 = vpop.f32.mrf.mxu0  ;;  %v764_v47 = vld [vmem:[#allocation5 + $0x230] sm:$0xff]  ;;  %v763_v48 = vld [vmem:[#allocation5 + $0x228] sm:$0xff] }
 0x120   :  { %v1819_v55 = vpop.f32.mrf.mxu1  ;;  %v1782_v57 = vadd.f32 %v1781_v54, %v1780_v50  ;;  %v761_v50 = vld [vmem:[#allocation5 + $0x218] sm:$0xff] }
 0x121   :  { %v345_v56 = vmul.f32 %v1672_v49, %v330_v52  ;;  %v1820_v58 = vadd.f32 %v1819_v55, %v1818_v51  ;;  %v760_v51 = vld [vmem:[#allocation5 + $0x210] sm:$0xff]  ;;  %v759_v52 = vld [vmem:[#allocation5 + $0x208] sm:$0xff] }
 0x122   :  { %v875_v55 = vld [vmem:[%s2783_s6 + $0x78] sm:$0xff] }
 0x123   :  { %v354_v59 = vadd.f32 %v1673_v53, %v345_v56  ;;  %v335_v60 = vadd.f32 %v1820_v58, %v1782_v57  ;;  %v1083_v56 = vld [vmem:[#allocation7 + $0x78] sm:$0xff]  ;;  %v874_v57 = vld [vmem:[%s2783_s6 + $0x70] sm:$0xff]  ;;  %v1082_v58 = vld [vmem:[#allocation7 + $0x70] sm:$0xff] }
 0x125   :  { %v356_v61 = vmax.f32 %v354_v59, 0.0  ;;  %v346_v62 = vmul.f32 %v1672_v49, %v335_v60  ;;  %v762_v49 = vld [vmem:[#allocation5 + $0x220] sm:$0xff]  ;;  %v873_v59 = vld [vmem:[%s2783_s6 + $0x68] sm:$0xff]  ;;  %v1081_v60 = vld [vmem:[#allocation7 + $0x68] sm:$0xff] }
 0x127   :  { %358 = vst [vmem:[%s2795_s18] sm:$0xff] %v356_v61  ;;  %370 = vst [vmem:[#allocation2 + $0x10] sm:$0xff] %v356_v61  ;;  %v355_v63 = vadd.f32 %v1673_v53, %v346_v62  ;;  %v758_v53 = vld [vmem:[#allocation5 + $0x200] sm:$0xff] }
 0x128   :  { %v1080_v62 = vld [vmem:[#allocation7 + $0x60] sm:$0xff] }
 0x129   :  { %v2502_v0 = vmax.f32 %v355_v63, 0.0  ;;  %v871_v63 = vld [vmem:[%s2783_s6 + $0x58] sm:$0xff] }
 0x12b   :  { %359 = vst [vmem:[%s2795_s18 + $0x8] sm:$0xff] %v2502_v0  ;;  %371 = vst [vmem:[#allocation2 + $0x38] sm:$0xff] %v2502_v0 }
 0x12e   :  { %v372_v1 = vld [vmem:[#allocation2 + $0xe] sm:$0xff] }
 0x12f   :  { %v467_v2 = vld [vmem:[#allocation2 + $0xf] sm:$0xff]  ;;  %1997 = vmatprep.mubr.f32.mxu0 %v372_v1 }
 0x130   :  { %2032 = vmatprep.mubr.f32.mxu1 %v467_v2  ;;  %v659_v7 = vld [vmem:[#allocation2 + $0x11] sm:$0xff]  ;;  %v1078_v2 = vld [vmem:[#allocation7 + $0x50] sm:$0xff] }
 0x131   :  { %v755_v38 = vld [vmem:[#allocation2 + $0x12] sm:$0xff] }
 0x132   :  { %v373_v3 = vld [vmem:[#allocation2 + $0x36] sm:$0xff] }
 0x133   :  { %v468_v4 = vld [vmem:[#allocation2 + $0x37] sm:$0xff]  ;;  %1998 = vmatmul.mubr.f32.vlgmr.msra.gmra.mxu0 %v373_v3  ;;  %v869_v3 = vld [vmem:[%s2783_s6 + $0x48] sm:$0xff] }
 0x134   :  { %2033 = vmatmul.mubr.f32.vlgmr.msra.gmra.mxu1 %v468_v4  ;;  %2036 = vmatpush3.msra.mxu0 %v581_v41  ;;  %v660_v37 = vld [vmem:[#allocation2 + $0x39] sm:$0xff]  ;;  %v770_v41 = vld [vmem:[#allocation5 + $0x260] sm:$0xff] }
 0x135   :  { %2071 = vmatpush3.msra.mxu1 %v677_v42  ;;  %2037 = vmatprep.subr.mxu0 %v580_v5  ;;  %v769_v42 = vld [vmem:[#allocation5 + $0x258] sm:$0xff]  ;;  %v756_v54 = vld [vmem:[#allocation2 + $0x3a] sm:$0xff]  ;;  %v870_v1 = vld [vmem:[%s2783_s6 + $0x50] sm:$0xff] }
 0x136   :  { %2067 = vmatprep.mubr.f32.mxu0 %v356_v61  ;;  %2072 = vmatprep.subr.mxu1 %v676_v6  ;;  %v872_v61 = vld [vmem:[%s2783_s6 + $0x60] sm:$0xff]  ;;  %v1077_v4 = vld [vmem:[#allocation7 + $0x48] sm:$0xff] }
 0x137   :  { %2102 = vmatprep.mubr.f32.mxu1 %v659_v7  ;;  %2038 = vmatpush3.msra.mxu0 %v580_v5  ;;  %v868_v5 = vld [vmem:[%s2783_s6 + $0x40] sm:$0xff]  ;;  %v867_v7 = vld [vmem:[%s2783_s6 + $0x38] sm:$0xff] }
 0x138   :  { %2073 = vmatpush3.msra.mxu1 %v676_v6  ;;  %2039 = vmatprep.subr.mxu0 %v579_v8  ;;  %v1076_v6 = vld [vmem:[#allocation7 + $0x40] sm:$0xff] }
 0x139   :  { %2074 = vmatprep.subr.mxu1 %v675_v9  ;;  %2040 = vmatpush3.msra.mxu0 %v579_v8  ;;  %v1075_v8 = vld [vmem:[#allocation7 + $0x38] sm:$0xff] }
 0x13a   :  { %2075 = vmatpush3.msra.mxu1 %v675_v9  ;;  %2041 = vmatprep.subr.mxu0 %v578_v10  ;;  %v866_v9 = vld [vmem:[%s2783_s6 + $0x30] sm:$0xff] }
 0x13b   :  { %2076 = vmatprep.subr.mxu1 %v674_v11  ;;  %2042 = vmatpush3.msra.mxu0 %v578_v10  ;;  %v1074_v10 = vld [vmem:[#allocation7 + $0x30] sm:$0xff] }
 0x13c   :  { %2077 = vmatpush3.msra.mxu1 %v674_v11  ;;  %2043 = vmatprep.subr.mxu0 %v577_v12  ;;  %v865_v11 = vld [vmem:[%s2783_s6 + $0x28] sm:$0xff] }
 0x13d   :  { %2078 = vmatprep.subr.mxu1 %v673_v13  ;;  %2044 = vmatpush3.msra.mxu0 %v577_v12  ;;  %v1073_v12 = vld [vmem:[#allocation7 + $0x28] sm:$0xff] }
 0x13e   :  { %2079 = vmatpush3.msra.mxu1 %v673_v13  ;;  %2045 = vmatprep.subr.mxu0 %v576_v14  ;;  %v864_v13 = vld [vmem:[%s2783_s6 + $0x20] sm:$0xff] }
 0x13f   :  { %2080 = vmatprep.subr.mxu1 %v672_v15  ;;  %2046 = vmatpush3.msra.mxu0 %v576_v14  ;;  %v1072_v14 = vld [vmem:[#allocation7 + $0x20] sm:$0xff] }
 0x140   :  { %2081 = vmatpush3.msra.mxu1 %v672_v15  ;;  %2047 = vmatprep.subr.mxu0 %v575_v16  ;;  %v863_v15 = vld [vmem:[%s2783_s6 + $0x18] sm:$0xff] }
 0x141   :  { %2082 = vmatprep.subr.mxu1 %v671_v17  ;;  %2048 = vmatpush3.msra.mxu0 %v575_v16  ;;  %v1071_v16 = vld [vmem:[#allocation7 + $0x18] sm:$0xff] }
 0x142   :  { %2083 = vmatpush3.msra.mxu1 %v671_v17  ;;  %2049 = vmatprep.subr.mxu0 %v574_v18  ;;  %v862_v17 = vld [vmem:[%s2783_s6 + $0x10] sm:$0xff] }
 0x143   :  { %2084 = vmatprep.subr.mxu1 %v670_v19  ;;  %2050 = vmatpush3.msra.mxu0 %v574_v18  ;;  %v1070_v18 = vld [vmem:[#allocation7 + $0x10] sm:$0xff] }
 0x144   :  { %2085 = vmatpush3.msra.mxu1 %v670_v19  ;;  %2051 = vmatprep.subr.mxu0 %v573_v20  ;;  %v861_v19 = vld [vmem:[%s2783_s6 + $0x8] sm:$0xff] }
 0x145   :  { %2086 = vmatprep.subr.mxu1 %v669_v21  ;;  %2052 = vmatpush3.msra.mxu0 %v573_v20  ;;  %v1069_v20 = vld [vmem:[#allocation7 + $0x8] sm:$0xff] }
 0x146   :  { %2087 = vmatpush3.msra.mxu1 %v669_v21  ;;  %2053 = vmatprep.subr.mxu0 %v572_v22  ;;  %v860_v21 = vld [vmem:[%s2783_s6] sm:$0xff] }
 0x147   :  { %2088 = vmatprep.subr.mxu1 %v668_v23  ;;  %2054 = vmatpush3.msra.mxu0 %v572_v22  ;;  %v1068_v22 = vld [vmem:[#allocation7] sm:$0xff] }
 0x148   :  { %2089 = vmatpush3.msra.mxu1 %v668_v23  ;;  %2055 = vmatprep.subr.mxu0 %v571_v24  ;;  %v1347_v23 = vld [vmem:[#allocation8 + $0x78] sm:$0xff] }
 0x149   :  { %2090 = vmatprep.subr.mxu1 %v667_v25  ;;  %2056 = vmatpush3.msra.mxu0 %v571_v24 }
 0x14a   :  { %2091 = vmatpush3.msra.mxu1 %v667_v25  ;;  %2057 = vmatprep.subr.mxu0 %v570_v26 }
 0x14b   :  { %2092 = vmatprep.subr.mxu1 %v666_v27  ;;  %2058 = vmatpush3.msra.mxu0 %v570_v26 }
 0x14c   :  { %2093 = vmatpush3.msra.mxu1 %v666_v27  ;;  %2059 = vmatprep.subr.mxu0 %v569_v28 }
 0x14d   :  { %2094 = vmatprep.subr.mxu1 %v665_v29  ;;  %2060 = vmatpush3.msra.mxu0 %v569_v28 }
 0x14e   :  { %2095 = vmatpush3.msra.mxu1 %v665_v29  ;;  %2061 = vmatprep.subr.mxu0 %v568_v30 }
 0x14f   :  { %2096 = vmatprep.subr.mxu1 %v664_v31  ;;  %2062 = vmatpush3.msra.mxu0 %v568_v30 }
 0x150   :  { %2097 = vmatpush3.msra.mxu1 %v664_v31  ;;  %2063 = vmatprep.subr.mxu0 %v567_v32 }
 0x151   :  { %2098 = vmatprep.subr.mxu1 %v663_v33  ;;  %2064 = vmatpush3.msra.mxu0 %v567_v32 }
 0x152   :  { %2099 = vmatpush3.msra.mxu1 %v663_v33  ;;  %2065 = vmatprep.subr.mxu0 %v566_v34 }
 0x153   :  { %2100 = vmatprep.subr.mxu1 %v662_v35  ;;  %2066 = vmatpush3.msra.mxu0 %v566_v34 }
 0x154   :  { %2101 = vmatpush3.msra.mxu1 %v662_v35  ;;  %2068 = vmatmul.mubr.f32.vlgmr.msra.gmra.mxu0 %v2502_v0  ;;  %v1079_v0 = vld [vmem:[#allocation7 + $0x58] sm:$0xff] }
 0x155   :  { %2103 = vmatmul.mubr.f32.vlgmr.msra.gmra.mxu1 %v660_v37  ;;  %2105 = vmatprep.subr.mxu0 %v773_v36 }
 0x156   :  { %2137 = vmatprep.mubr.f32.mxu0 %v755_v38  ;;  %2106 = vmatpush3.msra.mxu0 %v773_v36 }
 0x157   :  { %2107 = vmatprep.subr.mxu0 %v772_v39  ;;  %2140 = vmatprep.subr.mxu1 %v875_v55 }
 0x158   :  { %2108 = vmatpush3.msra.mxu0 %v772_v39  ;;  %2141 = vmatpush3.msra.mxu1 %v875_v55  ;;  %v1336_v55 = vld [vmem:[#allocation8 + $0x20] sm:$0xff] }
 0x159   :  { %2109 = vmatprep.subr.mxu0 %v771_v40  ;;  %2142 = vmatprep.subr.mxu1 %v874_v57 }
 0x15a   :  { %2110 = vmatpush3.msra.mxu0 %v771_v40  ;;  %2143 = vmatpush3.msra.mxu1 %v874_v57  ;;  %v1334_v57 = vld [vmem:[#allocation8 + $0x10] sm:$0xff] }
 0x15b   :  { %2111 = vmatprep.subr.mxu0 %v770_v41  ;;  %2144 = vmatprep.subr.mxu1 %v873_v59 }
 0x15c   :  { %2112 = vmatpush3.msra.mxu0 %v770_v41  ;;  %2145 = vmatpush3.msra.mxu1 %v873_v59  ;;  %v1674_v41 = vld [vmem:[%s2782_s5] ss:$0 sm:$0xff]  ;;  %v1332_v59 = vld [vmem:[#allocation8] sm:$0xff] }
 0x15d   :  { %2113 = vmatprep.subr.mxu0 %v769_v42  ;;  %2146 = vmatprep.subr.mxu1 %v872_v61 }
 0x15e   :  { %2114 = vmatpush3.msra.mxu0 %v769_v42  ;;  %2147 = vmatpush3.msra.mxu1 %v872_v61 }
 0x15f   :  { %2115 = vmatprep.subr.mxu0 %v768_v43  ;;  %2148 = vmatprep.subr.mxu1 %v871_v63 }
 0x160   :  { %2116 = vmatpush3.msra.mxu0 %v768_v43  ;;  %2149 = vmatpush3.msra.mxu1 %v871_v63 }
 0x161   :  { %2117 = vmatprep.subr.mxu0 %v767_v44  ;;  %2150 = vmatprep.subr.mxu1 %v870_v1 }
 0x162   :  { %2118 = vmatpush3.msra.mxu0 %v767_v44  ;;  %2151 = vmatpush3.msra.mxu1 %v870_v1 }
 0x163   :  { %2119 = vmatprep.subr.mxu0 %v766_v45  ;;  %2152 = vmatprep.subr.mxu1 %v869_v3 }
 0x164   :  { %2120 = vmatpush3.msra.mxu0 %v766_v45  ;;  %2153 = vmatpush3.msra.mxu1 %v869_v3  ;;  %v1346_v45 = vld [vmem:[#allocation8 + $0x70] sm:$0xff] }
 0x165   :  { %2121 = vmatprep.subr.mxu0 %v765_v46  ;;  %2154 = vmatprep.subr.mxu1 %v868_v5 }
 0x166   :  { %2122 = vmatpush3.msra.mxu0 %v765_v46  ;;  %2155 = vmatpush3.msra.mxu1 %v868_v5  ;;  %v1345_v46 = vld [vmem:[#allocation8 + $0x68] sm:$0xff] }
 0x167   :  { %2123 = vmatprep.subr.mxu0 %v764_v47  ;;  %2156 = vmatprep.subr.mxu1 %v867_v7 }
 0x168   :  { %2124 = vmatpush3.msra.mxu0 %v764_v47  ;;  %2157 = vmatpush3.msra.mxu1 %v867_v7  ;;  %v1344_v47 = vld [vmem:[#allocation8 + $0x60] sm:$0xff] }
 0x169   :  { %2125 = vmatprep.subr.mxu0 %v763_v48  ;;  %2158 = vmatprep.subr.mxu1 %v866_v9 }
 0x16a   :  { %2126 = vmatpush3.msra.mxu0 %v763_v48  ;;  %2159 = vmatpush3.msra.mxu1 %v866_v9  ;;  %v1343_v48 = vld [vmem:[#allocation8 + $0x58] sm:$0xff] }
 0x16b   :  { %2127 = vmatprep.subr.mxu0 %v762_v49  ;;  %2160 = vmatprep.subr.mxu1 %v865_v11 }
 0x16c   :  { %2128 = vmatpush3.msra.mxu0 %v762_v49  ;;  %2161 = vmatpush3.msra.mxu1 %v865_v11  ;;  %v1342_v49 = vld [vmem:[#allocation8 + $0x50] sm:$0xff] }
 0x16d   :  { %2129 = vmatprep.subr.mxu0 %v761_v50  ;;  %2162 = vmatprep.subr.mxu1 %v864_v13 }
 0x16e   :  { %2130 = vmatpush3.msra.mxu0 %v761_v50  ;;  %2163 = vmatpush3.msra.mxu1 %v864_v13  ;;  %v1341_v50 = vld [vmem:[#allocation8 + $0x48] sm:$0xff] }
 0x16f   :  { %2131 = vmatprep.subr.mxu0 %v760_v51  ;;  %2164 = vmatprep.subr.mxu1 %v863_v15 }
 0x170   :  { %2132 = vmatpush3.msra.mxu0 %v760_v51  ;;  %2165 = vmatpush3.msra.mxu1 %v863_v15  ;;  %v1340_v51 = vld [vmem:[#allocation8 + $0x40] sm:$0xff] }
 0x171   :  { %2133 = vmatprep.subr.mxu0 %v759_v52  ;;  %2166 = vmatprep.subr.mxu1 %v862_v17 }
 0x172   :  { %2134 = vmatpush3.msra.mxu0 %v759_v52  ;;  %2167 = vmatpush3.msra.mxu1 %v862_v17  ;;  %v1339_v52 = vld [vmem:[#allocation8 + $0x38] sm:$0xff] }
 0x173   :  { %2135 = vmatprep.subr.mxu0 %v758_v53  ;;  %2168 = vmatprep.subr.mxu1 %v861_v19 }
 0x174   :  { %2136 = vmatpush3.msra.mxu0 %v758_v53  ;;  %2169 = vmatpush3.msra.mxu1 %v861_v19  ;;  %v1338_v53 = vld [vmem:[#allocation8 + $0x30] sm:$0xff] }
 0x175   :  { %2138 = vmatmul.mubr.f32.vlgmr.msra.gmra.mxu0 %v756_v54  ;;  %2175 = vmatprep.subr.mxu0 %v1083_v56  ;;  %v1337_v54 = vld [vmem:[#allocation8 + $0x28] sm:$0xff] }
 0x176   :  { %2176 = vmatpush3.msra.mxu0 %v1083_v56  ;;  %2170 = vmatprep.subr.mxu1 %v860_v21  ;;  %v1335_v56 = vld [vmem:[#allocation8 + $0x18] sm:$0xff] }
 0x177   :  { %2177 = vmatprep.subr.mxu0 %v1082_v58  ;;  %2171 = vmatpush3.msra.mxu1 %v860_v21  ;;  %v1693_v21 = vld [vmem:[%s2789_s12 + $0x1] ss:$0 sm:$0xff] }
 0x178   :  { %2178 = vmatpush3.msra.mxu0 %v1082_v58  ;;  %2210 = vmatprep.subr.mxu1 %v1347_v23  ;;  %v1333_v58 = vld [vmem:[#allocation8 + $0x8] sm:$0xff] }
 0x179   :  { %2179 = vmatprep.subr.mxu0 %v1081_v60 }
 0x17a   :  { %2180 = vmatpush3.msra.mxu0 %v1081_v60  ;;  %v1675_v60 = vld [vmem:[%s2784_s7] ss:$0 sm:$0xff] }
 0x17b   :  { %2181 = vmatprep.subr.mxu0 %v1080_v62 }
 0x17c   :  { %2182 = vmatpush3.msra.mxu0 %v1080_v62 }
 0x17d   :  { %2183 = vmatprep.subr.mxu0 %v1079_v0 }
 0x17e   :  { %2184 = vmatpush3.msra.mxu0 %v1079_v0 }
 0x17f   :  { %2185 = vmatprep.subr.mxu0 %v1078_v2 }
 0x180   :  { %2186 = vmatpush3.msra.mxu0 %v1078_v2  ;;  %v1690_v2 = vld [vmem:[%s2788_s11] ss:$0 sm:$0xff] }
 0x181   :  { %2187 = vmatprep.subr.mxu0 %v1077_v4 }
 0x182   :  { %2188 = vmatpush3.msra.mxu0 %v1077_v4 }
 0x183   :  { %2189 = vmatprep.subr.mxu0 %v1076_v6 }
 0x184   :  { %2190 = vmatpush3.msra.mxu0 %v1076_v6 }
 0x185   :  { %2191 = vmatprep.subr.mxu0 %v1075_v8 }
 0x186   :  { %2192 = vmatpush3.msra.mxu0 %v1075_v8 }
 0x187   :  { %2193 = vmatprep.subr.mxu0 %v1074_v10 }
 0x188   :  { %2194 = vmatpush3.msra.mxu0 %v1074_v10 }
 0x189   :  { %2195 = vmatprep.subr.mxu0 %v1073_v12 }
 0x18a   :  { %2196 = vmatpush3.msra.mxu0 %v1073_v12 }
 0x18b   :  { %2197 = vmatprep.subr.mxu0 %v1072_v14 }
 0x18c   :  { %2198 = vmatpush3.msra.mxu0 %v1072_v14 }
 0x18d   :  { %2199 = vmatprep.subr.mxu0 %v1071_v16 }
 0x18e   :  { %2200 = vmatpush3.msra.mxu0 %v1071_v16 }
 0x18f   :  { %2201 = vmatprep.subr.mxu0 %v1070_v18 }
 0x190   :  { %2202 = vmatpush3.msra.mxu0 %v1070_v18  ;;  %v1691_v18 = vld [vmem:[%s2789_s12] ss:$0 sm:$0xff] }
 0x191   :  { %2203 = vmatprep.subr.mxu0 %v1069_v20 }
 0x192   :  { %2204 = vmatpush3.msra.mxu0 %v1069_v20 }
 0x193   :  { %2205 = vmatprep.subr.mxu0 %v1068_v22 }
 0x194   :  { %2206 = vmatpush3.msra.mxu0 %v1068_v22 }
 0x1f3   :  { %v1999_v24 = vpop.f32.mrf.mxu0 }
 0x1f4   :  { %v2034_v25 = vpop.f32.mrf.mxu1 }
 0x1f5   :  { %v456_v26 = vpop.f32.mrf.mxu0  ;;  %v562_v29 = vadd.f32 %v2034_v25, %v1999_v24 }
 0x1f6   :  { %v552_v28 = vpop.f32.mrf.mxu1 }
 0x1f7   :  { %v561_v31 = vadd.f32 %v552_v28, %v456_v26 }
 0x214   :  { %v2069_v27 = vpop.f32.mrf.mxu0 }
 0x215   :  { %v658_v32 = vadd.f32 %v2069_v27, %v562_v29  ;;  %v2104_v33 = vpop.f32.mrf.mxu1  ;;  %v1695_v27 = vld [vmem:[%s2789_s12 + $0x2] ss:$0 sm:$0xff] }
 0x216   :  { %v648_v30 = vpop.f32.mrf.mxu0 }
 0x217   :  { %v657_v34 = vadd.f32 %v648_v30, %v561_v31  ;;  %v754_v35 = vadd.f32 %v2104_v33, %v658_v32  ;;  %v744_v36 = vpop.f32.mrf.mxu1  ;;  %v1713_v31 = vld [vmem:[%s2792_s15] ss:$0 sm:$0xff]  ;;  %v1697_v33 = vld [vmem:[%s2789_s12 + $0x3] ss:$0 sm:$0xff] }
 0x219   :  { %v753_v38 = vadd.f32 %v744_v36, %v657_v34 }
 0x235   :  { %v2139_v37 = vpop.f32.mrf.mxu0 }
 0x236   :  { %v850_v39 = vadd.f32 %v2139_v37, %v754_v35 }
 0x237   :  { %v840_v40 = vpop.f32.mrf.mxu0 }
 0x238   :  { %v849_v42 = vadd.f32 %v840_v40, %v753_v38  ;;  %v2563_v44 = vadd.f32 %v1674_v41, %v850_v39 }
 0x23a   :  { %v2561_v43 = vadd.f32 %v1674_v41, %v849_v42 }
 0x23c   :  { %2172 = vmatprep.mubr.f32.mxu1 %v2561_v43  ;;  %2207 = vmatprep.mubr.f32.mxu0 %v2561_v43 }
 0x23d   :  { %2173 = vmatmul.mubr.f32.vlgmr.msra.gmra.mxu1 %v2563_v44  ;;  %2208 = vmatmul.mubr.f32.vlgmr.msra.gmra.mxu0 %v2563_v44 }
 0x23e   :  { %2211 = vmatpush3.msra.mxu1 %v1347_v23  ;;  %2242 = vmatprep.mubr.f32.mxu1 %v2561_v43 }
 0x23f   :  { %2212 = vmatprep.subr.mxu1 %v1346_v45 }
 0x240   :  { %2213 = vmatpush3.msra.mxu1 %v1346_v45  ;;  %v1676_v45 = vld [vmem:[%s2785_s8] ss:$0 sm:$0xff] }
 0x241   :  { %2214 = vmatprep.subr.mxu1 %v1345_v46 }
 0x242   :  { %2215 = vmatpush3.msra.mxu1 %v1345_v46  ;;  %v1678_v46 = vld [vmem:[%s2785_s8 + $0x1] ss:$0 sm:$0xff] }
 0x243   :  { %2216 = vmatprep.subr.mxu1 %v1344_v47 }
 0x244   :  { %2217 = vmatpush3.msra.mxu1 %v1344_v47  ;;  %v1699_v47 = vld [vmem:[%s2789_s12 + $0x4] ss:$0 sm:$0xff] }
 0x245   :  { %2218 = vmatprep.subr.mxu1 %v1343_v48 }
 0x246   :  { %2219 = vmatpush3.msra.mxu1 %v1343_v48 }
 0x247   :  { %2220 = vmatprep.subr.mxu1 %v1342_v49 }
 0x248   :  { %2221 = vmatpush3.msra.mxu1 %v1342_v49 }
 0x249   :  { %2222 = vmatprep.subr.mxu1 %v1341_v50 }
 0x24a   :  { %2223 = vmatpush3.msra.mxu1 %v1341_v50 }
 0x24b   :  { %2224 = vmatprep.subr.mxu1 %v1340_v51 }
 0x24c   :  { %2225 = vmatpush3.msra.mxu1 %v1340_v51 }
 0x24d   :  { %2226 = vmatprep.subr.mxu1 %v1339_v52 }
 0x24e   :  { %2227 = vmatpush3.msra.mxu1 %v1339_v52 }
 0x24f   :  { %2228 = vmatprep.subr.mxu1 %v1338_v53 }
 0x250   :  { %2229 = vmatpush3.msra.mxu1 %v1338_v53 }
 0x251   :  { %2230 = vmatprep.subr.mxu1 %v1337_v54 }
 0x252   :  { %2231 = vmatpush3.msra.mxu1 %v1337_v54 }
 0x253   :  { %2232 = vmatprep.subr.mxu1 %v1336_v55 }
 0x254   :  { %2233 = vmatpush3.msra.mxu1 %v1336_v55 }
 0x255   :  { %2234 = vmatprep.subr.mxu1 %v1335_v56 }
 0x256   :  { %2235 = vmatpush3.msra.mxu1 %v1335_v56 }
 0x257   :  { %2236 = vmatprep.subr.mxu1 %v1334_v57 }
 0x258   :  { %2237 = vmatpush3.msra.mxu1 %v1334_v57 }
 0x259   :  { %2238 = vmatprep.subr.mxu1 %v1333_v58 }
 0x25a   :  { %2239 = vmatpush3.msra.mxu1 %v1333_v58 }
 0x25b   :  { %2240 = vmatprep.subr.mxu1 %v1332_v59 }
 0x25c   :  { %2241 = vmatpush3.msra.mxu1 %v1332_v59 }
 0x25d   :  { %2243 = vmatmul.mubr.f32.vlgmr.msra.gmra.mxu1 %v2563_v44 }
 0x2fd   :  { %v2174_v61 = vpop.f32.mrf.mxu1  ;;  %v2209_v1 = vpop.f32.mrf.mxu0 }
 0x2fe   :  { %v2574_v62 = vadd.f32 %v2174_v61, %v1675_v60  ;;  %v2585_v7 = vadd.f32 %v2209_v1, %v1690_v2 }
 0x2ff   :  { %v942_v63 = vpop.f32.mrf.mxu1  ;;  %v1150_v3 = vpop.f32.mrf.mxu0 }
 0x300   :  { %961 = vst [vmem:[#allocation2 + $0x38] sm:$0xff] %v2574_v62  ;;  %v2577_v0 = vadd.f32 %v1675_v60, %v942_v63  ;;  %v2600_v14 = vadd.f32 %v1690_v2, %v1150_v3 }
 0x302   :  { %960 = vst [vmem:[#allocation2 + $0x10] sm:$0xff] %v2577_v0 }
 0x307   :  { %v963_v4 = vld [vmem:[#allocation2 + $0x35] sm:$0xff] }
 0x308   :  { %v976_v5 = vld [vmem:[#allocation2 + $0x36] sm:$0xff]  ;;  %v972_v2 = vmul.f32 %v1676_v45, %v963_v4 }
 0x309   :  { %v2583_v6 = vld [vmem:[#allocation2 + $0x37] sm:$0xff]  ;;  %v2594_v11 = vld [vmem:[#allocation2 + $0xd] sm:$0xff]  ;;  %v986_v3 = vmul.f32 %v1678_v46, %v976_v5  ;;  %v1719_v5 = vld [vmem:[%s2793_s16 + $0x5] ss:$0 sm:$0xff] }
 0x30a   :  { %v2587_v8 = vld [vmem:[#allocation2 + $0x39] sm:$0xff]  ;;  %v2596_v12 = vld [vmem:[#allocation2 + $0xe] sm:$0xff] }
 0x30b   :  { %v2589_v9 = vld [vmem:[#allocation2 + $0x3a] sm:$0xff]  ;;  %v2598_v13 = vld [vmem:[#allocation2 + $0xf] sm:$0xff] }
 0x30c   :  { %v2591_v10 = vld [vmem:[#allocation2 + $0x3b] sm:$0xff]  ;;  %v2602_v15 = vld [vmem:[#allocation2 + $0x11] sm:$0xff] }
 0x30d   :  { %1169 = vst [vmem:[#allocation2 + $0x38] sm:$0xff] %v2585_v7  ;;  %v2604_v16 = vld [vmem:[#allocation2 + $0x12] sm:$0xff] }
 0x30e   :  { %v2606_v17 = vld [vmem:[#allocation2 + $0x13] sm:$0xff] }
 0x30f   :  { %1168 = vst [vmem:[#allocation2 + $0x10] sm:$0xff] %v2600_v14 }
 0x314   :  { %v1171_v19 = vld [vmem:[#allocation2 + $0x33] sm:$0xff]  ;;  %v2626_v40 = vld [vmem:[#allocation2 + $0x3b] sm:$0xff] }
 0x315   :  { %v1184_v20 = vld [vmem:[#allocation2 + $0x34] sm:$0xff]  ;;  %v1180_v22 = vmul.f32 %v1691_v18, %v1171_v19  ;;  %v2639_v48 = vld [vmem:[#allocation2 + $0x3c] sm:$0xff]  ;;  %v1701_v19 = vld [vmem:[%s2789_s12 + $0x5] ss:$0 sm:$0xff] }
 0x316   :  { %v1194_v23 = vmul.f32 %v1693_v21, %v1184_v20  ;;  %v1170_v24 = vld [vmem:[#allocation2 + $0xb] sm:$0xff]  ;;  %v1198_v26 = vld [vmem:[#allocation2 + $0x35] sm:$0xff]  ;;  %v2641_v49 = vld [vmem:[#allocation2 + $0x3d] sm:$0xff] }
 0x317   :  { %v1183_v25 = vld [vmem:[#allocation2 + $0xc] sm:$0xff]  ;;  %v1179_v29 = vmul.f32 %v1691_v18, %v1170_v24  ;;  %v1208_v32 = vmul.f32 %v1695_v27, %v1198_v26  ;;  %v1212_v34 = vld [vmem:[#allocation2 + $0x36] sm:$0xff] }
 0x318   :  { %v1196_v28 = vadd.f32 %v1194_v23, %v1180_v22  ;;  %v1193_v30 = vmul.f32 %v1693_v21, %v1183_v25  ;;  %v1226_v35 = vld [vmem:[#allocation2 + $0x37] sm:$0xff]  ;;  %v1197_v41 = vld [vmem:[#allocation2 + $0xd] sm:$0xff]  ;;  %v1222_v53 = vmul.f32 %v1697_v33, %v1212_v34  ;;  %v1715_v21 = vld [vmem:[%s2793_s16 + $0x3] ss:$0 sm:$0xff]  ;;  %v985_v34 = vmul.f32 %v1678_v46, %v2596_v12 }
 0x319   :  { %v1254_v36 = vld [vmem:[#allocation2 + $0x39] sm:$0xff]  ;;  %v1211_v51 = vld [vmem:[#allocation2 + $0xe] sm:$0xff]  ;;  %v1207_v58 = vmul.f32 %v1695_v27, %v1197_v41  ;;  %v1236_v18 = vmul.f32 %v1699_v47, %v1226_v35  ;;  %v1717_v22 = vld [vmem:[%s2793_s16 + $0x4] ss:$0 sm:$0xff] }
 0x31a   :  { %v1210_v38 = vadd.f32 %v1208_v32, %v1196_v28  ;;  %v2624_v39 = vld [vmem:[#allocation2 + $0x3a] sm:$0xff]  ;;  %v1195_v50 = vadd.f32 %v1193_v30, %v1179_v29  ;;  %v1225_v54 = vld [vmem:[#allocation2 + $0xf] sm:$0xff]  ;;  %v1221_v20 = vmul.f32 %v1697_v33, %v1211_v51  ;;  %v1680_v23 = vld [vmem:[%s2785_s8 + $0x2] ss:$0 sm:$0xff]  ;;  %v988_v28 = vadd.f32 %v986_v3, %v972_v2 }
 0x31b   :  { %v2643_v55 = vld [vmem:[#allocation2 + $0x11] sm:$0xff]  ;;  %v1250_v29 = vmul.f32 %v1701_v19, %v2585_v7  ;;  %v1703_v32 = vld [vmem:[%s2789_s12 + $0x6] ss:$0 sm:$0xff]  ;;  %v971_v33 = vmul.f32 %v1676_v45, %v2594_v11  ;;  %v1235_v35 = vmul.f32 %v1699_v47, %v1225_v54  ;;  %v1000_v41 = vmul.f32 %v1680_v23, %v2583_v6  ;;  %v1682_v7 = vld [vmem:[%s2785_s8 + $0x3] ss:$0 sm:$0xff] }
 0x31c   :  { %v2645_v56 = vld [vmem:[#allocation2 + $0x12] sm:$0xff]  ;;  %v1224_v63 = vadd.f32 %v1222_v53, %v1210_v38  ;;  %v1209_v1 = vadd.f32 %v1207_v58, %v1195_v50  ;;  %v1721_v38 = vld [vmem:[%s2793_s16 + $0x6] ss:$0 sm:$0xff]  ;;  %v1723_v11 = vld [vmem:[%s2793_s16 + $0x7] ss:$0 sm:$0xff]  ;;  %v1264_v46 = vmul.f32 %v1703_v32, %v1254_v36  ;;  %v1249_v3 = vmul.f32 %v1701_v19, %v2600_v14 }
 0x31d   :  { %v2244_v37 = vpop.f32.mrf.mxu1  ;;  %v2650_v59 = vld [vmem:[#allocation2 + $0x13] sm:$0xff]  ;;  %v1002_v45 = vadd.f32 %v1000_v41, %v988_v28  ;;  %v987_v2 = vadd.f32 %v985_v34, %v971_v33  ;;  %v1014_v36 = vmul.f32 %v1682_v7, %v2574_v62  ;;  %v1707_v41 = vld [vmem:[%s2789_s12 + $0x8] ss:$0 sm:$0xff] }
 0x31e   :  { %v2628_v42 = vadd.f32 %v2244_v37, %v1713_v31  ;;  %v2652_v60 = vld [vmem:[#allocation2 + $0x14] sm:$0xff]  ;;  %v1238_v4 = vadd.f32 %v1236_v18, %v1224_v63  ;;  %v1223_v24 = vadd.f32 %v1221_v20, %v1209_v1  ;;  %v1705_v1 = vld [vmem:[%s2789_s12 + $0x7] ss:$0 sm:$0xff]  ;;  %v1725_v20 = vld [vmem:[%s2793_s16 + $0x8] ss:$0 sm:$0xff] }
 0x31f   :  { %v1414_v52 = vpop.f32.mrf.mxu1  ;;  %v2654_v61 = vld [vmem:[#allocation2 + $0x15] sm:$0xff]  ;;  %v1016_v33 = vadd.f32 %v1014_v36, %v1002_v45  ;;  %v1278_v62 = vmul.f32 %v1705_v1, %v2624_v39  ;;  %v1686_v45 = vld [vmem:[%s2785_s8 + $0x5] ss:$0 sm:$0xff] }
 0x320   :  { %1433 = vst [vmem:[#allocation2 + $0x38] sm:$0xff] %v2628_v42  ;;  %v2648_v57 = vadd.f32 %v1713_v31, %v1414_v52  ;;  %v1252_v50 = vadd.f32 %v1250_v29, %v1238_v4  ;;  %v1237_v53 = vadd.f32 %v1235_v35, %v1223_v24  ;;  %v1684_v29 = vld [vmem:[%s2785_s8 + $0x4] ss:$0 sm:$0xff] }
 0x322   :  { %1432 = vst [vmem:[#allocation2 + $0x10] sm:$0xff] %v2648_v57  ;;  %v1251_v14 = vadd.f32 %v1249_v3, %v1237_v53 }
 0x327   :  { %v1435_v25 = vld [vmem:[#allocation2 + $0x31] sm:$0xff] }
 0x328   :  { %v1449_v26 = vld [vmem:[#allocation2 + $0x32] sm:$0xff]  ;;  %v1445_v30 = vmul.f32 %v1715_v21, %v1435_v25  ;;  %v1266_v25 = vadd.f32 %v1264_v46, %v1252_v50  ;;  %v1013_v46 = vmul.f32 %v1682_v7, %v2577_v0  ;;  %v1277_v7 = vmul.f32 %v1705_v1, %v2645_v56  ;;  %v1575_v56 = vld [vmem:[#allocation2 + $0x3b] sm:$0xff]  ;;  %v1735_v1 = vld [vmem:[%s2793_s16 + $0xd] ss:$0 sm:$0xff] }
 0x329   :  { %v1463_v27 = vld [vmem:[#allocation2 + $0x33] sm:$0xff]  ;;  %v1459_v31 = vmul.f32 %v1717_v22, %v1449_v26  ;;  %v1434_v12 = vld [vmem:[#allocation2 + $0x9] sm:$0xff] }
 0x32a   :  { %v1477_v37 = vld [vmem:[#allocation2 + $0x34] sm:$0xff]  ;;  %v1473_v52 = vmul.f32 %v1719_v5, %v1463_v27  ;;  %v1448_v63 = vld [vmem:[#allocation2 + $0xa] sm:$0xff]  ;;  %v1444_v4 = vmul.f32 %v1715_v21, %v1434_v12  ;;  %v1280_v53 = vadd.f32 %v1278_v62, %v1266_v25 }
 0x32b   :  { %v1461_v51 = vadd.f32 %v1459_v31, %v1445_v30  ;;  %v1491_v58 = vld [vmem:[#allocation2 + $0x35] sm:$0xff]  ;;  %v1487_v54 = vmul.f32 %v1721_v38, %v1477_v37  ;;  %v1462_v6 = vld [vmem:[#allocation2 + $0xb] sm:$0xff]  ;;  %v1458_v24 = vmul.f32 %v1717_v22, %v1448_v63  ;;  %v999_v30 = vmul.f32 %v1680_v23, %v2598_v13  ;;  %v1727_v31 = vld [vmem:[%s2793_s16 + $0x9] ss:$0 sm:$0xff] }
 0x32c   :  { %v1505_v18 = vld [vmem:[#allocation2 + $0x36] sm:$0xff]  ;;  %v1501_v27 = vmul.f32 %v1723_v11, %v1491_v58  ;;  %v1476_v28 = vld [vmem:[#allocation2 + $0xc] sm:$0xff]  ;;  %v1472_v22 = vmul.f32 %v1719_v5, %v1462_v6  ;;  %v1263_v13 = vmul.f32 %v1703_v32, %v2643_v55  ;;  %v1729_v23 = vld [vmem:[%s2793_s16 + $0xa] ss:$0 sm:$0xff]  ;;  %v1028_v5 = vmul.f32 %v1684_v29, %v2587_v8 }
 0x32d   :  { %v1475_v47 = vadd.f32 %v1473_v52, %v1461_v51  ;;  %v1519_v19 = vld [vmem:[#allocation2 + $0x37] sm:$0xff]  ;;  %v1460_v21 = vadd.f32 %v1458_v24, %v1444_v4  ;;  %v1515_v35 = vmul.f32 %v1725_v20, %v1505_v18  ;;  %v1490_v37 = vld [vmem:[#allocation2 + $0xd] sm:$0xff]  ;;  %v1001_v50 = vadd.f32 %v999_v30, %v987_v2  ;;  %v1731_v32 = vld [vmem:[%s2793_s16 + $0xb] ss:$0 sm:$0xff] }
 0x32e   :  { %v1486_v52 = vmul.f32 %v1721_v38, %v1476_v28  ;;  %v1529_v58 = vmul.f32 %v1727_v31, %v1519_v19  ;;  %v1504_v12 = vld [vmem:[#allocation2 + $0xe] sm:$0xff]  ;;  %v1547_v55 = vld [vmem:[#allocation2 + $0x39] sm:$0xff]  ;;  %v1500_v38 = vmul.f32 %v1723_v11, %v1490_v37  ;;  %v1030_v63 = vadd.f32 %v1028_v5, %v1016_v33  ;;  %v1709_v18 = vld [vmem:[%s2789_s12 + $0x9] ss:$0 sm:$0xff] }
 0x32f   :  { %v1489_v26 = vadd.f32 %v1487_v54, %v1475_v47  ;;  %v1474_v51 = vadd.f32 %v1472_v22, %v1460_v21  ;;  %v1265_v47 = vadd.f32 %v1263_v13, %v1251_v14  ;;  %v1292_v8 = vmul.f32 %v1707_v41, %v2626_v40  ;;  %v1518_v3 = vld [vmem:[#allocation2 + $0xf] sm:$0xff]  ;;  %v1561_v4 = vld [vmem:[#allocation2 + $0x3a] sm:$0xff]  ;;  %v1733_v24 = vld [vmem:[%s2793_s16 + $0xc] ss:$0 sm:$0xff] }
 0x330   :  { %v1543_v2 = vmul.f32 %v1729_v23, %v2628_v42  ;;  %v1015_v0 = vadd.f32 %v1013_v46, %v1001_v50  ;;  %v1514_v36 = vmul.f32 %v1725_v20, %v1504_v12  ;;  %v1042_v40 = vmul.f32 %v1686_v45, %v2589_v9  ;;  %v1546_v33 = vld [vmem:[#allocation2 + $0x11] sm:$0xff]  ;;  %v1711_v62 = vld [vmem:[%s2789_s12 + $0xa] ss:$0 sm:$0xff] }
 0x331   :  { %v1503_v34 = vadd.f32 %v1501_v27, %v1489_v26  ;;  %v1488_v54 = vadd.f32 %v1486_v52, %v1474_v51  ;;  %v1294_v25 = vadd.f32 %v1292_v8, %v1280_v53  ;;  %v1557_v42 = vmul.f32 %v1731_v32, %v1547_v55  ;;  %v1688_v27 = vld [vmem:[%s2785_s8 + $0x6] ss:$0 sm:$0xff]  ;;  %v1560_v52 = vld [vmem:[#allocation2 + $0x12] sm:$0xff] }
 0x332   :  { %v1027_v28 = vmul.f32 %v1684_v29, %v2602_v15  ;;  %v1279_v30 = vadd.f32 %v1277_v7, %v1265_v47  ;;  %v1528_v19 = vmul.f32 %v1727_v31, %v1518_v3  ;;  %v1044_v20 = vadd.f32 %v1042_v40, %v1030_v63  ;;  %v1589_v29 = vld [vmem:[#allocation2 + $0x3c] sm:$0xff] }
 0x333   :  { %v1517_v39 = vadd.f32 %v1515_v35, %v1503_v34  ;;  %v1502_v11 = vadd.f32 %v1500_v38, %v1488_v54  ;;  %v1306_v9 = vmul.f32 %v1709_v18, %v2639_v48  ;;  %v1571_v22 = vmul.f32 %v1733_v24, %v1561_v4  ;;  %v1737_v35 = vld [vmem:[%s2793_s16 + $0xe] ss:$0 sm:$0xff]  ;;  %v1689_v47 = vld [vmem:[%s2786_s9] ss:$0 sm:$0xff]  ;;  %v1741_v54 = vld [vmem:[%s2793_s16 + $0x10] ss:$0 sm:$0xff] }
 0x334   :  { %v1029_v34 = vadd.f32 %v1027_v28, %v1015_v0  ;;  %v1291_v15 = vmul.f32 %v1707_v41, %v2650_v59  ;;  %v1542_v31 = vmul.f32 %v1729_v23, %v2648_v57  ;;  %v1056_v48 = vmul.f32 %v1688_v27, %v2591_v10  ;;  %v1739_v59 = vld [vmem:[%s2793_s16 + $0xf] ss:$0 sm:$0xff]  ;;  %v1574_v10 = vld [vmem:[#allocation2 + $0x13] sm:$0xff]  ;;  %v1631_v7 = vld [vmem:[#allocation2 + $0x3f] sm:$0xff] }
 0x335   :  { %v1531_v6 = vadd.f32 %v1529_v58, %v1517_v39  ;;  %v1516_v14 = vadd.f32 %v1514_v36, %v1502_v11  ;;  %v1308_v50 = vadd.f32 %v1306_v9, %v1294_v25  ;;  %v1585_v51 = vmul.f32 %v1735_v1, %v1575_v56  ;;  %v1603_v39 = vld [vmem:[#allocation2 + $0x3d] sm:$0xff]  ;;  %v1602_v40 = vld [vmem:[#allocation2 + $0x15] sm:$0xff] }
 0x336   :  { %v1041_v5 = vmul.f32 %v1686_v45, %v2604_v16  ;;  %v1293_v53 = vadd.f32 %v1291_v15, %v1279_v30  ;;  %v1556_v58 = vmul.f32 %v1731_v32, %v1546_v33  ;;  %v1058_v12 = vadd.f32 %v1056_v48, %v1044_v20  ;;  %v1617_v45 = vld [vmem:[#allocation2 + $0x3e] sm:$0xff] }
 0x337   :  { %v1545_v26 = vadd.f32 %v1543_v2, %v1531_v6  ;;  %v1530_v37 = vadd.f32 %v1528_v19, %v1516_v14  ;;  %v1320_v46 = vmul.f32 %v1711_v62, %v2641_v49  ;;  %v1599_v23 = vmul.f32 %v1737_v35, %v1589_v29  ;;  %v1588_v6 = vld [vmem:[#allocation2 + $0x14] sm:$0xff]  ;;  %v1712_v2 = vld [vmem:[%s2790_s13] ss:$0 sm:$0xff] }
 0x338   :  { %v1043_v55 = vadd.f32 %v1041_v5, %v1029_v34  ;;  %v1305_v16 = vmul.f32 %v1709_v18, %v2652_v60  ;;  %v1570_v32 = vmul.f32 %v1733_v24, %v1560_v52  ;;  %v1613_v49 = vmul.f32 %v1739_v59, %v1603_v39  ;;  %v1743_v60 = vld [vmem:[%s2793_s16 + $0x11] ss:$0 sm:$0xff]  ;;  %v1744_v19 = vld [vmem:[%s2794_s17] ss:$0 sm:$0xff] }
 0x339   :  { %v1559_v21 = vadd.f32 %v1557_v42, %v1545_v26  ;;  %v1544_v41 = vadd.f32 %v1542_v31, %v1530_v37  ;;  %v1322_v63 = vadd.f32 %v1320_v46, %v1308_v50  ;;  %v1055_v3 = vmul.f32 %v1688_v27, %v2606_v17  ;;  %v1616_v27 = vld [vmem:[#allocation2 + $0x16] sm:$0xff] }
 0x33a   :  { %v1307_v0 = vadd.f32 %v1305_v16, %v1293_v53  ;;  %v1584_v4 = vmul.f32 %v1735_v1, %v1574_v10  ;;  %v1067_v11 = vadd.f32 %v1689_v47, %v1058_v12  ;;  %v1627_v36 = vmul.f32 %v1741_v54, %v1617_v45 }
 0x33b   :  { %v1573_v13 = vadd.f32 %v1571_v22, %v1559_v21  ;;  %v1558_v38 = vadd.f32 %v1556_v58, %v1544_v41  ;;  %v1057_v25 = vadd.f32 %v1055_v3, %v1043_v55  ;;  %v1319_v26 = vmul.f32 %v1711_v62, %v2654_v61  ;;  %v1630_v22 = vld [vmem:[#allocation2 + $0x17] sm:$0xff] }
 0x33c   :  { %v1598_v28 = vmul.f32 %v1737_v35, %v1588_v6  ;;  %v1331_v30 = vadd.f32 %v1712_v2, %v1322_v63  ;;  %v1641_v17 = vmul.f32 %v1743_v60, %v1631_v7  ;;  %v1612_v1 = vmul.f32 %v1739_v59, %v1602_v40 }
 0x33d   :  { %v1587_v57 = vadd.f32 %v1585_v51, %v1573_v13  ;;  %v1572_v18 = vadd.f32 %v1570_v32, %v1558_v38  ;;  %v1321_v14 = vadd.f32 %v1319_v26, %v1307_v0  ;;  %v1654_v9 = vadd.f32 %v1067_v11, %v2563_v44 }
 0x33e   :  { %v1066_v33 = vadd.f32 %v1689_v47, %v1057_v25  ;;  %v1626_v61 = vmul.f32 %v1741_v54, %v1616_v27  ;;  %v1640_v37 = vmul.f32 %v1743_v60, %v1630_v22 }
 0x33f   :  { %v1601_v8 = vadd.f32 %v1599_v23, %v1587_v57  ;;  %v1586_v42 = vadd.f32 %v1584_v4, %v1572_v18  ;;  %v1656_v62 = vadd.f32 %v1654_v9, %v1331_v30  ;;  %v1330_v29 = vadd.f32 %v1712_v2, %v1321_v14 }
 0x340   :  { %v1653_v48 = vadd.f32 %v1066_v33, %v2561_v43 }
 0x341   :  { %v1615_v24 = vadd.f32 %v1613_v49, %v1601_v8  ;;  %v1600_v20 = vadd.f32 %v1598_v28, %v1586_v42 }
 0x342   :  { %v1655_v13 = vadd.f32 %v1653_v48, %v1330_v29 }
 0x343   :  { %v1629_v56 = vadd.f32 %v1627_v36, %v1615_v24  ;;  %v1614_v34 = vadd.f32 %v1612_v1, %v1600_v20 }
 0x345   :  { %v1643_v21 = vadd.f32 %v1641_v17, %v1629_v56  ;;  %v1628_v35 = vadd.f32 %v1626_v61, %v1614_v34 }
 0x347   :  { %v1652_v15 = vadd.f32 %v1744_v19, %v1643_v21  ;;  %v1642_v50 = vadd.f32 %v1640_v37, %v1628_v35 }
 0x349   :  { %v1658_v31 = vadd.f32 %v1656_v62, %v1652_v15  ;;  %v1651_v44 = vadd.f32 %v1744_v19, %v1642_v50 }
 0x34b   :  { %1660 = vst [vmem:[%s2796_s19 + $0x8] sm:$0xff] %v1658_v31  ;;  %v1657_v51 = vadd.f32 %v1655_v13, %v1651_v44 }
 0x34d   :  { %1659 = vst [vmem:[%s2796_s19] sm:$0xff] %v1657_v51 }
 0x34e   :  { %1669 = vsyncpa [#allocation4], 1 }
 0x34f   :  { %1670 = vsyncpa [#allocation6], 1 }
 0x350   :  { %1671 = vsyncpa [#allocation9], 1 }

// kernel: macg_forward.3
= control target key start
LH: loop header
LB: loop body
LE: loop exit
PB: predicated region body
PF: predicated region fallthrough
CT: control target
= control target key end

     0   :  { %s3873_s3 = smov 2   ;;  %s3874_s7 = smov 1   ;;  %vm163_vm0 = vcmask 130048   ;;  %vm659_vm1 = vcmask 122880   ;;  %vm3886_vm2 = vmmov 0   ;;  %vm806_vm3 = vcmask 64512   ;;  %s4669_s0 = inlined_call_operand.smem [shape: u32[30], index: -1, kind: input, shape index: {}] }
   0x1   :  { %s3207_s6 = sld [smem:[%s4669_s0 + %s3873_s3]]   ;;  %s3875_s11 = smov 4  }
   0x2   :  { %s3937_s10 = sld [smem:[%s4669_s0 + %s3874_s7]]   ;;  %s3876_s15 = smov 3  }
   0x3   :  { %s3209_s14 = sld [smem:[%s4669_s0 + %s3875_s11]]   ;;  %s3877_s22 = smov 5  }
   0x4   :  { %s3208_s18 = sld [smem:[%s4669_s0 + %s3876_s15]]   ;;  %s3878_s26 = smov 6  }
   0x5   :  { %s3980_s21 = sld [smem:[%s4669_s0]]   ;;  %s3879_s30 = smov 80  }
   0x6   :  { %s3210_s25 = sld [smem:[%s4669_s0 + %s3877_s22]]   ;;  %s3880_s1 = smov 112  }
   0x7   :  { %v155_v0 = vld [vmem:[%s3207_s6 + $0x8] sm:$0xff]  ;;  %v154_v1 = vld [vmem:[%s3207_s6] sm:$0xff]  ;;  %s3211_s29 = sld [smem:[%s4669_s0 + %s3878_s26]]   ;;  %s3882_s2 = smov 64  }
   0x8   :  { %3492 = vmatprep.subr.mxu0 %v155_v0  ;;  %v138_v2 = vld [vmem:[%s3937_s10] sm:$0xff]  ;;  %3740 = vmatprep.subr.mxu1 %v155_v0  ;;  %v139_v3 = vld [vmem:[%s3937_s10 + $0x8] sm:$0xff]  ;;  %v140_v4 = vld [vmem:[%s3937_s10 + $0x10] sm:$0xff]  ;;  %s3883_s3 = smov 96   ;;  %s3884_s4 = smov 32  }
   0x9   :  { %3493 = vmatpush3.msra.mxu0 %v155_v0  ;;  %3496 = vmatprep.mubr.msk.f32.mxu0 %vm163_vm0, %v138_v2  ;;  %v152_v5 = vld [vmem:[%s3937_s10 + $0x70] sm:$0xff]  ;;  %v141_v6 = vld [vmem:[%s3937_s10 + $0x18] sm:$0xff]  ;;  %v142_v8 = vld [vmem:[%s3937_s10 + $0x20] sm:$0xff]  ;;  %s3885_s5 = smov 48   ;;  %s3889_s6 = smov 16  }
   0xa   :  { %3494 = vmatprep.subr.mxu0 %v154_v1  ;;  %3742 = vmatpush3.msra.mxu1 %v155_v0  ;;  %v153_v7 = vld [vmem:[%s3937_s10 + $0x78] sm:$0xff]  ;;  %v143_v9 = vld [vmem:[%s3937_s10 + $0x28] sm:$0xff]  ;;  %v144_v10 = vld [vmem:[%s3937_s10 + $0x30] sm:$0xff]  ;;  %s3896_s7 = smov 126   ;;  %s3897_s8 = smov 127  }
   0xb   :  { %3495 = vmatpush3.msra.mxu0 %v154_v1  ;;  %3741 = vmatprep.subr.mxu1 %v154_v1  ;;  %v145_v11 = vld [vmem:[%s3937_s10 + $0x38] sm:$0xff]  ;;  %v146_v12 = vld [vmem:[%s3937_s10 + $0x40] sm:$0xff]  ;;  %v147_v13 = vld [vmem:[%s3937_s10 + $0x48] sm:$0xff]  ;;  %s3898_s9 = smov 125   ;;  %s3900_s11 = smov 124  }
   0xc   :  { %3497 = vmatmul.mubr.msk.f32.vlgmr.msra.gmra.mxu0 %vm163_vm0, %v139_v3  ;;  %3743 = vmatpush3.msra.mxu1 %v154_v1  ;;  %v148_v14 = vld [vmem:[%s3937_s10 + $0x50] sm:$0xff]  ;;  %v149_v15 = vld [vmem:[%s3937_s10 + $0x58] sm:$0xff]  ;;  %v150_v16 = vld [vmem:[%s3937_s10 + $0x60] sm:$0xff]  ;;  %s3901_s12 = smov 122   ;;  %s3902_s13 = smov 121  }
   0xd   :  { %3499 = vmatprep.mubr.msk.f32.mxu0 %vm163_vm0, %v140_v4  ;;  %3517 = vmatprep.mubr.msk.f32.mxu1 %vm163_vm0, %v152_v5  ;;  %v151_v17 = vld [vmem:[%s3937_s10 + $0x68] sm:$0xff]  ;;  %v373_v19 = vld [vmem:[%s3209_s14] sm:$0xff]  ;;  %v124_v31 = vld [vmem:[%s3980_s21 + $0x10] sm:$0xff]  ;;  %s3899_s10 = smov 123   ;;  %s3906_s23 = smov 10  }
   0xe   :  { %3518 = vmatmul.mubr.msk.f32.vlgmr.msra.gmra.mxu1 %vm163_vm0, %v153_v7  ;;  %v374_v18 = vld [vmem:[%s3209_s14 + $0x8] sm:$0xff]  ;;  %v3982_v20 = vld [vmem:[%s3208_s18] ss:$0 sm:$0xff]  ;;  %v125_v33 = vld [vmem:[%s3980_s21 + $0x18] sm:$0xff]  ;;  %s3904_s14 = smov 9   ;;  %s3905_s18 = smov 7  }
   0xf   :  { %3520 = vmatprep.subr.mxu1 %v374_v18  ;;  %v122_v23 = vld [vmem:[%s3980_s21] sm:$0xff]  ;;  %v123_v25 = vld [vmem:[%s3980_s21 + $0x8] sm:$0xff]  ;;  %v128_v47 = vld [vmem:[%s3980_s21 + $0x30] sm:$0xff]  ;;  %s3214_s17 = sld [smem:[%s4669_s0 + %s3904_s14]]   ;;  %s3907_s27 = smov 8  }
  0x10   :  { %3500 = vmatmul.mubr.msk.f32.gmra.mxu0 %vm163_vm0, %v141_v6  ;;  %3521 = vmatpush3.msra.mxu1 %v374_v18  ;;  %v126_v39 = vld [vmem:[%s3980_s21 + $0x20] sm:$0xff]  ;;  %v127_v41 = vld [vmem:[%s3980_s21 + $0x28] sm:$0xff]  ;;  %v129_v49 = vld [vmem:[%s3980_s21 + $0x38] sm:$0xff]  ;;  %s3212_s22 = sld [smem:[%s4669_s0 + %s3905_s18]]   ;;  %s3911_s14 = smov 15  }
  0x11   :  { %3502 = vmatprep.mubr.msk.f32.mxu0 %vm163_vm0, %v142_v8  ;;  %3522 = vmatprep.subr.mxu1 %v373_v19  ;;  %v131_v53 = vld [vmem:[%s3980_s21 + $0x48] sm:$0xff]  ;;  %v130_v56 = vld [vmem:[%s3980_s21 + $0x40] sm:$0xff]  ;;  %v133_v63 = vld [vmem:[%s3980_s21 + $0x58] sm:$0xff]  ;;  %s3215_s26 = sld [smem:[%s4669_s0 + %s3906_s23]]   ;;  %s3918_s15 = smov 25  }
  0x12   :  { %3523 = vmatpush3.msra.mxu1 %v373_v19  ;;  %v132_v1 = vld [vmem:[%s3980_s21 + $0x50] sm:$0xff]  ;;  %v135_v8 = vld [vmem:[%s3980_s21 + $0x68] sm:$0xff]  ;;  %v137_v18 = vld [vmem:[%s3980_s21 + $0x78] sm:$0xff]  ;;  %s3919_s18 = smov 22   ;;  %s3920_s23 = smov 23  }
  0x14   :  { %3503 = vmatmul.mubr.msk.f32.gmra.mxu0 %vm163_vm0, %v143_v9 }
  0x15   :  { %3505 = vmatprep.mubr.msk.f32.mxu0 %vm163_vm0, %v144_v10 }
  0x18   :  { %3506 = vmatmul.mubr.msk.f32.gmra.mxu0 %vm163_vm0, %v145_v11  ;;  %v134_v11 = vld [vmem:[%s3980_s21 + $0x60] sm:$0xff] }
  0x19   :  { %3508 = vmatprep.mubr.msk.f32.mxu0 %vm163_vm0, %v146_v12 }
  0x1c   :  { %3509 = vmatmul.mubr.msk.f32.gmra.mxu0 %vm163_vm0, %v147_v13  ;;  %v136_v13 = vld [vmem:[%s3980_s21 + $0x70] sm:$0xff] }
  0x1d   :  { %3511 = vmatprep.mubr.msk.f32.mxu0 %vm163_vm0, %v148_v14 }
  0x20   :  { %3512 = vmatmul.mubr.msk.f32.gmra.mxu0 %vm163_vm0, %v149_v15 }
  0x21   :  { %3514 = vmatprep.mubr.msk.f32.mxu0 %vm163_vm0, %v150_v16 }
  0x24   :  { %3515 = vmatmul.mubr.msk.f32.gmra.mxu0 %vm163_vm0, %v151_v17 }
  0xcc   :  { %v3498_v21 = vpop.f32.mrf.mxu0 }
  0xcd   :  { %v284_v22 = vadd.f32 %v3498_v21, %v3982_v20 }
  0xce   :  { %v278_v24 = vpop.f32.mrf.mxu0  ;;  %v3519_v58 = vpop.f32.mrf.mxu1 }
  0xcf   :  { %v279_v26 = vadd.f32 %v3982_v20, %v278_v24  ;;  %v358_v29 = vmul.f32 %v284_v22, %v123_v25  ;;  %v354_v16 = vadd.f32 %v3519_v58, %v3982_v20  ;;  %v4041_v24 = vld [vmem:[%s3211_s29] ss:$0 sm:$0xff] }
  0xd0   :  { %v3501_v27 = vpop.f32.mrf.mxu0  ;;  %v348_v3 = vpop.f32.mrf.mxu1 }
  0xd1   :  { %v357_v28 = vmul.f32 %v279_v26, %v122_v23  ;;  %v294_v30 = vadd.f32 %v3501_v27, %v3982_v20  ;;  %v349_v10 = vadd.f32 %v3982_v20, %v348_v3  ;;  %v372_v21 = vmul.f32 %v354_v16, %v137_v18 }
  0xd2   :  { %v288_v32 = vpop.f32.mrf.mxu0 }
  0xd3   :  { %v289_v34 = vadd.f32 %v3982_v20, %v288_v32  ;;  %3524 = vmatprep.mubr.msk.f32.mxu1 %vm163_vm0, %v357_v28  ;;  %v360_v37 = vmul.f32 %v294_v30, %v125_v33  ;;  %v371_v19 = vmul.f32 %v349_v10, %v136_v13 }
  0xd4   :  { %v3504_v35 = vpop.f32.mrf.mxu0  ;;  %3525 = vmatmul.mubr.msk.f32.vlgmr.msra.gmra.mxu1 %vm163_vm0, %v358_v29 }
  0xd5   :  { %v359_v36 = vmul.f32 %v289_v34, %v124_v31  ;;  %v304_v38 = vadd.f32 %v3504_v35, %v3982_v20 }
  0xd6   :  { %v298_v40 = vpop.f32.mrf.mxu0 }
  0xd7   :  { %v299_v42 = vadd.f32 %v3982_v20, %v298_v40  ;;  %3527 = vmatprep.mubr.msk.f32.mxu1 %vm163_vm0, %v359_v36  ;;  %v362_v45 = vmul.f32 %v304_v38, %v127_v41 }
  0xd8   :  { %v3507_v43 = vpop.f32.mrf.mxu0  ;;  %3528 = vmatmul.mubr.msk.f32.gmra.mxu1 %vm163_vm0, %v360_v37 }
  0xd9   :  { %v361_v44 = vmul.f32 %v299_v42, %v126_v39  ;;  %v314_v46 = vadd.f32 %v3507_v43, %v3982_v20 }
  0xda   :  { %v308_v48 = vpop.f32.mrf.mxu0 }
  0xdb   :  { %v309_v50 = vadd.f32 %v3982_v20, %v308_v48  ;;  %3530 = vmatprep.mubr.msk.f32.mxu1 %vm163_vm0, %v361_v44  ;;  %v364_v55 = vmul.f32 %v314_v46, %v129_v49 }
  0xdc   :  { %3531 = vmatmul.mubr.msk.f32.gmra.mxu1 %vm163_vm0, %v362_v45  ;;  %v3510_v51 = vpop.f32.mrf.mxu0 }
  0xdd   :  { %v363_v52 = vmul.f32 %v309_v50, %v128_v47  ;;  %v324_v54 = vadd.f32 %v3510_v51, %v3982_v20 }
  0xde   :  { %v318_v57 = vpop.f32.mrf.mxu0 }
  0xdf   :  { %3533 = vmatprep.mubr.msk.f32.mxu1 %vm163_vm0, %v363_v52  ;;  %v319_v59 = vadd.f32 %v3982_v20, %v318_v57  ;;  %v366_v60 = vmul.f32 %v324_v54, %v131_v53 }
  0xe0   :  { %3534 = vmatmul.mubr.msk.f32.gmra.mxu1 %vm163_vm0, %v364_v55  ;;  %v3513_v61 = vpop.f32.mrf.mxu0 }
  0xe1   :  { %v365_v62 = vmul.f32 %v319_v59, %v130_v56  ;;  %v334_v0 = vadd.f32 %v3513_v61, %v3982_v20 }
  0xe2   :  { %v328_v2 = vpop.f32.mrf.mxu0 }
  0xe3   :  { %v329_v4 = vadd.f32 %v3982_v20, %v328_v2  ;;  %3536 = vmatprep.mubr.msk.f32.mxu1 %vm163_vm0, %v365_v62  ;;  %v368_v5 = vmul.f32 %v334_v0, %v133_v63 }
  0xe4   :  { %v3516_v6 = vpop.f32.mrf.mxu0  ;;  %3537 = vmatmul.mubr.msk.f32.gmra.mxu1 %vm163_vm0, %v366_v60 }
  0xe5   :  { %v367_v7 = vmul.f32 %v329_v4, %v132_v1  ;;  %v344_v9 = vadd.f32 %v3516_v6, %v3982_v20 }
  0xe6   :  { %v338_v12 = vpop.f32.mrf.mxu0 }
  0xe7   :  { %v339_v14 = vadd.f32 %v3982_v20, %v338_v12  ;;  %3539 = vmatprep.mubr.msk.f32.mxu1 %vm163_vm0, %v367_v7  ;;  %v370_v15 = vmul.f32 %v344_v9, %v135_v8  ;;  %v4038_v20 = vld [vmem:[%s3210_s25] ss:$0 sm:$0xff]  ;;  %v3881_v8 = vmov 0.0  }
  0xe8   :  { %3540 = vmatmul.mubr.msk.f32.gmra.mxu1 %vm163_vm0, %v368_v5  ;;  %3548 = vmatprep.subr.mxu0 %v3881_v8 }
  0xe9   :  { %v369_v17 = vmul.f32 %v339_v14, %v134_v11  ;;  %3553 = vmatprep.subr.mxu1 %v3881_v8  ;;  %3550 = vmatprep.mubr.msk.f32.mxu0 %vm3886_vm2, %v3881_v8 }
  0xeb   :  { %3542 = vmatprep.mubr.msk.f32.mxu1 %vm163_vm0, %v369_v17 }
  0xec   :  { %3543 = vmatmul.mubr.msk.f32.gmra.mxu1 %vm163_vm0, %v370_v15 }
  0xed   :  { %3545 = vmatprep.mubr.msk.f32.mxu1 %vm163_vm0, %v371_v19 }
  0xf0   :  { %3546 = vmatmul.mubr.msk.f32.gmra.mxu1 %vm163_vm0, %v372_v21  ;;  %v3887_v21 = vmov 2  }
  0xf1   :  { %3555 = vmatprep.mubr.msk.f32.mxu1 %vm3886_vm2, %v3881_v8  ;;  %3798 = vset.pattern.permute.xlu0 %v3887_v21 }
 0x194   :  { %v3526_v22 = vpop.f32.mrf.mxu1 }
 0x195   :  { %v576_v23 = vmul.f32 %v3526_v22, %v4038_v20  ;;  %v3888_v22 = vmov 1  }
 0x196   :  { %v489_v25 = vpop.f32.mrf.mxu1  ;;  %3797 = vset.pattern.permute.xlu1 %v3888_v22 }
 0x197   :  { %v575_v26 = vmul.f32 %v4038_v20, %v489_v25  ;;  %v599_v28 = vadd.f32 %v4041_v24, %v576_v23 }
 0x198   :  { %v3529_v27 = vpop.f32.mrf.mxu1 }
 0x199   :  { %v598_v29 = vadd.f32 %v4041_v24, %v575_v26  ;;  %v578_v30 = vmul.f32 %v3529_v27, %v4038_v20  ;;  %v615_v36 = vmax.f32 %v599_v28, 0.0 }
 0x19a   :  { %v499_v31 = vpop.f32.mrf.mxu1 }
 0x19b   :  { %v614_v32 = vmax.f32 %v598_v29, 0.0  ;;  %v577_v33 = vmul.f32 %v4038_v20, %v499_v31  ;;  %v601_v34 = vadd.f32 %v4041_v24, %v578_v30 }
 0x19c   :  { %v3532_v35 = vpop.f32.mrf.mxu1 }
 0x19d   :  { %v600_v37 = vadd.f32 %v4041_v24, %v577_v33  ;;  %v580_v38 = vmul.f32 %v3532_v35, %v4038_v20  ;;  %v630_v40 = vadd.f32 %v615_v36, %v614_v32  ;;  %v617_v43 = vmax.f32 %v601_v34, 0.0 }
 0x19e   :  { %v509_v39 = vpop.f32.mrf.mxu1 }
 0x19f   :  { %v616_v41 = vmax.f32 %v600_v37, 0.0  ;;  %v579_v42 = vmul.f32 %v4038_v20, %v509_v39  ;;  %v603_v46 = vadd.f32 %v4041_v24, %v580_v38 }
 0x1a0   :  { %v3535_v44 = vpop.f32.mrf.mxu1 }
 0x1a1   :  { %v631_v45 = vadd.f32 %v630_v40, %v616_v41  ;;  %v602_v47 = vadd.f32 %v4041_v24, %v579_v42  ;;  %v582_v48 = vmul.f32 %v3535_v44, %v4038_v20  ;;  %v619_v53 = vmax.f32 %v603_v46, 0.0 }
 0x1a2   :  { %v519_v49 = vpop.f32.mrf.mxu1 }
 0x1a3   :  { %v618_v50 = vmax.f32 %v602_v47, 0.0  ;;  %v632_v51 = vadd.f32 %v631_v45, %v617_v43  ;;  %v581_v52 = vmul.f32 %v4038_v20, %v519_v49  ;;  %v605_v55 = vadd.f32 %v4041_v24, %v582_v48 }
 0x1a4   :  { %v3538_v5 = vpop.f32.mrf.mxu1 }
 0x1a5   :  { %v633_v54 = vadd.f32 %v632_v51, %v618_v50  ;;  %v604_v56 = vadd.f32 %v4041_v24, %v581_v52  ;;  %v621_v59 = vmax.f32 %v605_v55, 0.0  ;;  %v584_v6 = vmul.f32 %v3538_v5, %v4038_v20 }
 0x1a6   :  { %v529_v7 = vpop.f32.mrf.mxu1  ;;  %v3895_v5 = vmov 7  }
 0x1a7   :  { %v620_v57 = vmax.f32 %v604_v56, 0.0  ;;  %v634_v58 = vadd.f32 %v633_v54, %v619_v53  ;;  %v583_v9 = vmul.f32 %v4038_v20, %v529_v7  ;;  %v607_v10 = vadd.f32 %v4041_v24, %v584_v6 }
 0x1a8   :  { %v3541_v12 = vpop.f32.mrf.mxu1 }
 0x1a9   :  { %v635_v60 = vadd.f32 %v634_v58, %v620_v57  ;;  %v606_v11 = vadd.f32 %v4041_v24, %v583_v9  ;;  %v623_v13 = vmax.f32 %v607_v10, 0.0  ;;  %v586_v15 = vmul.f32 %v3541_v12, %v4038_v20 }
 0x1aa   :  { %v539_v16 = vpop.f32.mrf.mxu1 }
 0x1ab   :  { %v636_v61 = vadd.f32 %v635_v60, %v621_v59  ;;  %v622_v14 = vmax.f32 %v606_v11, 0.0  ;;  %v609_v17 = vadd.f32 %v4041_v24, %v586_v15  ;;  %v585_v18 = vmul.f32 %v4038_v20, %v539_v16 }
 0x1ac   :  { %v3544_v19 = vpop.f32.mrf.mxu1 }
 0x1ad   :  { %v637_v62 = vrot.slane %v636_v61, 4  ;;  %v643_v23 = vadd.f32 %v623_v13, %v622_v14  ;;  %v608_v25 = vadd.f32 %v4041_v24, %v585_v18  ;;  %v588_v26 = vmul.f32 %v3544_v19, %v4038_v20 }
 0x1ae   :  { %v549_v27 = vpop.f32.mrf.mxu1  ;;  %v625_v28 = vmax.f32 %v609_v17, 0.0 }
 0x1af   :  { %v638_v63 = vadd.f32 %v637_v62, %v636_v61  ;;  %v624_v29 = vmax.f32 %v608_v25, 0.0  ;;  %v611_v30 = vadd.f32 %v4041_v24, %v588_v26  ;;  %v587_v31 = vmul.f32 %v4038_v20, %v549_v27 }
 0x1b0   :  { %v3547_v32 = vpop.f32.mrf.mxu1 }
 0x1b1   :  { %v639_v0 = vrot.slane %v638_v63, 2  ;;  %v644_v33 = vadd.f32 %v643_v23, %v624_v29  ;;  %v610_v34 = vadd.f32 %v4041_v24, %v587_v31  ;;  %v590_v35 = vmul.f32 %v3547_v32, %v4038_v20 }
 0x1b2   :  { %v627_v36 = vmax.f32 %v611_v30, 0.0  ;;  %v559_v37 = vpop.f32.mrf.mxu1 }
 0x1b3   :  { %v640_v1 = vadd.f32 %v639_v0, %v638_v63  ;;  %v626_v38 = vmax.f32 %v610_v34, 0.0  ;;  %v645_v39 = vadd.f32 %v644_v33, %v625_v28  ;;  %v613_v40 = vadd.f32 %v4041_v24, %v590_v35 }
 0x1b4   :  { %v589_v41 = vmul.f32 %v4038_v20, %v559_v37  ;;  %v3890_v0 = vmov 5  }
 0x1b5   :  { %v641_v2 = vrot.slane %v640_v1, 1  ;;  %v646_v42 = vadd.f32 %v645_v39, %v626_v38  ;;  %v629_v44 = vmax.f32 %v613_v40, 0.0 }
 0x1b6   :  { %v612_v43 = vadd.f32 %v4041_v24, %v589_v41 }
 0x1b7   :  { %v642_v3 = vadd.f32 %v641_v2, %v640_v1  ;;  %v647_v46 = vadd.f32 %v646_v42, %v627_v36  ;;  %v3891_v1 = vmov 3   ;;  %v3892_v2 = vmov 0  }
 0x1b8   :  { %v628_v45 = vmax.f32 %v612_v43, 0.0 }
 0x1b9   :  { %v657_v4 = vmul.f32 0.015625, %v642_v3  ;;  %v3893_v3 = vmov 4  }
 0x1ba   :  { %v648_v47 = vadd.f32 %v647_v46, %v628_v45 }
 0x1bb   :  { %680 = vrot.lane.b32.xlu1 %v657_v4, %s3879_s30  ;;  %664 = vrot.lane.b32.xlu0 %v657_v4, %s3880_s1  ;;  %660 = vst.msk [vmem:[#allocation2] sm:$0x1] %vm659_vm1, %v657_v4 }
 0x1bc   :  { %v649_v48 = vadd.f32 %v648_v47, %v629_v44 }
 0x1be   :  { %v650_v49 = vrot.slane %v649_v48, 4 }
 0x1bf   :  { %688 = vrot.lane.b32.xlu1 %v657_v4, %s3882_s2  ;;  %672 = vrot.lane.b32.xlu0 %v657_v4, %s3883_s3 }
 0x1c0   :  { %v651_v50 = vadd.f32 %v650_v49, %v649_v48 }
 0x1c2   :  { %v652_v51 = vrot.slane %v651_v50, 2 }
 0x1c3   :  { %704 = vrot.lane.b32.xlu1 %v657_v4, %s3884_s4  ;;  %696 = vrot.lane.b32.xlu0 %v657_v4, %s3885_s5 }
 0x1c4   :  { %v653_v52 = vadd.f32 %v652_v51, %v651_v50 }
 0x1c6   :  { %v654_v53 = vrot.slane %v653_v52, 1 }
 0x1c7   :  { %712 = vrot.lane.b32.xlu0 %v657_v4, %s3889_s6  ;;  %v3894_v4 = vmov 6  }
 0x1c8   :  { %v655_v54 = vadd.f32 %v654_v53, %v653_v52 }
 0x1ca   :  { %v4090_v55 = vmul.f32 0.015625, %v655_v54 }
 0x1cc   :  { %661 = vst.msk [vmem:[#allocation2 + $0x8] sm:$0x1] %vm659_vm1, %v4090_v55 }
 0x22d   :  { %v681_v20 = vpop.permute.xlu1 %680  ;;  %v665_v56 = vpop.permute.xlu0 %664 }
 0x22e   :  { %686 = vst.msk [vmem:[#allocation2 + $0x3] sm:$0x1] %vm659_vm1, %v681_v20  ;;  %670 = vst.msk [vmem:[#allocation2 + $0x1] sm:$0x1] %vm659_vm1, %v665_v56 }
 0x231   :  { %v689_v24 = vpop.permute.xlu1 %688  ;;  %v673_v57 = vpop.permute.xlu0 %672 }
 0x232   :  { %694 = vst.msk [vmem:[#allocation2 + $0x4] sm:$0x1] %vm659_vm1, %v689_v24  ;;  %678 = vst.msk [vmem:[#allocation2 + $0x2] sm:$0x1] %vm659_vm1, %v673_v57 }
 0x235   :  { %v705_v58 = vpop.permute.xlu1 %704  ;;  %v697_v59 = vpop.permute.xlu0 %696 }
 0x236   :  { %710 = vst.msk [vmem:[#allocation2 + $0x6] sm:$0x1] %vm659_vm1, %v705_v58  ;;  %702 = vst.msk [vmem:[#allocation2 + $0x5] sm:$0x1] %vm659_vm1, %v697_v59 }
 0x239   :  { %v713_v60 = vpop.permute.xlu0 %712 }
 0x23a   :  { %718 = vst.msk [vmem:[#allocation2 + $0x7] sm:$0x1] %vm659_vm1, %v713_v60 }
 0x241   :  { %v4101_v61 = vld [vmem:[#allocation2] sm:$0xff] }
 0x242   :  { %3549 = vmatpush3.xpose.msk.msra.mxu0 %vm163_vm0, %v4101_v61 }
 0x243   :  { %3558 = vmatprep.subr.mxu0 %v3881_v8 }
 0x245   :  { %3551 = vmatmul.mubr.msk.f32.vlgmr.msra.gmra.mxu0 %vm163_vm0, %v4101_v61 }
 0x246   :  { %3560 = vmatprep.mubr.msk.f32.mxu0 %vm3886_vm2, %v3881_v8 }
 0x305   :  { %v4110_v62 = vpop.f32.mrf.mxu0 }
 0x306   :  { %830 = vperm.xlu0 %3798, %v4110_v62   ;;  %814 = vperm.xlu1 %3797, %v4110_v62  }
 0x307   :  { %v3552_v63 = vpop.f32.mrf.mxu0 }
 0x30a   :  { %3801 = vset.pattern.permute.xlu0 %v3890_v0  ;;  %3799 = vset.pattern.permute.xlu1 %v3891_v1 }
 0x30b   :  { %878 = vperm.xlu0 %3801, %v4110_v62   ;;  %846 = vperm.xlu1 %3799, %v4110_v62  }
 0x30f   :  { %3804 = vset.pattern.permute.xlu0 %v3892_v2  ;;  %3800 = vset.pattern.permute.xlu1 %v3893_v3 }
 0x310   :  { %801 = vperm.xlu0 %3804, %v4110_v62   ;;  %862 = vperm.xlu1 %3800, %v4110_v62  }
 0x314   :  { %3802 = vset.pattern.permute.xlu1 %v3894_v4  ;;  %3807 = vset.pattern.permute.xlu0 %v3887_v21 }
 0x315   :  { %894 = vperm.xlu1 %3802, %v4110_v62  }
 0x319   :  { %3803 = vset.pattern.permute.xlu1 %v3895_v5 }
 0x31a   :  { %910 = vperm.xlu1 %3803, %v4110_v62  }
 0x31e   :  { %3805 = vset.pattern.permute.xlu1 %v3892_v2 }
 0x381   :  { %v831_v6 = vpop.permute.xlu0 %830  ;;  %v815_v7 = vpop.permute.xlu1 %814 }
 0x382   :  { %vm833_vm4 = vcmp.ge.f32.partialorder %v4110_v62, %v831_v6  ;;  %vm817_vm5 = vcmp.ge.f32.partialorder %v4110_v62, %v815_v7 }
 0x383   :  { %v834_v9 = vsel %vm833_vm4, 1.0, %v3881_v8  ;;  %v818_v10 = vsel %vm817_vm5, 1.0, %v3881_v8 }
 0x384   :  { %v835_v11 = vsel %vm806_vm3, %v834_v9, 0.0  ;;  %v819_v12 = vsel %vm806_vm3, %v818_v10, 0.0 }
 0x385   :  { %836 = vadd.xlane.f32.xlu0 %v835_v11  ;;  %820 = vadd.xlane.f32.xlu1 %v819_v12 }
 0x386   :  { %v879_v13 = vpop.permute.xlu0 %878  ;;  %v847_v14 = vpop.permute.xlu1 %846 }
 0x387   :  { %vm881_vm6 = vcmp.ge.f32.partialorder %v4110_v62, %v879_v13  ;;  %vm849_vm7 = vcmp.ge.f32.partialorder %v4110_v62, %v847_v14 }
 0x388   :  { %v850_v15 = vsel %vm849_vm7, 1.0, %v3881_v8  ;;  %v882_v17 = vsel %vm881_vm6, 1.0, %v3881_v8 }
 0x389   :  { %v851_v16 = vsel %vm806_vm3, %v850_v15, 0.0  ;;  %v883_v19 = vsel %vm806_vm3, %v882_v17, 0.0 }
 0x38a   :  { %852 = vadd.xlane.f32.xlu1 %v851_v16 }
 0x38b   :  { %v863_v18 = vpop.permute.xlu1 %862  ;;  %v802_v23 = vpop.permute.xlu0 %801 }
 0x38c   :  { %vm865_vm8 = vcmp.ge.f32.partialorder %v4110_v62, %v863_v18  ;;  %vm804_vm9 = vcmp.ge.f32.partialorder %v4110_v62, %v802_v23  ;;  %v720_v18 = vlaneseq }
 0x38d   :  { %v866_v21 = vsel %vm865_vm8, 1.0, %v3881_v8  ;;  %v805_v29 = vsel %vm804_vm9, 1.0, %v3881_v8 }
 0x38e   :  { %884 = vadd.xlane.f32.xlu1 %v883_v19  ;;  %v867_v25 = vsel %vm806_vm3, %v866_v21, 0.0  ;;  %v807_v31 = vsel %vm806_vm3, %v805_v29, 0.0  ;;  %v4197_v19 = vshrl.u32 %v720_v18, 7  ;;  %v4199_v21 = vand.u32 127, %v720_v18 }
 0x38f   :  { %868 = vadd.xlane.f32.xlu0 %v867_v25  ;;  %v4203_v25 = vld [vmem:[%s3214_s17 + $0x8] sm:$0xff] }
 0x390   :  { %v895_v26 = vpop.permute.xlu1 %894  ;;  %vm724_vm9 = vcmp.eq.s32.totalorder %v4197_v19, %v4199_v21 }
 0x391   :  { %vm897_vm10 = vcmp.ge.f32.partialorder %v4110_v62, %v895_v26 }
 0x392   :  { %v898_v27 = vsel %vm897_vm10, 1.0, %v3881_v8 }
 0x393   :  { %v899_v28 = vsel %vm806_vm3, %v898_v27, 0.0  ;;  %v4212_v27 = vld [vmem:[%s3214_s17] sm:$0xff]  ;;  %s4372_s17 = sld [smem:[%s4669_s0 + %s3911_s14]]  }
 0x394   :  { %900 = vadd.xlane.f32.xlu0 %v899_v28  ;;  %v4231_v28 = vld [vmem:[%s3212_s22 + $0x8] sm:$0xff] }
 0x395   :  { %v911_v30 = vpop.permute.xlu1 %910 }
 0x396   :  { %vm913_vm11 = vcmp.ge.f32.partialorder %v4110_v62, %v911_v30  ;;  %v4234_v30 = vld [vmem:[%s3212_s22] sm:$0xff]  ;;  %s3913_s22 = smov 19  }
 0x397   :  { %v914_v32 = vsel %vm913_vm11, 1.0, %v3881_v8  ;;  %s3224_s25 = sld [smem:[%s4669_s0 + %s3913_s22]]  }
 0x398   :  { %808 = vadd.xlane.f32.xlu0 %v807_v31  ;;  %v915_v33 = vsel %vm806_vm3, %v914_v32, 0.0  ;;  %v4237_v32 = vld [vmem:[%s3215_s26] ss:$0 sm:$0xff]  ;;  %s3914_s26 = smov 14   ;;  %s3227_s22 = sld [smem:[%s4669_s0 + %s3919_s18]]  }
 0x399   :  { %916 = vadd.xlane.f32.xlu1 %v915_v33  ;;  %s3219_s29 = sld [smem:[%s4669_s0 + %s3914_s26]]  }
 0x39a   :  { %s3228_s26 = sld [smem:[%s4669_s0 + %s3920_s23]]  }
 0x40e   :  { %v837_v34 = vpop.xlane.xlu0 %836  ;;  %v821_v35 = vpop.xlane.xlu1 %820 }
 0x40f   :  { %vm838_vm12 = vcmp.ge.f32.partialorder %v837_v34, 4.0  ;;  %vm822_vm13 = vcmp.ge.f32.partialorder %v821_v35, 4.0 }
 0x410   :  { %v839_v36 = vsel %vm838_vm12, %v4110_v62, -1e+30  ;;  %v823_v37 = vsel %vm822_vm13, %v4110_v62, -1e+30 }
 0x411   :  { %841 = vrot.lane.b32.xlu0 %v839_v36, %s3896_s7  ;;  %825 = vrot.lane.b32.xlu1 %v823_v37, %s3897_s8 }
 0x413   :  { %v853_v38 = vpop.xlane.xlu1 %852 }
 0x414   :  { %vm854_vm14 = vcmp.ge.f32.partialorder %v853_v38, 4.0 }
 0x415   :  { %v855_v39 = vsel %vm854_vm14, %v4110_v62, -1e+30 }
 0x416   :  { %857 = vrot.lane.b32.xlu1 %v855_v39, %s3898_s9 }
 0x417   :  { %v885_v40 = vpop.xlane.xlu1 %884 }
 0x418   :  { %vm886_vm15 = vcmp.ge.f32.partialorder %v885_v40, 4.0  ;;  %v869_v41 = vpop.xlane.xlu0 %868 }
 0x419   :  { %v887_v42 = vsel %vm886_vm15, %v4110_v62, -1e+30  ;;  %vm870_vm4 = vcmp.ge.f32.partialorder %v869_v41, 4.0 }
 0x41a   :  { %v871_v43 = vsel %vm870_vm4, %v4110_v62, -1e+30  ;;  %889 = vrot.lane.b32.xlu0 %v887_v42, %s3899_s10 }
 0x41b   :  { %873 = vrot.lane.b32.xlu1 %v871_v43, %s3900_s11 }
 0x41d   :  { %v901_v44 = vpop.xlane.xlu0 %900 }
 0x41e   :  { %vm902_vm5 = vcmp.ge.f32.partialorder %v901_v44, 4.0 }
 0x41f   :  { %v903_v45 = vsel %vm902_vm5, %v4110_v62, -1e+30 }
 0x420   :  { %905 = vrot.lane.b32.xlu1 %v903_v45, %s3901_s12 }
 0x421   :  { %v809_v48 = vpop.xlane.xlu0 %808 }
 0x422   :  { %v917_v46 = vpop.xlane.xlu1 %916  ;;  %vm810_vm7 = vcmp.ge.f32.partialorder %v809_v48, 4.0 }
 0x423   :  { %vm918_vm6 = vcmp.ge.f32.partialorder %v917_v46, 4.0  ;;  %v811_v49 = vsel %vm810_vm7, %v4110_v62, -1e+30 }
 0x424   :  { %v919_v47 = vsel %vm918_vm6, %v4110_v62, -1e+30  ;;  %v812_v50 = vmax.f32 %v811_v49, -1e+30 }
 0x425   :  { %921 = vrot.lane.b32.xlu0 %v919_v47, %s3902_s13 }
 0x483   :  { %v826_v51 = vpop.permute.xlu1 %825  ;;  %v842_v53 = vpop.permute.xlu0 %841 }
 0x484   :  { %v828_v52 = vmax.f32 %v812_v50, %v826_v51 }
 0x486   :  { %v844_v54 = vmax.f32 %v828_v52, %v842_v53 }
 0x488   :  { %v858_v20 = vpop.permute.xlu1 %857 }
 0x489   :  { %v860_v56 = vmax.f32 %v844_v54, %v858_v20 }
 0x48c   :  { %v890_v58 = vpop.permute.xlu0 %889 }
 0x48d   :  { %v874_v24 = vpop.permute.xlu1 %873 }
 0x48e   :  { %v876_v57 = vmax.f32 %v860_v56, %v874_v24 }
 0x490   :  { %v892_v59 = vmax.f32 %v876_v57, %v890_v58 }
 0x492   :  { %v906_v60 = vpop.permute.xlu1 %905 }
 0x493   :  { %v908_v63 = vmax.f32 %v892_v59, %v906_v60 }
 0x497   :  { %v922_v6 = vpop.permute.xlu0 %921 }
 0x498   :  { %v924_v7 = vmax.f32 %v908_v63, %v922_v6 }
 0x49a   :  { %927 = vperm.xlu1 %3805, %v924_v7  }
 0x49e   :  { %666 = vrot.lane.b32.xlu1 %v4090_v55, %s3880_s1  ;;  %s3908_s1 = smov 11  }
 0x49f   :  { %3806 = vset.pattern.permute.xlu1 %v3888_v22  ;;  %v3903_v22 = vmov 1.0  }
 0x4a2   :  { %674 = vrot.lane.b32.xlu1 %v4090_v55, %s3883_s3 }
 0x4a6   :  { %682 = vrot.lane.b32.xlu1 %v4090_v55, %s3879_s30  ;;  %s3213_s30 = sld [smem:[%s4669_s0 + %s3907_s27]]   ;;  %s3921_s27 = smov 24  }
 0x4aa   :  { %690 = vrot.lane.b32.xlu1 %v4090_v55, %s3882_s2  ;;  %s3221_s2 = sld [smem:[%s4669_s0 + %s3889_s6]]  }
 0x4ac   :  { %v4306_v59 = vld [vmem:[%s3213_s30] ss:$0 sm:$0xff]  ;;  %s3229_s30 = sld [smem:[%s4669_s0 + %s3921_s27]]  }
 0x4ae   :  { %698 = vrot.lane.b32.xlu1 %v4090_v55, %s3885_s5  ;;  %s3909_s5 = smov 12  }
 0x4b2   :  { %706 = vrot.lane.b32.xlu1 %v4090_v55, %s3884_s4  ;;  %s3216_s4 = sld [smem:[%s4669_s0 + %s3908_s1]]   ;;  %s3922_s1 = smov 26  }
 0x4b3   :  { %s3231_s3 = sld [smem:[%s4669_s0 + %s3922_s1]]  }
 0x4b6   :  { %714 = vrot.lane.b32.xlu1 %v4090_v55, %s3889_s6  ;;  %s3915_s6 = smov 21  }
 0x515   :  { %v928_v9 = vpop.permute.xlu1 %927 }
 0x516   :  { %vm930_vm8 = vcmp.ge.f32.partialorder %v4110_v62, %v928_v9 }
 0x517   :  { %3554 = vmatpush3.msk.msra.mxu1 %vm930_vm8, %v3903_v22  ;;  %v931_v10 = vsel %vm930_vm8, 1.0, %v3881_v8 }
 0x518   :  { %v932_v11 = vsel %vm806_vm3, %v931_v10, 0.0  ;;  %3563 = vmatprep.subr.mxu1 %v3881_v8 }
 0x519   :  { %933 = vadd.xlane.f32.xlu0 %v932_v11  ;;  %v667_v12 = vpop.permute.xlu1 %666 }
 0x51a   :  { %671 = vst.msk [vmem:[#allocation2 + $0x9] sm:$0x1] %vm659_vm1, %v667_v12 }
 0x51d   :  { %v675_v13 = vpop.permute.xlu1 %674 }
 0x51e   :  { %679 = vst.msk [vmem:[#allocation2 + $0xa] sm:$0x1] %vm659_vm1, %v675_v13 }
 0x521   :  { %v683_v55 = vpop.permute.xlu1 %682 }
 0x522   :  { %687 = vst.msk [vmem:[#allocation2 + $0xb] sm:$0x1] %vm659_vm1, %v683_v55 }
 0x525   :  { %v691_v62 = vpop.permute.xlu1 %690 }
 0x526   :  { %695 = vst.msk [vmem:[#allocation2 + $0xc] sm:$0x1] %vm659_vm1, %v691_v62 }
 0x529   :  { %v699_v14 = vpop.permute.xlu1 %698 }
 0x52a   :  { %703 = vst.msk [vmem:[#allocation2 + $0xd] sm:$0x1] %vm659_vm1, %v699_v14 }
 0x52d   :  { %v707_v15 = vpop.permute.xlu1 %706 }
 0x52e   :  { %711 = vst.msk [vmem:[#allocation2 + $0xe] sm:$0x1] %vm659_vm1, %v707_v15 }
 0x531   :  { %v715_v16 = vpop.permute.xlu1 %714 }
 0x532   :  { %719 = vst.msk [vmem:[#allocation2 + $0xf] sm:$0x1] %vm659_vm1, %v715_v16 }
 0x539   :  { %v4247_v35 = vld [vmem:[#allocation2 + $0x8] sm:$0xff] }
 0x5a2   :  { %v934_v17 = vpop.xlane.xlu0 %933 }
 0x5a3   :  { %3815 = vrsqrt.f32 %v934_v17 }
 0x5b0   :  { %v3816_v23 = vpop.eup %3815 }
 0x5b1   :  { %3559 = vmatpush3.msk.msra.mxu0 %vm724_vm9, %v3816_v23  ;;  %v936_v26 = vsel %vm724_vm9, %v3816_v23, 0.0 }
 0x5b2   :  { %3556 = vmatmul.mubr.msk.f32.vlgmr.msra.gmra.mxu1 %vm806_vm3, %v936_v26  ;;  %3570 = vmatprep.subr.mxu0 %v3881_v8 }
 0x5b3   :  { %3564 = vmatpush3.msra.mxu1 %v4203_v25  ;;  %3567 = vmatprep.mubr.msk.f32.mxu1 %vm3886_vm2, %v3881_v8 }
 0x5b4   :  { %3565 = vmatprep.subr.mxu1 %v3881_v8 }
 0x5b5   :  { %3566 = vmatpush3.msra.mxu1 %v4212_v27 }
 0x5b6   :  { %3568 = vmatmul.mubr.msk.f32.vlgmr.msra.gmra.mxu1 %vm163_vm0, %v4101_v61  ;;  %3577 = vmatprep.subr.mxu1 %v3881_v8 }
 0x5b7   :  { %3579 = vmatprep.mubr.msk.f32.mxu1 %vm3886_vm2, %v3881_v8 }
 0x672   :  { %v1006_v29 = vpop.f32.mrf.mxu1 }
 0x673   :  { %3561 = vmatmul.mubr.msk.f32.vlgmr.msra.gmra.mxu0 %vm806_vm3, %v1006_v29 }
 0x674   :  { %3571 = vmatpush3.msra.mxu0 %v4231_v28  ;;  %v3557_v31 = vpop.f32.mrf.mxu1  ;;  %3574 = vmatprep.mubr.msk.f32.mxu0 %vm3886_vm2, %v3881_v8 }
 0x675   :  { %3572 = vmatprep.subr.mxu0 %v3881_v8 }
 0x676   :  { %3573 = vmatpush3.msra.mxu0 %v4234_v30  ;;  %v1158_v33 = vpop.f32.mrf.mxu1 }
 0x677   :  { %v1159_v34 = vadd.f32 %v4237_v32, %v1158_v33  ;;  %3582 = vmatprep.subr.mxu0 %v3881_v8  ;;  %3575 = vmatmul.mubr.msk.f32.vlgmr.msra.gmra.mxu0 %vm163_vm0, %v4101_v61 }
 0x678   :  { %3583 = vmatpush3.xpose.msk.msra.mxu0 %vm163_vm0, %v4247_v35  ;;  %v3569_v36 = vpop.f32.mrf.mxu1  ;;  %3584 = vmatprep.mubr.msk.f32.mxu0 %vm3886_vm2, %v3881_v8 }
 0x679   :  { %3578 = vmatpush3.msra.mxu1 %v1159_v34  ;;  %3592 = vmatprep.subr.mxu0 %v3881_v8 }
 0x67a   :  { %3587 = vmatprep.subr.mxu1 %v3881_v8 }
 0x67b   :  { %3585 = vmatmul.mubr.msk.f32.vlgmr.msra.gmra.mxu0 %vm163_vm0, %v4247_v35 }
 0x67c   :  { %3594 = vmatprep.mubr.msk.f32.mxu0 %vm3886_vm2, %v3881_v8 }
 0x733   :  { %v1079_v61 = vpop.f32.mrf.mxu0 }
 0x734   :  { %3580 = vmatmul.mubr.msk.f32.vlgmr.msra.gmra.mxu1 %vm806_vm3, %v1079_v61 }
 0x735   :  { %v3562_v37 = vpop.f32.mrf.mxu0  ;;  %3589 = vmatprep.mubr.msk.f32.mxu1 %vm3886_vm2, %v3881_v8 }
 0x737   :  { %v1237_v38 = vpop.f32.mrf.mxu0 }
 0x738   :  { %v1238_v60 = vadd.f32 %v4306_v59, %v1237_v38 }
 0x739   :  { %v3576_v39 = vpop.f32.mrf.mxu0 }
 0x73b   :  { %v4262_v40 = vpop.f32.mrf.mxu0 }
 0x73c   :  { %1435 = vperm.xlu0 %3807, %v4262_v40   ;;  %1419 = vperm.xlu1 %3806, %v4262_v40  }
 0x73d   :  { %v3586_v41 = vpop.f32.mrf.mxu0 }
 0x740   :  { %3808 = vset.pattern.permute.xlu1 %v3891_v1  ;;  %3814 = vset.pattern.permute.xlu0 %v3892_v2 }
 0x741   :  { %1451 = vperm.xlu1 %3808, %v4262_v40  }
 0x745   :  { %3809 = vset.pattern.permute.xlu1 %v3893_v3 }
 0x746   :  { %1467 = vperm.xlu1 %3809, %v4262_v40  }
 0x74a   :  { %3810 = vset.pattern.permute.xlu1 %v3890_v0 }
 0x74b   :  { %1483 = vperm.xlu1 %3810, %v4262_v40  }
 0x74f   :  { %3811 = vset.pattern.permute.xlu1 %v3894_v4 }
 0x750   :  { %1499 = vperm.xlu1 %3811, %v4262_v40  }
 0x754   :  { %3812 = vset.pattern.permute.xlu1 %v3895_v5 }
 0x755   :  { %1515 = vperm.xlu1 %3812, %v4262_v40  }
 0x759   :  { %3813 = vset.pattern.permute.xlu1 %v3892_v2 }
 0x75a   :  { %1407 = vperm.xlu1 %3813, %v4262_v40  }
 0x7b7   :  { %v1436_v1 = vpop.permute.xlu0 %1435  ;;  %v1420_v3 = vpop.permute.xlu1 %1419 }
 0x7b8   :  { %vm1438_vm1 = vcmp.ge.f32.partialorder %v4262_v40, %v1436_v1  ;;  %vm1422_vm10 = vcmp.ge.f32.partialorder %v4262_v40, %v1420_v3 }
 0x7b9   :  { %v1439_v0 = vsel %vm1438_vm1, 1.0, %v3881_v8  ;;  %v1423_v4 = vsel %vm1422_vm10, 1.0, %v3881_v8 }
 0x7ba   :  { %v1440_v42 = vsel %vm806_vm3, %v1439_v0, 0.0  ;;  %v1424_v5 = vsel %vm806_vm3, %v1423_v4, 0.0 }
 0x7bb   :  { %1441 = vadd.xlane.f32.xlu0 %v1440_v42  ;;  %1425 = vadd.xlane.f32.xlu1 %v1424_v5 }
 0x7bc   :  { %v1452_v43 = vpop.permute.xlu1 %1451 }
 0x7bd   :  { %vm1454_vm11 = vcmp.ge.f32.partialorder %v4262_v40, %v1452_v43 }
 0x7be   :  { %v1455_v2 = vsel %vm1454_vm11, 1.0, %v3881_v8 }
 0x7bf   :  { %v1456_v44 = vsel %vm806_vm3, %v1455_v2, 0.0  ;;  %v1314_v2 = vld [vmem:[%s3216_s4] sm:$0xff]  ;;  %s3923_s4 = smov 27  }
 0x7c0   :  { %1457 = vadd.xlane.f32.xlu1 %v1456_v44 }
 0x7c1   :  { %v1468_v45 = vpop.permute.xlu1 %1467 }
 0x7c2   :  { %vm1470_vm12 = vcmp.ge.f32.partialorder %v4262_v40, %v1468_v45 }
 0x7c3   :  { %v1471_v46 = vsel %vm1470_vm12, 1.0, %v3881_v8 }
 0x7c4   :  { %v1472_v47 = vsel %vm806_vm3, %v1471_v46, 0.0 }
 0x7c5   :  { %1473 = vadd.xlane.f32.xlu1 %v1472_v47 }
 0x7c6   :  { %v1484_v48 = vpop.permute.xlu1 %1483 }
 0x7c7   :  { %vm1486_vm13 = vcmp.ge.f32.partialorder %v4262_v40, %v1484_v48 }
 0x7c8   :  { %v1487_v49 = vsel %vm1486_vm13, 1.0, %v3881_v8 }
 0x7c9   :  { %v1488_v50 = vsel %vm806_vm3, %v1487_v49, 0.0 }
 0x7ca   :  { %1489 = vadd.xlane.f32.xlu1 %v1488_v50 }
 0x7cb   :  { %v1500_v51 = vpop.permute.xlu1 %1499 }
 0x7cc   :  { %vm1502_vm14 = vcmp.ge.f32.partialorder %v4262_v40, %v1500_v51 }
 0x7cd   :  { %v1503_v52 = vsel %vm1502_vm14, 1.0, %v3881_v8  ;;  %vm2741_vm14 = vcmask 1041409  }
 0x7ce   :  { %v1504_v53 = vsel %vm806_vm3, %v1503_v52, 0.0  ;;  %v4381_v52 = vld [vmem:[%s3980_s21 + $0x10] sm:$0xff] }
 0x7cf   :  { %1505 = vadd.xlane.f32.xlu1 %v1504_v53  ;;  %v3858_v53 = vld [vmem:[%s3980_s21 + $0x18] sm:$0xff] }
 0x7d0   :  { %v1516_v54 = vpop.permute.xlu1 %1515 }
 0x7d1   :  { %vm1518_vm15 = vcmp.ge.f32.partialorder %v4262_v40, %v1516_v54  ;;  %v3859_v54 = vld [vmem:[%s3980_s21 + $0x20] sm:$0xff] }
 0x7d2   :  { %v1519_v20 = vsel %vm1518_vm15, 1.0, %v3881_v8 }
 0x7d3   :  { %v1520_v56 = vsel %vm806_vm3, %v1519_v20, 0.0  ;;  %v3860_v20 = vld [vmem:[%s3980_s21 + $0x28] sm:$0xff] }
 0x7d4   :  { %1521 = vadd.xlane.f32.xlu0 %v1520_v56  ;;  %v3861_v56 = vld [vmem:[%s3980_s21 + $0x30] sm:$0xff] }
 0x7d5   :  { %v1408_v24 = vpop.permute.xlu1 %1407 }
 0x7d6   :  { %vm1410_vm4 = vcmp.ge.f32.partialorder %v4262_v40, %v1408_v24  ;;  %v3862_v24 = vld [vmem:[%s3980_s21 + $0x38] sm:$0xff] }
 0x7d7   :  { %v1411_v57 = vsel %vm1410_vm4, 1.0, %v3881_v8 }
 0x7d8   :  { %v1412_v58 = vsel %vm806_vm3, %v1411_v57, 0.0  ;;  %v3863_v57 = vld [vmem:[%s3980_s21 + $0x40] sm:$0xff] }
 0x7d9   :  { %1413 = vadd.xlane.f32.xlu1 %v1412_v58  ;;  %v3864_v58 = vld [vmem:[%s3980_s21 + $0x48] sm:$0xff] }
 0x7f4   :  { %v1310_v63 = vpop.f32.mrf.mxu1 }
 0x7f5   :  { %v4309_v6 = vadd.f32 %v1310_v63, %v1238_v60  ;;  %v3865_v60 = vld [vmem:[%s3980_s21 + $0x50] sm:$0xff]  ;;  %v3866_v63 = vld [vmem:[%s3980_s21 + $0x58] sm:$0xff] }
 0x7f6   :  { %v3581_v7 = vpop.f32.mrf.mxu1 }
 0x7f7   :  { %v3867_v7 = vld [vmem:[%s3980_s21 + $0x60] sm:$0xff] }
 0x844   :  { %v1442_v9 = vpop.xlane.xlu0 %1441  ;;  %v1426_v10 = vpop.xlane.xlu1 %1425 }
 0x845   :  { %vm1443_vm5 = vcmp.ge.f32.partialorder %v1442_v9, 4.0  ;;  %vm1427_vm6 = vcmp.ge.f32.partialorder %v1426_v10, 4.0  ;;  %v3868_v9 = vld [vmem:[%s3980_s21 + $0x68] sm:$0xff]  ;;  %v3869_v10 = vld [vmem:[%s3980_s21 + $0x70] sm:$0xff] }
 0x846   :  { %v1444_v11 = vsel %vm1443_vm5, %v4262_v40, -1e+30  ;;  %v1428_v12 = vsel %vm1427_vm6, %v4262_v40, -1e+30 }
 0x847   :  { %1446 = vrot.lane.b32.xlu1 %v1444_v11, %s3896_s7  ;;  %1430 = vrot.lane.b32.xlu0 %v1428_v12, %s3897_s8  ;;  %v3870_v11 = vld [vmem:[%s3980_s21 + $0x78] sm:$0xff]  ;;  %s3916_s7 = smov 18   ;;  %s3232_s8 = sld [smem:[%s4669_s0 + %s3923_s4]]  }
 0x849   :  { %v1458_v13 = vpop.xlane.xlu1 %1457 }
 0x84a   :  { %vm1459_vm7 = vcmp.ge.f32.partialorder %v1458_v13, 4.0  ;;  %v2107_v13 = vld [vmem:[%s4372_s17] sm:$0xff] }
 0x84b   :  { %v1460_v55 = vsel %vm1459_vm7, %v4262_v40, -1e+30 }
 0x84c   :  { %1462 = vrot.lane.b32.xlu1 %v1460_v55, %s3898_s9  ;;  %s3217_s9 = sld [smem:[%s4669_s0 + %s3909_s5]]  }
 0x84d   :  { %s3226_s5 = sld [smem:[%s4669_s0 + %s3915_s6]]  }
 0x84e   :  { %v1474_v62 = vpop.xlane.xlu1 %1473 }
 0x84f   :  { %vm1475_vm8 = vcmp.ge.f32.partialorder %v1474_v62, 4.0 }
 0x850   :  { %v1476_v14 = vsel %vm1475_vm8, %v4262_v40, -1e+30 }
 0x851   :  { %1478 = vrot.lane.b32.xlu0 %v1476_v14, %s3900_s11  ;;  %s3917_s11 = smov 20  }
 0x852   :  { %v1321_v44 = vld [vmem:[%s3217_s9] sm:$0xff]  ;;  %s3225_s14 = sld [smem:[%s4669_s0 + %s3917_s11]]   ;;  %s3924_s9 = smov 28  }
 0x853   :  { %v1490_v15 = vpop.xlane.xlu1 %1489 }
 0x854   :  { %vm1491_vm1 = vcmp.ge.f32.partialorder %v1490_v15, 4.0 }
 0x855   :  { %v1492_v16 = vsel %vm1491_vm1, %v4262_v40, -1e+30 }
 0x856   :  { %1494 = vrot.lane.b32.xlu1 %v1492_v16, %s3899_s10  ;;  %s3910_s10 = smov 13  }
 0x858   :  { %v1506_v17 = vpop.xlane.xlu1 %1505 }
 0x859   :  { %vm1507_vm10 = vcmp.ge.f32.partialorder %v1506_v17, 4.0  ;;  %v2623_v17 = vld [vmem:[%s3224_s25] sm:$0x3] }
 0x85a   :  { %v1508_v18 = vsel %vm1507_vm10, %v4262_v40, -1e+30 }
 0x85b   :  { %1510 = vrot.lane.b32.xlu0 %v1508_v18, %s3901_s12  ;;  %s3233_s12 = sld [smem:[%s4669_s0 + %s3924_s9]]  }
 0x85d   :  { %v1522_v23 = vpop.xlane.xlu0 %1521 }
 0x85e   :  { %vm1523_vm11 = vcmp.ge.f32.partialorder %v1522_v23, 4.0 }
 0x85f   :  { %v1524_v26 = vsel %vm1523_vm11, %v4262_v40, -1e+30 }
 0x860   :  { %1526 = vrot.lane.b32.xlu1 %v1524_v26, %s3902_s13  ;;  %s3218_s13 = sld [smem:[%s4669_s0 + %s3910_s10]]  }
 0x861   :  { %s3223_s10 = sld [smem:[%s4669_s0 + %s3916_s7]]  }
 0x862   :  { %v1414_v29 = vpop.xlane.xlu1 %1413 }
 0x863   :  { %vm1415_vm12 = vcmp.ge.f32.partialorder %v1414_v29, 4.0 }
 0x864   :  { %v1416_v31 = vsel %vm1415_vm12, %v4262_v40, -1e+30 }
 0x865   :  { %v1417_v34 = vmax.f32 %v1416_v31, -1e+30 }
 0x8b9   :  { %v1431_v33 = vpop.permute.xlu0 %1430  ;;  %v1447_v36 = vpop.permute.xlu1 %1446 }
 0x8ba   :  { %v1433_v61 = vmax.f32 %v1417_v34, %v1431_v33  ;;  %v4461_v34 = vld [vmem:[%s3219_s29] ss:$0 sm:$0xff] }
 0x8bc   :  { %v1449_v37 = vmax.f32 %v1433_v61, %v1447_v36 }
 0x8be   :  { %v1463_v38 = vpop.permute.xlu1 %1462 }
 0x8bf   :  { %v1465_v41 = vmax.f32 %v1449_v37, %v1463_v38 }
 0x8c3   :  { %v1479_v39 = vpop.permute.xlu0 %1478 }
 0x8c4   :  { %v1481_v3 = vmax.f32 %v1465_v41, %v1479_v39 }
 0x8c8   :  { %v1495_v1 = vpop.permute.xlu1 %1494 }
 0x8c9   :  { %v1497_v4 = vmax.f32 %v1481_v3, %v1495_v1 }
 0x8cd   :  { %v1511_v0 = vpop.permute.xlu0 %1510 }
 0x8ce   :  { %v1513_v42 = vmax.f32 %v1497_v4, %v1511_v0 }
 0x8d2   :  { %v1527_v5 = vpop.permute.xlu1 %1526 }
 0x8d3   :  { %v1529_v43 = vmax.f32 %v1513_v42, %v1527_v5 }
 0x8d5   :  { %1532 = vperm.xlu0 %3814, %v1529_v43  }
 0x8d9   :  { %1317 = vperm.xlu0 %3814, %v1314_v2  }
 0x8dd   :  { %1324 = vperm.xlu0 %3814, %v1321_v44  }
 0x950   :  { %v1533_v45 = vpop.permute.xlu0 %1532 }
 0x951   :  { %vm1535_vm13 = vcmp.ge.f32.partialorder %v4262_v40, %v1533_v45 }
 0x952   :  { %3588 = vmatpush3.msk.msra.mxu1 %vm1535_vm13, %v3903_v22  ;;  %v1536_v46 = vsel %vm1535_vm13, 1.0, %v3881_v8 }
 0x953   :  { %v1537_v47 = vsel %vm806_vm3, %v1536_v46, 0.0  ;;  %3597 = vmatprep.subr.mxu1 %v3881_v8 }
 0x954   :  { %1538 = vadd.xlane.f32.xlu1 %v1537_v47 }
 0x9dd   :  { %v1539_v48 = vpop.xlane.xlu1 %1538 }
 0x9de   :  { %3817 = vrsqrt.f32 %v1539_v48 }
 0x9eb   :  { %v3818_v49 = vpop.eup %3817 }
 0x9ec   :  { %3593 = vmatpush3.msk.msra.mxu0 %vm724_vm9, %v3818_v49  ;;  %v1541_v40 = vsel %vm724_vm9, %v3818_v49, 0.0  ;;  %vm2415_vm9 = vcmask 15360  }
 0x9ed   :  { %3590 = vmatmul.mubr.msk.f32.vlgmr.msra.gmra.mxu1 %vm806_vm3, %v1541_v40  ;;  %3604 = vmatprep.subr.mxu0 %v3881_v8 }
 0x9ee   :  { %3598 = vmatpush3.msra.mxu1 %v4203_v25  ;;  %3601 = vmatprep.mubr.msk.f32.mxu1 %vm3886_vm2, %v3881_v8  ;;  %v1906_v25 = vld [vmem:[%s3218_s13 + $0x8] sm:$0xff] }
 0x9ef   :  { %3599 = vmatprep.subr.mxu1 %v3881_v8 }
 0x9f0   :  { %3600 = vmatpush3.msra.mxu1 %v4212_v27 }
 0x9f1   :  { %3602 = vmatmul.mubr.msk.f32.vlgmr.msra.gmra.mxu1 %vm163_vm0, %v4247_v35  ;;  %3611 = vmatprep.subr.mxu1 %v3881_v8 }
 0x9f2   :  { %3613 = vmatprep.mubr.msk.f32.mxu1 %vm3886_vm2, %v3881_v8 }
 0xaad   :  { %v1611_v22 = vpop.f32.mrf.mxu1 }
 0xaae   :  { %3595 = vmatmul.mubr.msk.f32.vlgmr.msra.gmra.mxu0 %vm806_vm3, %v1611_v22 }
 0xaaf   :  { %v3591_v21 = vpop.f32.mrf.mxu1  ;;  %3605 = vmatpush3.msra.mxu0 %v4231_v28  ;;  %3608 = vmatprep.mubr.msk.f32.mxu0 %vm3886_vm2, %v3881_v8  ;;  %v3855_v28 = vld [vmem:[%s3980_s21] sm:$0xff] }
 0xab0   :  { %3606 = vmatprep.subr.mxu0 %v3881_v8 }
 0xab1   :  { %v1754_v27 = vpop.f32.mrf.mxu1  ;;  %3607 = vmatpush3.msra.mxu0 %v4234_v30  ;;  %v1905_v30 = vld [vmem:[%s3218_s13] sm:$0xff]  ;;  %s3925_s13 = smov 29  }
 0xab2   :  { %v1755_v50 = vadd.f32 %v4237_v32, %v1754_v27  ;;  %3609 = vmatmul.mubr.msk.f32.vlgmr.msra.gmra.mxu0 %vm163_vm0, %v4247_v35  ;;  %3616 = vmatprep.subr.mxu0 %v1906_v25  ;;  %v4375_v32 = vld [vmem:[%s3980_s21 + $0x8] sm:$0xff]  ;;  %s3912_s21 = smov 17   ;;  %s3234_s16 = sld [smem:[%s4669_s0 + %s3925_s13]]  }
 0xab3   :  { %v3603_v51 = vpop.f32.mrf.mxu1  ;;  %3617 = vmatpush3.msra.mxu0 %v1906_v25  ;;  %3620 = vmatprep.mubr.msk.f32.mxu0 %vm163_vm0, %v3855_v28  ;;  %v2108_v35 = vld [vmem:[%s4372_s17 + $0x8] sm:$0xff]  ;;  %s3222_s20 = sld [smem:[%s4669_s0 + %s3912_s21]]  }
 0xab4   :  { %3612 = vmatpush3.msra.mxu1 %v1755_v50  ;;  %3618 = vmatprep.subr.mxu0 %v1905_v30  ;;  %v4484_v50 = vld [vmem:[%s3221_s2] ss:$0 sm:$0xff]  ;;  %s3230_s21 = sld [smem:[%s4669_s0 + %s3918_s15]]  }
 0xab5   :  { %3619 = vmatpush3.msra.mxu0 %v1905_v30  ;;  %3644 = vmatprep.subr.mxu1 %v2108_v35 }
 0xab6   :  { %3621 = vmatmul.mubr.msk.f32.vlgmr.msra.gmra.mxu0 %vm163_vm0, %v4375_v32 }
 0xab7   :  { %3623 = vmatprep.mubr.msk.f32.mxu0 %vm163_vm0, %v4381_v52 }
 0xab9   :  { %v2262_v15 = vld [vmem:[%s3222_s20 + $0x8] sm:$0xff]  ;;  %v2261_v16 = vld [vmem:[%s3222_s20] sm:$0xff] }
 0xaba   :  { %3624 = vmatmul.mubr.msk.f32.gmra.mxu0 %vm163_vm0, %v3858_v53  ;;  %3672 = vmatprep.subr.mxu0 %v2262_v15 }
 0xabb   :  { %3626 = vmatprep.mubr.msk.f32.mxu0 %vm163_vm0, %v3859_v54  ;;  %3673 = vmatpush3.msra.mxu0 %v2262_v15 }
 0xabc   :  { %3674 = vmatprep.subr.mxu0 %v2261_v16 }
 0xabd   :  { %3675 = vmatpush3.msra.mxu0 %v2261_v16 }
 0xabe   :  { %3627 = vmatmul.mubr.msk.f32.gmra.mxu0 %vm163_vm0, %v3860_v20 }
 0xabf   :  { %3629 = vmatprep.mubr.msk.f32.mxu0 %vm163_vm0, %v3861_v56 }
 0xac2   :  { %3630 = vmatmul.mubr.msk.f32.gmra.mxu0 %vm163_vm0, %v3862_v24 }
 0xac3   :  { %3632 = vmatprep.mubr.msk.f32.mxu0 %vm163_vm0, %v3863_v57 }
 0xac6   :  { %3633 = vmatmul.mubr.msk.f32.gmra.mxu0 %vm163_vm0, %v3864_v58 }
 0xac7   :  { %3635 = vmatprep.mubr.msk.f32.mxu0 %vm163_vm0, %v3865_v60 }
 0xaca   :  { %3636 = vmatmul.mubr.msk.f32.gmra.mxu0 %vm163_vm0, %v3866_v63 }
 0xacb   :  { %3638 = vmatprep.mubr.msk.f32.mxu0 %vm163_vm0, %v3867_v7 }
 0xace   :  { %3639 = vmatmul.mubr.msk.f32.gmra.mxu0 %vm163_vm0, %v3868_v9 }
 0xacf   :  { %3641 = vmatprep.mubr.msk.f32.mxu0 %vm163_vm0, %v3869_v10 }
 0xad2   :  { %3642 = vmatmul.mubr.msk.f32.gmra.mxu0 %vm163_vm0, %v3870_v11 }
 0xad3   :  { %3676 = vmatprep.mubr.msk.f32.mxu0 %vm163_vm0, %v3855_v28 }
 0xad6   :  { %3677 = vmatmul.mubr.msk.f32.vlgmr.msra.gmra.mxu0 %vm163_vm0, %v4375_v32 }
 0xad7   :  { %3679 = vmatprep.mubr.msk.f32.mxu0 %vm163_vm0, %v4381_v52 }
 0xada   :  { %3680 = vmatmul.mubr.msk.f32.gmra.mxu0 %vm163_vm0, %v3858_v53 }
 0xadb   :  { %3682 = vmatprep.mubr.msk.f32.mxu0 %vm163_vm0, %v3859_v54 }
 0xade   :  { %3683 = vmatmul.mubr.msk.f32.gmra.mxu0 %vm163_vm0, %v3860_v20 }
 0xadf   :  { %3685 = vmatprep.mubr.msk.f32.mxu0 %vm163_vm0, %v3861_v56 }
 0xae2   :  { %3686 = vmatmul.mubr.msk.f32.gmra.mxu0 %vm163_vm0, %v3862_v24 }
 0xae3   :  { %3688 = vmatprep.mubr.msk.f32.mxu0 %vm163_vm0, %v3863_v57 }
 0xae6   :  { %3689 = vmatmul.mubr.msk.f32.gmra.mxu0 %vm163_vm0, %v3864_v58 }
 0xae7   :  { %3691 = vmatprep.mubr.msk.f32.mxu0 %vm163_vm0, %v3865_v60 }
 0xaea   :  { %3692 = vmatmul.mubr.msk.f32.gmra.mxu0 %vm163_vm0, %v3866_v63 }
 0xaeb   :  { %3694 = vmatprep.mubr.msk.f32.mxu0 %vm163_vm0, %v3867_v7 }
 0xaee   :  { %3695 = vmatmul.mubr.msk.f32.gmra.mxu0 %vm163_vm0, %v3868_v9 }
 0xaef   :  { %3697 = vmatprep.mubr.msk.f32.mxu0 %vm163_vm0, %v3869_v10 }
 0xaf2   :  { %3698 = vmatmul.mubr.msk.f32.gmra.mxu0 %vm163_vm0, %v3870_v11 }
 0xb6e   :  { %v1684_v12 = vpop.f32.mrf.mxu0 }
 0xb6f   :  { %3614 = vmatmul.mubr.msk.f32.vlgmr.msra.gmra.mxu1 %vm806_vm3, %v1684_v12  ;;  %vm2630_vm3 = vcmask 1041408  }
 0xb70   :  { %v3596_v55 = vpop.f32.mrf.mxu0  ;;  %3645 = vmatpush3.msra.mxu1 %v2108_v35  ;;  %3648 = vmatprep.mubr.msk.f32.mxu1 %vm163_vm0, %v3855_v28 }
 0xb71   :  { %3646 = vmatprep.subr.mxu1 %v2107_v13 }
 0xb72   :  { %v4415_v62 = vpop.f32.mrf.mxu0  ;;  %3647 = vmatpush3.msra.mxu1 %v2107_v13 }
 0xb73   :  { %3649 = vmatmul.mubr.msk.f32.vlgmr.msra.gmra.mxu1 %vm163_vm0, %v4375_v32  ;;  %3700 = vmatprep.subr.msk.mxu1 %vm2630_vm3, %v2623_v17  ;;  %v1825_v45 = vadd.f32 %v4306_v59, %v4415_v62 }
 0xb74   :  { %v3610_v14 = vpop.f32.mrf.mxu0  ;;  %3651 = vmatprep.mubr.msk.f32.mxu1 %vm163_vm0, %v4381_v52  ;;  %3701 = vmatpush3.msk.msra.mxu1 %vm2630_vm3, %v2623_v17 }
 0xb75   :  { %3705 = vmatprep.subr.mxu1 %v3881_v8 }
 0xb76   :  { %v3622_v18 = vpop.f32.mrf.mxu0 }
 0xb77   :  { %3652 = vmatmul.mubr.msk.f32.gmra.mxu1 %vm163_vm0, %v3858_v53  ;;  %v2034_v61 = vadd.f32 %v3622_v18, %v4461_v34 }
 0xb78   :  { %3654 = vmatprep.mubr.msk.f32.mxu1 %vm163_vm0, %v3859_v54  ;;  %v2028_v23 = vpop.f32.mrf.mxu0 }
 0xb79   :  { %v2029_v37 = vadd.f32 %v4461_v34, %v2028_v23  ;;  %v2417_v39 = vsel %vm2415_vm9, %v2034_v61, 0.0 }
 0xb7a   :  { %v3625_v26 = vpop.f32.mrf.mxu0 }
 0xb7b   :  { %3655 = vmatmul.mubr.msk.f32.gmra.mxu1 %vm163_vm0, %v3860_v20  ;;  %v2416_v41 = vsel %vm2415_vm9, %v2029_v37, 0.0  ;;  %v2044_v4 = vadd.f32 %v3625_v26, %v4461_v34 }
 0xb7c   :  { %3657 = vmatprep.mubr.msk.f32.mxu1 %vm163_vm0, %v3861_v56  ;;  %v2038_v29 = vpop.f32.mrf.mxu0  ;;  %v2418_v3 = vadd.f32 %v2417_v39, %v2416_v41 }
 0xb7d   :  { %v2039_v1 = vadd.f32 %v4461_v34, %v2038_v29  ;;  %v2421_v2 = vsel %vm2415_vm9, %v2044_v4, 0.0 }
 0xb7e   :  { %v3628_v31 = vpop.f32.mrf.mxu0 }
 0xb7f   :  { %3658 = vmatmul.mubr.msk.f32.gmra.mxu1 %vm163_vm0, %v3862_v24  ;;  %v2419_v42 = vsel %vm2415_vm9, %v2039_v1, 0.0  ;;  %v2054_v40 = vadd.f32 %v3628_v31, %v4461_v34 }
 0xb80   :  { %3660 = vmatprep.mubr.msk.f32.mxu1 %vm163_vm0, %v3863_v57  ;;  %v2048_v33 = vpop.f32.mrf.mxu0  ;;  %v2420_v5 = vadd.f32 %v2419_v42, %v2418_v3 }
 0xb81   :  { %v2049_v44 = vadd.f32 %v4461_v34, %v2048_v33  ;;  %v2425_v59 = vsel %vm2415_vm9, %v2054_v40, 0.0 }
 0xb82   :  { %v3631_v36 = vpop.f32.mrf.mxu0  ;;  %v2422_v47 = vadd.f32 %v2421_v2, %v2420_v5 }
 0xb83   :  { %3661 = vmatmul.mubr.msk.f32.gmra.mxu1 %vm163_vm0, %v3864_v58  ;;  %v2423_v22 = vsel %vm2415_vm9, %v2049_v44, 0.0 }
 0xb84   :  { %3663 = vmatprep.mubr.msk.f32.mxu1 %vm163_vm0, %v3865_v60  ;;  %v2058_v38 = vpop.f32.mrf.mxu0  ;;  %v2424_v28 = vadd.f32 %v2423_v22, %v2422_v47 }
 0xb85   :  { %v2059_v32 = vadd.f32 %v4461_v34, %v2058_v38 }
 0xb86   :  { %v3634_v0 = vpop.f32.mrf.mxu0  ;;  %v2426_v57 = vadd.f32 %v2425_v59, %v2424_v28  ;;  %v2555_v28 = vsub.s32 3, %v4197_v19 }
 0xb87   :  { %3664 = vmatmul.mubr.msk.f32.gmra.mxu1 %vm163_vm0, %v3866_v63  ;;  %v2074_v25 = vadd.f32 %v3634_v0, %v4461_v34  ;;  %v2064_v63 = vadd.f32 %v3631_v36, %v4461_v34 }
 0xb88   :  { %3666 = vmatprep.mubr.msk.f32.mxu1 %vm163_vm0, %v3867_v7  ;;  %v2068_v43 = vpop.f32.mrf.mxu0  ;;  %v2427_v7 = vsel %vm2415_vm9, %v2059_v32, 0.0 }
 0xb89   :  { %v2069_v27 = vadd.f32 %v4461_v34, %v2068_v43  ;;  %v2432_v52 = vsel %vm2415_vm9, %v2074_v25, 0.0  ;;  %v2428_v16 = vadd.f32 %v2427_v7, %v2426_v57  ;;  %v2429_v23 = vsel %vm2415_vm9, %v2064_v63, 0.0 }
 0xb8a   :  { %v3637_v48 = vpop.f32.mrf.mxu0 }
 0xb8b   :  { %3667 = vmatmul.mubr.msk.f32.gmra.mxu1 %vm163_vm0, %v3868_v9  ;;  %v2431_v20 = vsel %vm2415_vm9, %v2069_v27, 0.0  ;;  %v2430_v41 = vadd.f32 %v2429_v23, %v2428_v16  ;;  %v2527_v27 = vsub.s32 1, %v4197_v19 }
 0xb8c   :  { %3669 = vmatprep.mubr.msk.f32.mxu1 %vm163_vm0, %v3869_v10  ;;  %v2078_v30 = vpop.f32.mrf.mxu0  ;;  %v2433_v10 = vadd.f32 %v2432_v52, %v2431_v20  ;;  %v2569_v52 = vsub.s32 4, %v4197_v19 }
 0xb8d   :  { %v2079_v56 = vadd.f32 %v4461_v34, %v2078_v30  ;;  %v4514_v47 = vmul.f32 0.125, %v2430_v41 }
 0xb8e   :  { %v3640_v58 = vpop.f32.mrf.mxu0 }
 0xb8f   :  { %3670 = vmatmul.mubr.msk.f32.gmra.mxu1 %vm163_vm0, %v3870_v11  ;;  %v2084_v11 = vadd.f32 %v3637_v48, %v4461_v34  ;;  %v2434_v62 = vsel %vm2415_vm9, %v2079_v56, 0.0  ;;  %v2094_v5 = vadd.f32 %v3640_v58, %v4461_v34  ;;  %v2528_v7 = vrot.slane %v4514_v47, %v2527_v27 }
 0xb90   :  { %v2088_v17 = vpop.f32.mrf.mxu0  ;;  %v2435_v33 = vadd.f32 %v2434_v62, %v2433_v10 }
 0xb91   :  { %v2436_v31 = vsel %vm2415_vm9, %v2084_v11, 0.0  ;;  %v2089_v38 = vadd.f32 %v4461_v34, %v2088_v17  ;;  %v2440_v32 = vsel %vm2415_vm9, %v2094_v5, 0.0 }
 0xb92   :  { %v3643_v3 = vpop.f32.mrf.mxu0  ;;  %v2437_v43 = vadd.f32 %v2436_v31, %v2435_v33 }
 0xb93   :  { %v2104_v63 = vadd.f32 %v3643_v3, %v4461_v34 }
 0xb94   :  { %v2098_v22 = vpop.f32.mrf.mxu0 }
 0xb95   :  { %v2099_v56 = vadd.f32 %v4461_v34, %v2098_v22  ;;  %v2444_v31 = vsel %vm2415_vm9, %v2104_v63, 0.0 }
 0xc2f   :  { %v1897_v46 = vpop.f32.mrf.mxu1 }
 0xc30   :  { %v4478_v49 = vadd.f32 %v1897_v46, %v1825_v45  ;;  %v2438_v46 = vsel %vm2415_vm9, %v2089_v38, 0.0 }
 0xc31   :  { %v3615_v21 = vpop.f32.mrf.mxu1 }
 0xc32   :  { %v4517_v21 = vsub.s32 0, %v4197_v19 }
 0xc33   :  { %v3650_v51 = vpop.f32.mrf.mxu1 }
 0xc34   :  { %v2188_v53 = vadd.f32 %v3650_v51, %v4484_v50  ;;  %v2541_v51 = vsub.s32 2, %v4197_v19  ;;  %v2514_v58 = vrot.slane %v4514_v47, %v4517_v21 }
 0xc35   :  { %v2182_v35 = vpop.f32.mrf.mxu1 }
 0xc36   :  { %v2183_v54 = vadd.f32 %v4484_v50, %v2182_v35  ;;  %v2450_v12 = vsel %vm2415_vm9, %v2188_v53, 0.0  ;;  %v2439_v35 = vadd.f32 %v2438_v46, %v2437_v43 }
 0xc37   :  { %v3653_v24 = vpop.f32.mrf.mxu1 }
 0xc38   :  { %v2449_v60 = vsel %vm2415_vm9, %v2183_v54, 0.0  ;;  %v2198_v13 = vadd.f32 %v3653_v24, %v4484_v50 }
 0xc39   :  { %v2192_v9 = vpop.f32.mrf.mxu1  ;;  %v2451_v14 = vadd.f32 %v2450_v12, %v2449_v60 }
 0xc3a   :  { %v2193_v55 = vadd.f32 %v4484_v50, %v2192_v9  ;;  %v2454_v36 = vsel %vm2415_vm9, %v2198_v13, 0.0  ;;  %v2542_v9 = vrot.slane %v4514_v47, %v2541_v51  ;;  %v2441_v13 = vadd.f32 %v2440_v32, %v2439_v35 }
 0xc3b   :  { %v3656_v15 = vpop.f32.mrf.mxu1 }
 0xc3c   :  { %v2452_v18 = vsel %vm2415_vm9, %v2193_v55, 0.0  ;;  %v2208_v61 = vadd.f32 %v3656_v15, %v4484_v50  ;;  %v2556_v55 = vrot.slane %v4514_v47, %v2555_v28  ;;  %v2570_v15 = vrot.slane %v4514_v47, %v2569_v52 }
 0xc3d   :  { %v2453_v26 = vadd.f32 %v2452_v18, %v2451_v14  ;;  %v2202_v29 = vpop.f32.mrf.mxu1  ;;  %v2442_v14 = vsel %vm2415_vm9, %v2099_v56, 0.0 }
 0xc3e   :  { %v2203_v37 = vadd.f32 %v4484_v50, %v2202_v29  ;;  %v2458_v2 = vsel %vm2415_vm9, %v2208_v61, 0.0 }
 0xc3f   :  { %v2455_v39 = vadd.f32 %v2454_v36, %v2453_v26  ;;  %v3659_v1 = vpop.f32.mrf.mxu1  ;;  %v2583_v26 = vsub.s32 5, %v4197_v19  ;;  %v2597_v36 = vsub.s32 6, %v4197_v19 }
 0xc40   :  { %v2456_v0 = vsel %vm2415_vm9, %v2203_v37, 0.0  ;;  %v2218_v44 = vadd.f32 %v3659_v1, %v4484_v50 }
 0xc41   :  { %v2457_v4 = vadd.f32 %v2456_v0, %v2455_v39  ;;  %v2212_v42 = vpop.f32.mrf.mxu1  ;;  %v2443_v39 = vadd.f32 %v2442_v14, %v2441_v13 }
 0xc42   :  { %v2213_v45 = vadd.f32 %v4484_v50, %v2212_v42  ;;  %v2462_v53 = vsel %vm2415_vm9, %v2218_v44, 0.0  ;;  %v2584_v42 = vrot.slane %v4514_v47, %v2583_v26 }
 0xc43   :  { %v2459_v48 = vadd.f32 %v2458_v2, %v2457_v4  ;;  %v3662_v40 = vpop.f32.mrf.mxu1  ;;  %v2611_v2 = vsub.s32 7, %v4197_v19 }
 0xc44   :  { %v2460_v25 = vsel %vm2415_vm9, %v2213_v45, 0.0  ;;  %v2228_v54 = vadd.f32 %v3662_v40, %v4484_v50  ;;  %v2445_v45 = vadd.f32 %v2444_v31, %v2443_v39  ;;  %v2598_v40 = vrot.slane %v4514_v47, %v2597_v36 }
 0xc45   :  { %v2461_v30 = vadd.f32 %v2460_v25, %v2459_v48  ;;  %v2222_v59 = vpop.f32.mrf.mxu1 }
 0xc46   :  { %v2223_v20 = vadd.f32 %v4484_v50, %v2222_v59  ;;  %v2465_v62 = vsel %vm2415_vm9, %v2228_v54, 0.0  ;;  %v2448_v54 = vmul.f32 0.125, %v2445_v45 }
 0xc47   :  { %v2463_v24 = vadd.f32 %v2462_v53, %v2461_v30  ;;  %v3665_v57 = vpop.f32.mrf.mxu1  ;;  %v2612_v53 = vrot.slane %v4514_v47, %v2611_v2 }
 0xc48   :  { %v2464_v60 = vsel %vm2415_vm9, %v2223_v20, 0.0  ;;  %v2238_v11 = vadd.f32 %v3665_v57, %v4484_v50 }
 0xc49   :  { %v2479_v10 = vmul.f32 0.125, %v2463_v24  ;;  %v2232_v12 = vpop.f32.mrf.mxu1  ;;  %v2466_v16 = vadd.f32 %v2465_v62, %v2464_v60 }
 0xc4a   :  { %v2233_v34 = vadd.f32 %v4484_v50, %v2232_v12  ;;  %v2469_v61 = vsel %vm2415_vm9, %v2238_v11, 0.0 }
 0xc4b   :  { %v3668_v17 = vpop.f32.mrf.mxu1  ;;  %v2519_v18 = vsub.f32 %v2514_v58, %v2479_v10  ;;  %v2533_v23 = vsub.f32 %v2528_v7, %v2479_v10  ;;  %v2547_v33 = vsub.f32 %v2542_v9, %v2479_v10  ;;  %v2561_v3 = vsub.f32 %v2556_v55, %v2479_v10 }
 0xc4c   :  { %v2467_v29 = vsel %vm2415_vm9, %v2233_v34, 0.0  ;;  %v2248_v41 = vadd.f32 %v3668_v17, %v4484_v50  ;;  %v2575_v43 = vsub.f32 %v2570_v15, %v2479_v10  ;;  %v2589_v48 = vsub.f32 %v2584_v42, %v2479_v10 }
 0xc4d   :  { %v2468_v37 = vadd.f32 %v2467_v29, %v2466_v16  ;;  %v2242_v38 = vpop.f32.mrf.mxu1  ;;  %3819 = vtanh.f32 %v2519_v18  ;;  %v2603_v35 = vsub.f32 %v2598_v40, %v2479_v10  ;;  %v2617_v24 = vsub.f32 %v2612_v53, %v2479_v10  ;;  %v2738_v40 = vld [vmem:[%s3226_s5 + $0x8] sm:$0xff] }
 0xc4e   :  { %v2243_v1 = vadd.f32 %v4484_v50, %v2242_v38  ;;  %3821 = vtanh.f32 %v2533_v23  ;;  %v2473_v22 = vsel %vm2415_vm9, %v2248_v41, 0.0  ;;  %v2518_v58 = vrot.slane %v2448_v54, %v4517_v21 }
 0xc4f   :  { %v2470_v0 = vadd.f32 %v2469_v61, %v2468_v37  ;;  %v3671_v4 = vpop.f32.mrf.mxu1  ;;  %3823 = vtanh.f32 %v2547_v33  ;;  %v2546_v7 = vrot.slane %v2448_v54, %v2541_v51  ;;  %v2560_v10 = vrot.slane %v2448_v54, %v2555_v28 }
 0xc50   :  { %v2471_v5 = vsel %vm2415_vm9, %v2243_v1, 0.0  ;;  %v2258_v25 = vadd.f32 %v3671_v4, %v4484_v50  ;;  %3825 = vtanh.f32 %v2561_v3  ;;  %v2588_v16 = vrot.slane %v2448_v54, %v2583_v26 }
 0xc51   :  { %v2472_v44 = vadd.f32 %v2471_v5, %v2470_v0  ;;  %v2252_v46 = vpop.f32.mrf.mxu1  ;;  %3827 = vtanh.f32 %v2575_v43  ;;  %v2602_v28 = vrot.slane %v2448_v54, %v2597_v36  ;;  %v2616_v61 = vrot.slane %v2448_v54, %v2611_v2 }
 0xc52   :  { %v2253_v30 = vadd.f32 %v4484_v50, %v2252_v46  ;;  %v2477_v56 = vsel %vm2415_vm9, %v2258_v25, 0.0  ;;  %3829 = vtanh.f32 %v2589_v48  ;;  %v2532_v50 = vrot.slane %v2448_v54, %v2527_v27  ;;  %v3678_v25 = vpop.f32.mrf.mxu0 }
 0xc53   :  { %v2474_v59 = vadd.f32 %v2473_v22, %v2472_v44  ;;  %3831 = vtanh.f32 %v2603_v35  ;;  %v2574_v27 = vrot.slane %v2448_v54, %v2569_v52  ;;  %v2737_v22 = vld [vmem:[%s3226_s5] sm:$0xff] }
 0xc54   :  { %v2475_v32 = vsel %vm2415_vm9, %v2253_v30, 0.0  ;;  %3833 = vtanh.f32 %v2617_v24  ;;  %v2336_v30 = vpop.f32.mrf.mxu0 }
 0xc55   :  { %v2476_v20 = vadd.f32 %v2475_v32, %v2474_v59 }
 0xc56   :  { %v3681_v59 = vpop.f32.mrf.mxu0 }
 0xc57   :  { %v2478_v57 = vadd.f32 %v2477_v56, %v2476_v20 }
 0xc58   :  { %v2346_v32 = vpop.f32.mrf.mxu0 }
 0xc59   :  { %v2480_v60 = vmul.f32 0.125, %v2478_v57 }
 0xc5a   :  { %v3820_v63 = vpop.eup %3819  ;;  %v3684_v35 = vpop.f32.mrf.mxu0 }
 0xc5b   :  { %v3822_v47 = vpop.eup %3821  ;;  %v2520_v9 = vsub.f32 %v2518_v58, %v2480_v60  ;;  %v2534_v11 = vsub.f32 %v2532_v50, %v2480_v60  ;;  %v2548_v13 = vsub.f32 %v2546_v7, %v2480_v60  ;;  %v2562_v34 = vsub.f32 %v2560_v10, %v2480_v60  ;;  %v3324_v58 = vld [vmem:[%s3223_s10] ss:$0 sm:$0xff] }
 0xc5c   :  { %v2537_v12 = vadd.f32 %v3822_v47, %v3820_v63  ;;  %v3824_v55 = vpop.eup %3823  ;;  %v2576_v15 = vsub.f32 %v2574_v27, %v2480_v60  ;;  %v2590_v23 = vsub.f32 %v2588_v16, %v2480_v60  ;;  %v2604_v33 = vsub.f32 %v2602_v28, %v2480_v60  ;;  %v2356_v53 = vpop.f32.mrf.mxu0 }
 0xc5d   :  { %3835 = vtanh.f32 %v2520_v9  ;;  %v3826_v14 = vpop.eup %3825  ;;  %v2618_v38 = vsub.f32 %v2616_v61, %v2480_v60  ;;  %v2342_v7 = vadd.f32 %v3678_v25, %v3324_v58  ;;  %v2337_v47 = vadd.f32 %v3324_v58, %v2336_v30 }
 0xc5e   :  { %3837 = vtanh.f32 %v2534_v11  ;;  %v2551_v62 = vadd.f32 %v3824_v55, %v2537_v12  ;;  %v3828_v17 = vpop.eup %3827  ;;  %v3687_v54 = vpop.f32.mrf.mxu0  ;;  %v2352_v16 = vadd.f32 %v3681_v59, %v3324_v58  ;;  %v2357_v61 = vadd.f32 %v3324_v58, %v2356_v53 }
 0xc5f   :  { %3839 = vtanh.f32 %v2548_v13  ;;  %v3830_v29 = vpop.eup %3829  ;;  %v2482_v10 = vsel %vm163_vm0, %v2342_v7, 0.0  ;;  %v2481_v55 = vsel %vm163_vm0, %v2337_v47, 0.0 }
 0xc60   :  { %v2565_v51 = vadd.f32 %v3826_v14, %v2551_v62  ;;  %3841 = vtanh.f32 %v2562_v34  ;;  %v3832_v52 = vpop.eup %3831  ;;  %v2366_v20 = vpop.f32.mrf.mxu0  ;;  %v2347_v62 = vadd.f32 %v3324_v58, %v2346_v32 }
 0xc61   :  { %3843 = vtanh.f32 %v2576_v15  ;;  %v3834_v39 = vpop.eup %3833 }
 0xc62   :  { %v2579_v18 = vadd.f32 %v3828_v17, %v2565_v51  ;;  %3845 = vtanh.f32 %v2590_v23  ;;  %v3690_v56 = vpop.f32.mrf.mxu0  ;;  %v2483_v51 = vadd.f32 %v2482_v10, %v2481_v55  ;;  %v2484_v17 = vsel %vm163_vm0, %v2347_v62, 0.0 }
 0xc63   :  { %3847 = vtanh.f32 %v2604_v33  ;;  %v2382_v50 = vadd.f32 %v3690_v56, %v3324_v58  ;;  %v2486_v33 = vsel %vm163_vm0, %v2352_v16, 0.0  ;;  %v2835_v16 = vld [vmem:[%s3230_s21 + $0x8] sm:$0xff] }
 0xc64   :  { %v2593_v31 = vadd.f32 %v3830_v29, %v2579_v18  ;;  %3849 = vtanh.f32 %v2618_v38  ;;  %v2376_v24 = vpop.f32.mrf.mxu0  ;;  %v2485_v29 = vadd.f32 %v2484_v17, %v2483_v51  ;;  %v2834_v17 = vld [vmem:[%s3230_s21] sm:$0xff] }
 0xc65   :  { %v2377_v60 = vadd.f32 %v3324_v58, %v2376_v24  ;;  %v2497_v9 = vsel %vm163_vm0, %v2382_v50, 0.0 }
 0xc66   :  { %v2607_v37 = vadd.f32 %v3832_v52, %v2593_v31  ;;  %v3693_v57 = vpop.f32.mrf.mxu0 }
 0xc67   :  { %v2496_v11 = vsel %vm163_vm0, %v2377_v60, 0.0  ;;  %v2392_v27 = vadd.f32 %v3693_v57, %v3324_v58 }
 0xc68   :  { %v2621_v41 = vadd.f32 %v3834_v39, %v2607_v37  ;;  %v2386_v63 = vpop.f32.mrf.mxu0  ;;  %v2498_v34 = vadd.f32 %v2497_v9, %v2496_v11  ;;  %v2487_v39 = vadd.f32 %v2486_v33, %v2485_v29  ;;  %v3346_v33 = vld [vmem:[%s3228_s26] ss:$0 sm:$0xff] }
 0xc69   :  { %v2387_v12 = vadd.f32 %v3324_v58, %v2386_v63  ;;  %v2501_v23 = vsel %vm163_vm0, %v2392_v27, 0.0 }
 0xc6a   :  { %v3836_v26 = vpop.eup %3835  ;;  %3702 = vmatprep.mubr.msk.f32.mxu1 %vm2415_vm9, %v2621_v41  ;;  %v3696_v13 = vpop.f32.mrf.mxu0 }
 0xc6b   :  { %v3838_v1 = vpop.eup %3837  ;;  %v2499_v14 = vsel %vm163_vm0, %v2387_v12, 0.0  ;;  %v2402_v37 = vadd.f32 %v3696_v13, %v3324_v58 }
 0xc6c   :  { %v2538_v3 = vadd.f32 %v3838_v1, %v3836_v26  ;;  %v3840_v19 = vpop.eup %3839  ;;  %v2396_v15 = vpop.f32.mrf.mxu0  ;;  %v2500_v18 = vadd.f32 %v2499_v14, %v2498_v34  ;;  %v2362_v26 = vadd.f32 %v3684_v35, %v3324_v58  ;;  %v2488_v1 = vsel %vm163_vm0, %v2357_v61, 0.0 }
 0xc6d   :  { %v3842_v0 = vpop.eup %3841  ;;  %v2397_v28 = vadd.f32 %v3324_v58, %v2396_v15 }
 0xc6e   :  { %v2552_v36 = vadd.f32 %v3840_v19, %v2538_v3  ;;  %v3844_v42 = vpop.eup %3843  ;;  %v3699_v31 = vpop.f32.mrf.mxu0  ;;  %v2502_v52 = vadd.f32 %v2501_v23, %v2500_v18  ;;  %v2505_v19 = vsel %vm163_vm0, %v2402_v37, 0.0 }
 0xc6f   :  { %v3846_v43 = vpop.eup %3845  ;;  %v2503_v38 = vsel %vm163_vm0, %v2397_v28, 0.0  ;;  %v1318_v18 = vpop.permute.xlu0 %1317  ;;  %v3345_v28 = vld [vmem:[%s3227_s22] ss:$0 sm:$0xff] }
 0xc70   :  { %v2566_v4 = vadd.f32 %v3842_v0, %v2552_v36  ;;  %v3848_v44 = vpop.eup %3847  ;;  %v2406_v41 = vpop.f32.mrf.mxu0  ;;  %v2504_v3 = vadd.f32 %v2503_v38, %v2502_v52  ;;  %v2709_v0 = vld [vmem:[%s3225_s14] sm:$0x1]  ;;  %v1320_v29 = vmul.f32 %v1318_v18, %v4309_v6 }
 0xc71   :  { %v3850_v46 = vpop.eup %3849  ;;  %v2407_v36 = vadd.f32 %v3324_v58, %v2406_v41 }
 0xc72   :  { %v2580_v5 = vadd.f32 %v3844_v42, %v2566_v4  ;;  %v2489_v4 = vadd.f32 %v2488_v1, %v2487_v39  ;;  %v2490_v42 = vsel %vm163_vm0, %v2362_v26, 0.0  ;;  %v3871_v39 = vld [vmem:[#allocation2] sm:$0xff]  ;;  %v1901_v26 = vmul.f32 %v4478_v49, %v1318_v18  ;;  %v3872_v49 = vld [vmem:[#allocation2 + $0x8] sm:$0xff] }
 0xc73   :  { %v1325_v23 = vpop.permute.xlu0 %1324 }
 0xc74   :  { %v2594_v2 = vadd.f32 %v3846_v43, %v2580_v5  ;;  %v2367_v5 = vadd.f32 %v3324_v58, %v2366_v20  ;;  %v2506_v43 = vadd.f32 %v2505_v19, %v2504_v3  ;;  %v1327_v61 = vadd.f32 %v1325_v23, %v1320_v29  ;;  %v2833_v3 = vld [vmem:[%s3229_s30 + $0x8] sm:$0xff]  ;;  %v2832_v19 = vld [vmem:[%s3229_s30] sm:$0xff] }
 0xc76   :  { %v2608_v45 = vadd.f32 %v3848_v44, %v2594_v2  ;;  %v2710_v2 = vmul.f32 8.0, %v2709_v0  ;;  %v2412_v44 = vadd.f32 %v3699_v31, %v3324_v58  ;;  %v1328_v41 = vadd.f32 %v3871_v39, %v1327_v61 }
 0xc78   :  { %v2622_v48 = vadd.f32 %v3850_v46, %v2608_v45  ;;  %v2507_v45 = vsel %vm163_vm0, %v2407_v36, 0.0  ;;  %v2491_v46 = vadd.f32 %v2490_v42, %v2489_v4  ;;  %v2715_v25 = vrot.slane %v2710_v2, %v4517_v21 }
 0xc79   :  { %v2509_v30 = vsel %vm163_vm0, %v2412_v44, 0.0  ;;  %v1329_v6 = vmax.f32 %v1328_v41, 0.0  ;;  %v1902_v36 = vadd.f32 %v1901_v26, %v1325_v23 }
 0xc7a   :  { %3703 = vmatmul.mubr.msk.f32.vlgmr.msra.gmra.mxu1 %vm2415_vm9, %v2622_v48  ;;  %v2372_v48 = vadd.f32 %v3687_v54, %v3324_v58 }
 0xc7b   :  { %3709 = vmatprep.mubr.msk.f32.mxu1 %vm3886_vm2, %v3881_v8  ;;  %3706 = vmatpush3.msra.mxu1 %v2738_v40  ;;  %v2492_v40 = vsel %vm163_vm0, %v2367_v5, 0.0  ;;  %v1903_v0 = vadd.f32 %v3872_v49, %v1902_v36 }
 0xc7c   :  { %3707 = vmatprep.subr.mxu1 %v3881_v8  ;;  %v2493_v59 = vadd.f32 %v2492_v40, %v2491_v46  ;;  %v2494_v32 = vsel %vm163_vm0, %v2372_v48, 0.0  ;;  %v3350_v46 = vld [vmem:[%s3232_s8] ss:$0 sm:$0xff] }
 0xc7d   :  { %3708 = vmatpush3.msra.mxu1 %v2737_v22  ;;  %v2508_v22 = vadd.f32 %v2507_v45, %v2506_v43  ;;  %v1904_v42 = vmax.f32 %v1903_v0, 0.0  ;;  %v3349_v45 = vld [vmem:[%s3231_s3] ss:$0 sm:$0xff] }
 0xc7e   :  { %3712 = vmatprep.subr.mxu1 %v3881_v8  ;;  %v2495_v57 = vadd.f32 %v2494_v32, %v2493_v59 }
 0xc7f   :  { %v2510_v53 = vadd.f32 %v2509_v30, %v2508_v22 }
 0xd3a   :  { %v3704_v35 = vpop.f32.mrf.mxu1 }
 0xd3b   :  { %v2718_v20 = vadd.f32 %v3704_v35, %v2715_v25 }
 0xd3c   :  { %v2700_v56 = vpop.f32.mrf.mxu1 }
 0xd3d   :  { %v2720_v24 = vmul.f32 %v2718_v20, %v2510_v53  ;;  %v2717_v50 = vadd.f32 %v2715_v25, %v2700_v56 }
 0xd3f   :  { %v2728_v60 = vsel %vm163_vm0, %v2720_v24, 0.0  ;;  %v2719_v54 = vmul.f32 %v2717_v50, %v2495_v57 }
 0xd40   :  { %v2729_v58 = vrot.slane %v2728_v60, 4 }
 0xd41   :  { %v2721_v63 = vsel %vm163_vm0, %v2719_v54, 0.0 }
 0xd42   :  { %v2730_v7 = vadd.f32 %v2729_v58, %v2728_v60  ;;  %v2722_v47 = vrot.slane %v2721_v63, 4 }
 0xd44   :  { %v2731_v9 = vrot.slane %v2730_v7, 2  ;;  %v2723_v11 = vadd.f32 %v2722_v47, %v2721_v63 }
 0xd46   :  { %v2732_v12 = vadd.f32 %v2731_v9, %v2730_v7  ;;  %v2724_v13 = vrot.slane %v2723_v11, 2 }
 0xd48   :  { %v2733_v10 = vrot.slane %v2732_v12, 1  ;;  %v2725_v55 = vadd.f32 %v2724_v13, %v2723_v11  ;;  %v3010_v11 = vld [vmem:[%s3233_s12] sm:$0xff] }
 0xd4a   :  { %v2734_v62 = vadd.f32 %v2733_v10, %v2732_v12  ;;  %v2726_v34 = vrot.slane %v2725_v55, 1 }
 0xd4c   :  { %v2727_v27 = vadd.f32 %v2726_v34, %v2725_v55  ;;  %v2736_v14 = vmul.f32 0.015625, %v2734_v62 }
 0xd4e   :  { %v2735_v51 = vmul.f32 0.015625, %v2727_v27 }
 0xd50   :  { %v2742_v15 = vsel %vm2741_vm14, %v2736_v14, %v2735_v51 }
 0xd51   :  { %3710 = vmatmul.mubr.msk.f32.vlgmr.msra.gmra.mxu1 %vm163_vm0, %v2742_v15 }
 0xd52   :  { %3716 = vmatprep.mubr.msk.f32.mxu1 %vm3886_vm2, %v3881_v8  ;;  %3713 = vmatpush3.msra.mxu1 %v2835_v16 }
 0xd53   :  { %3714 = vmatprep.subr.mxu1 %v3881_v8 }
 0xd54   :  { %3715 = vmatpush3.msra.mxu1 %v2834_v17 }
 0xd55   :  { %3719 = vmatprep.subr.mxu1 %v3881_v8 }
 0xe11   :  { %v2811_v31 = vpop.f32.mrf.mxu1 }
 0xe12   :  { %v2822_v52 = vmul.f32 %v3345_v28, %v2811_v31 }
 0xe13   :  { %v3711_v37 = vpop.f32.mrf.mxu1 }
 0xe14   :  { %v2830_v38 = vadd.f32 %v3346_v33, %v2822_v52 }
 0xe16   :  { %v2831_v1 = vmax.f32 %v2830_v38, 0.0 }
 0xe18   :  { %3717 = vmatmul.mubr.msk.f32.vlgmr.msra.gmra.mxu1 %vm163_vm0, %v2831_v1  ;;  %v3021_v4 = vrot.slane %v2831_v1, 1 }
 0xe19   :  { %3720 = vmatpush3.msra.mxu1 %v2833_v3  ;;  %3723 = vmatprep.mubr.msk.f32.mxu1 %vm3886_vm2, %v3881_v8 }
 0xe1a   :  { %3721 = vmatprep.subr.mxu1 %v3881_v8 }
 0xe1b   :  { %3722 = vmatpush3.msra.mxu1 %v2832_v19 }
 0xe1c   :  { %3724 = vmatmul.mubr.msk.f32.vlgmr.msra.gmra.mxu1 %vm163_vm0, %v1329_v6  ;;  %3726 = vmatprep.subr.mxu1 %v3881_v8 }
 0xe1d   :  { %3727 = vmatpush3.msra.mxu1 %v2835_v16  ;;  %3730 = vmatprep.mubr.msk.f32.mxu1 %vm3886_vm2, %v3881_v8 }
 0xe1e   :  { %3728 = vmatprep.subr.mxu1 %v3881_v8 }
 0xe1f   :  { %3729 = vmatpush3.msra.mxu1 %v2834_v17 }
 0xe20   :  { %3731 = vmatmul.mubr.msk.f32.vlgmr.msra.gmra.mxu1 %vm163_vm0, %v3021_v4  ;;  %3733 = vmatprep.subr.mxu1 %v3881_v8 }
 0xe21   :  { %3734 = vmatpush3.msra.mxu1 %v2833_v3  ;;  %3737 = vmatprep.mubr.msk.f32.mxu1 %vm3886_vm2, %v3881_v8  ;;  %vm3015_vm2 = vcmask 7168  }
 0xe22   :  { %3735 = vmatprep.subr.mxu1 %v3881_v8 }
 0xe23   :  { %3736 = vmatpush3.msra.mxu1 %v2832_v19 }
 0xe24   :  { %3738 = vmatmul.mubr.msk.f32.vlgmr.msra.gmra.mxu1 %vm163_vm0, %v1904_v42 }
 0xed8   :  { %v2905_v5 = vpop.f32.mrf.mxu1 }
 0xed9   :  { %v2912_v2 = vrot.slane %v2905_v5, %v4517_v21 }
 0xeda   :  { %v3718_v43 = vpop.f32.mrf.mxu1 }
 0xedc   :  { %v2982_v44 = vpop.f32.mrf.mxu1 }
 0xedd   :  { %v2983_v8 = vadd.f32 %v2982_v44, %v2912_v2 }
 0xede   :  { %v3725_v48 = vpop.f32.mrf.mxu1 }
 0xedf   :  { %v2993_v40 = vmul.f32 %v3349_v45, %v2983_v8 }
 0xee0   :  { %v3090_v22 = vpop.f32.mrf.mxu1 }
 0xee1   :  { %v3001_v25 = vadd.f32 %v3350_v46, %v2993_v40  ;;  %v3097_v59 = vrot.slane %v3090_v22, %v4517_v21 }
 0xee2   :  { %v3732_v30 = vpop.f32.mrf.mxu1 }
 0xee3   :  { %v3002_v32 = vmax.f32 %v3001_v25, 0.0 }
 0xee4   :  { %v3167_v35 = vpop.f32.mrf.mxu1 }
 0xee5   :  { %v3168_v53 = vadd.f32 %v3167_v35, %v3097_v59  ;;  %v3003_v20 = vmul.f32 %v3002_v32, %v3002_v32 }
 0xee6   :  { %v3739_v56 = vpop.f32.mrf.mxu1 }
 0xee7   :  { %v3178_v24 = vmul.f32 %v3349_v45, %v3168_v53  ;;  %v3004_v57 = vsel %vm163_vm0, %v3003_v20, 0.0 }
 0xee8   :  { %3005 = vadd.xlane.f32.xlu0 %v3004_v57 }
 0xee9   :  { %v3186_v50 = vadd.f32 %v3350_v46, %v3178_v24 }
 0xeeb   :  { %v3187_v60 = vmax.f32 %v3186_v50, 0.0 }
 0xeed   :  { %v3188_v54 = vmul.f32 %v3187_v60, %v3187_v60 }
 0xeef   :  { %v3189_v58 = vsel %vm163_vm0, %v3188_v54, 0.0 }
 0xef0   :  { %3190 = vadd.xlane.f32.xlu1 %v3189_v58 }
 0xf71   :  { %v3006_v63 = vpop.xlane.xlu0 %3005 }
 0xf72   :  { %v3007_v7 = vmax.f32 %v3006_v63, 1e-24 }
 0xf74   :  { %3851 = vrsqrt.f32 %v3007_v7 }
 0xf79   :  { %v3191_v47 = vpop.xlane.xlu1 %3190 }
 0xf7a   :  { %v3192_v21 = vmax.f32 %v3191_v47, 1e-24 }
 0xf7c   :  { %3853 = vrsqrt.f32 %v3192_v21 }
 0xf81   :  { %v3852_v9 = vpop.eup %3851 }
 0xf82   :  { %v3009_v12 = vmul.f32 %v3852_v9, %v3002_v32 }
 0xf84   :  { %v3011_v13 = vmul.f32 %v3010_v11, %v3009_v12 }
 0xf86   :  { %v3012_v10 = vsel %vm163_vm0, %v3011_v13, 0.0 }
 0xf87   :  { %3013 = vadd.xlane.f32.xlu1 %v3012_v10 }
 0xf89   :  { %v3854_v55 = vpop.eup %3853 }
 0xf8a   :  { %v3194_v62 = vmul.f32 %v3854_v55, %v3187_v60 }
 0xf8c   :  { %v3196_v34 = vmul.f32 %v3194_v62, %v3010_v11 }
 0xf8e   :  { %v3197_v27 = vsel %vm163_vm0, %v3196_v34, 0.0 }
 0xf8f   :  { %3198 = vadd.xlane.f32.xlu1 %v3197_v27 }
0x1010   :  { %v3014_v14 = vpop.xlane.xlu1 %3013 }
0x1011   :  { %3016 = vst.msk [vmem:[%s3234_s16] sm:$0xff] %vm3015_vm2, %v3014_v14 }
0x1018   :  { %v3199_v51 = vpop.xlane.xlu1 %3198 }
0x1019   :  { %3355 = vst.msk [vmem:[%s3234_s16 + $0x8] sm:$0xff] %vm3015_vm2, %v3199_v51 }

</bundles_post_ra>
